<compile_context>
chip_gen: v7x
topology: tpu7x:2x2x1
jax: 0.10.0
libtpu: 0.0.40
codegen_flags: <defaults>
</compile_context>

<pallas_src>
import functools

import numpy as np
import jax
import jax.numpy as jnp
from jax.experimental import pallas as pl
from jax.experimental.pallas import tpu as pltpu


_LANE = 128


# ----------------------------- small helpers -------------------------------


def _round_up(x, m):
    return (x + m - 1) // m * m


def _pick_tile(n, pref=512, floor=8):
    """Largest power-of-two tile <= pref that divides n (fallback: n)."""
    t = pref
    while t >= floor:
        if n % t == 0:
            return t
        t //= 2
    return n


def _bilinear_matrix(n_in, n_out):
    """1-D linear interpolation matrix, align_corners=True (PyTorch semantics)."""
    A = np.zeros((n_out, n_in), dtype=np.float32)
    if n_in == 1 or n_out == 1:
        A[:, 0] = 1.0
        return A
    scale = (n_in - 1) / (n_out - 1)
    for i in range(n_out):
        src = i * scale
        i0 = min(int(np.floor(src)), n_in - 1)
        i1 = min(i0 + 1, n_in - 1)
        frac = src - i0
        A[i, i0] += 1.0 - frac
        A[i, i1] += frac
    return A


# ------------------------ generic row-tiled matmul --------------------------


def _rowtile_matmul_kernel(a_ref, b_ref, o_ref):
    o_ref[...] = jnp.dot(a_ref[...], b_ref[...],
                         preferred_element_type=jnp.float32)


def _rowtile_matmul(a, b, *, tile=512):
    """(R, K) @ (K, C) -> (R, C), tiled + software-pipelined over rows (K, C small)."""
    R, K = a.shape
    C = b.shape[1]
    tr = _pick_tile(R, tile)
    return pl.pallas_call(
        _rowtile_matmul_kernel,
        grid=(R // tr,),
        in_specs=[pl.BlockSpec((tr, K), lambda i: (i, 0)),
                  pl.BlockSpec((K, C), lambda i: (0, 0))],
        out_specs=pl.BlockSpec((tr, C), lambda i: (i, 0)),
        out_shape=jax.ShapeDtypeStruct((R, C), jnp.float32),
        compiler_params=pltpu.CompilerParams(
            dimension_semantics=("parallel",)),
    )(a, b)


# ----------------- bilinear x2 upsample (separable matmuls) -----------------


def bilinear_up2x_to_nhwc(x):
    """x: (N, C, H, W) f32 (NCHW) -> (N, 2H, 2W, C) f32 (NHWC), align_corners=True."""
    N, C, H, W = x.shape
    AwT = jnp.asarray(_bilinear_matrix(W, 2 * W).T)          # (W, 2W), few KiB
    AhT = jnp.asarray(_bilinear_matrix(H, 2 * H).T)          # (H, 2H)
    # W-pass: one big row-tiled matmul over all (n, c, h) rows.
    xw = _rowtile_matmul(x.reshape(N * C * H, W), AwT)        # (N*C*H, 2W)
    # H-pass: transpose so H becomes the contraction dim, then one more matmul.
    t = xw.reshape(N * C, H, 2 * W).transpose(0, 2, 1)        # (N*C, 2W, H)
    xh = _rowtile_matmul(t.reshape(N * C * 2 * W, H), AhT)    # (N*C*2W, 2H)
    return xh.reshape(N, C, 2 * W, 2 * H).transpose(0, 3, 2, 1)   # (N, 2H, 2W, C)


# --------------- conv3x3 (halo, in-kernel) + BN stats: pass 1 ---------------


def _conv3x3_stats_kernel(xp_ref, w_ref, y_ref, stats_ref, *, W2):
    # Grid = (N, H2): one output row (all W2 pixels, all output channels) per step.
    # TODO(synk): for very large H2 process a multi-row band per step to amortize
    # per-grid-step overhead (needs an in-kernel (rows, W2, C) -> (rows*W2, C) reshape).
    j = pl.program_id(1)
    cpad = y_ref.shape[-1]

    acc = jnp.zeros((W2, cpad), jnp.float32)
    for dh in range(3):
        row = xp_ref[0, j + dh]                     # (W2+2, Cin) bf16, halo'd row
        for dw in range(3):
            a = row[dw:dw + W2, :]                  # (W2, Cin) shifted tap
            acc = acc + jnp.dot(a, w_ref[3 * dh + dw],
                                preferred_element_type=jnp.float32)
    y_ref[0, 0] = acc                               # pre-BN conv output (f32)

    # Per-image running per-channel sum / sum-of-squares (exact batch stats).
    @pl.when(j == 0)
    def _init():
        stats_ref[...] = jnp.zeros_like(stats_ref)

    s1 = jnp.sum(acc, axis=0, keepdims=True)
    s2 = jnp.sum(acc * acc, axis=0, keepdims=True)
    stats_ref[0, 0:1, :] = stats_ref[0, 0:1, :] + s1
    stats_ref[0, 1:2, :] = stats_ref[0, 1:2, :] + s2


def _conv3x3_pass1(xp, w9, cout_pad):
    """xp: (N, H2+2, W2+2, Cin) bf16 (zero spatial halo, NHWC).
       w9: (9, Cin, cout_pad) bf16 (tap-major weights).
       Returns y: (N, H2, W2, cout_pad) f32 and stats: (N, 8, cout_pad) f32
       (row 0 = sum over H*W, row 1 = sum of squares)."""
    N, Hp, Wp, Cin = xp.shape
    H2, W2 = Hp - 2, Wp - 2
    kern = functools.partial(_conv3x3_stats_kernel, W2=W2)
    y, stats = pl.pallas_call(
        kern,
        grid=(N, H2),
        in_specs=[
            # whole halo'd image stays VMEM-resident per n (re-used across j)
            pl.BlockSpec((1, Hp, Wp, Cin), lambda n, j: (n, 0, 0, 0)),
            pl.BlockSpec((9, Cin, cout_pad), lambda n, j: (0, 0, 0)),
        ],
        out_specs=(
            pl.BlockSpec((1, 1, W2, cout_pad), lambda n, j: (n, j, 0, 0)),
            pl.BlockSpec((1, 8, cout_pad), lambda n, j: (n, 0, 0)),   # resident acc
        ),
        out_shape=(
            jax.ShapeDtypeStruct((N, H2, W2, cout_pad), jnp.float32),
            jax.ShapeDtypeStruct((N, 8, cout_pad), jnp.float32),
        ),
        compiler_params=pltpu.CompilerParams(
            # batch axis parallel (2 TCs on v7x), row/reduction axis arbitrary.
            dimension_semantics=("parallel", "arbitrary")),
    )(xp, w9)
    return y, stats


# ---------------------- BN normalize + ReLU: pass 2 -------------------------


def _bn_relu_kernel(y_ref, scale_ref, shift_ref, o_ref):
    y = y_ref[...] * scale_ref[...] + shift_ref[...]
    o_ref[...] = jnp.maximum(y, 0.0).astype(o_ref.dtype)


def _bn_relu(y2d, scale, shift, out_dtype):
    R, C = y2d.shape
    tr = _pick_tile(R, 512)
    return pl.pallas_call(
        _bn_relu_kernel,
        grid=(R // tr,),
        in_specs=[pl.BlockSpec((tr, C), lambda i: (i, 0)),
                  pl.BlockSpec((1, C), lambda i: (0, 0)),
                  pl.BlockSpec((1, C), lambda i: (0, 0))],
        out_specs=pl.BlockSpec((tr, C), lambda i: (i, 0)),
        out_shape=jax.ShapeDtypeStruct((R, C), out_dtype),
        compiler_params=pltpu.CompilerParams(
            dimension_semantics=("parallel",)),
    )(y2d, scale, shift)


def _bn_affine_from_stats(stats, gamma_pad, beta_pad, count, eps=1e-5):
    """Finalize training-mode BN (biased variance) into per-channel scale/shift."""
    s1 = jnp.sum(stats[:, 0, :], axis=0)
    s2 = jnp.sum(stats[:, 1, :], axis=0)
    mu = s1 / count
    var = s2 / count - mu * mu
    scale = gamma_pad * jax.lax.rsqrt(var + eps)
    shift = beta_pad - mu * scale
    return scale.reshape(1, -1), shift.reshape(1, -1)


# ------------------------- conv + BN + ReLU block ---------------------------


def _prep_conv_weight(w, cin_pad, cout_pad):
    """w: (cout, cin, 3, 3) f32 -> (9, cin_pad, cout_pad) bf16 (tap-major, zero-padded)."""
    cout, cin = w.shape[0], w.shape[1]
    w9 = jnp.transpose(w, (2, 3, 1, 0)).reshape(9, cin, cout)   # k = kh*3 + kw
    w9 = jnp.pad(w9, ((0, 0), (0, cin_pad - cin), (0, cout_pad - cout)))
    return w9.astype(jnp.bfloat16)


def _conv_bn_relu(x_nhwc, w9, gamma_pad, beta_pad, out_dtype, eps=1e-5):
    """x_nhwc: (N, H2, W2, Cin) bf16; returns (N, H2, W2, cout_pad) post BN+ReLU."""
    N, H2, W2, _ = x_nhwc.shape
    cout_pad = w9.shape[2]
    xp = jnp.pad(x_nhwc, ((0, 0), (1, 1), (1, 1), (0, 0)))      # conv pad=1 halo
    y, stats = _conv3x3_pass1(xp, w9, cout_pad)
    scale, shift = _bn_affine_from_stats(stats, gamma_pad, beta_pad,
                                         count=N * H2 * W2, eps=eps)
    out2d = _bn_relu(y.reshape(N * H2 * W2, cout_pad), scale, shift, out_dtype)
    return out2d.reshape(N, H2, W2, cout_pad)


# --------------------------------- Up module --------------------------------


def init_params(key, in_channels, out_channels):
    """Synthetic parameters; shapes match DoubleConv(in, out, in // 2)."""
    mid = in_channels // 2
    ks = jax.random.split(key, 8)
    s = 0.1
    return dict(
        w1=s * jax.random.normal(ks[0], (mid, in_channels, 3, 3), jnp.float32),
        # conv biases kept for parity with the PyTorch module; they cancel exactly
        # under training-mode BatchNorm so the kernels do not apply them.
        b1=s * jax.random.normal(ks[1], (mid,), jnp.float32),
        g1=1.0 + s * jax.random.normal(ks[2], (mid,), jnp.float32),
        be1=s * jax.random.normal(ks[3], (mid,), jnp.float32),
        w2=s * jax.random.normal(ks[4], (out_channels, mid, 3, 3), jnp.float32),
        b2=s * jax.random.normal(ks[5], (out_channels,), jnp.float32),
        g2=1.0 + s * jax.random.normal(ks[6], (out_channels,), jnp.float32),
        be2=s * jax.random.normal(ks[7], (out_channels,), jnp.float32),
    )


def up_forward(params, x1, x2):
    """Pallas equivalent of Up.forward(x1, x2) with bilinear=True.  NCHW in/out."""
    N, C1, H, W = x1.shape
    _, C2, H2, W2 = x2.shape
    assert H2 == 2 * H and W2 == 2 * W

    mid = params["w1"].shape[0]
    cout = params["w2"].shape[0]
    cin1 = C1 + C2
    mid_pad = _round_up(mid, _LANE)
    cout_pad = _round_up(cout, _LANE)

    # 1) bilinear x2 upsample (separable Pallas matmuls), straight into NHWC.
    x1_up = bilinear_up2x_to_nhwc(x1)                         # (N, 2H, 2W, C1) f32

    # 2) channel concat in NHWC (channels on lanes), bf16 for the MXU.
    # TODO(synk): the concat could be avoided by accumulating two weight-sliced
    # matmuls inside conv1's pass-1 kernel (saves one activation HBM round trip).
    x2_nhwc = jnp.transpose(x2, (0, 2, 3, 1))                 # (N, 2H, 2W, C2)
    x_cat = jnp.concatenate([x2_nhwc, x1_up], axis=-1).astype(jnp.bfloat16)

    # 3) DoubleConv: (conv3x3 -> BN(batch stats) -> ReLU) * 2, NHWC end-to-end.
    w1_9 = _prep_conv_weight(params["w1"], cin1, mid_pad)
    g1 = jnp.pad(params["g1"], (0, mid_pad - mid))
    b1 = jnp.pad(params["be1"], (0, mid_pad - mid))
    y1 = _conv_bn_relu(x_cat, w1_9, g1, b1, out_dtype=jnp.bfloat16)

    w2_9 = _prep_conv_weight(params["w2"], mid_pad, cout_pad)
    g2 = jnp.pad(params["g2"], (0, cout_pad - cout))
    b2 = jnp.pad(params["be2"], (0, cout_pad - cout))
    y2 = _conv_bn_relu(y1, w2_9, g2, b2, out_dtype=jnp.float32)

    # back to NCHW to match the PyTorch module's output layout.
    return jnp.transpose(y2[..., :cout], (0, 3, 1, 2))


if __name__ == "__main__":
    # UNet-style Up block: x1 (deep feature, to be upsampled) and x2 (skip) each
    # carry in_channels // 2 channels so concat([x2, up(x1)]) has `in_channels`.
    # Channel counts chosen so mid / cout are lane-dense (128) with small spatial.
    in_channels, out_channels = 256, 128
    N, H, W = 2, 8, 8

    key = jax.random.PRNGKey(0)
    k1, k2, kp = jax.random.split(key, 3)
    x1 = jax.random.normal(k1, (N, in_channels // 2, H, W), jnp.float32)
    x2 = jax.random.normal(k2, (N, in_channels // 2, 2 * H, 2 * W), jnp.float32)
    params = init_params(kp, in_channels, out_channels)

    fwd = jax.jit(up_forward)
    out = jax.block_until_ready(fwd(params, x1, x2))

    assert out.shape == (N, out_channels, 2 * H, 2 * W)
    assert bool(jnp.all(jnp.isfinite(out)))
    print("KERNEL_OK")
</pallas_src>

<mosaic_0001>
module attributes {stable_mosaic.version = 11 : i64} {
  func.func @_rowtile_matmul_kernel(%arg0: i32, %arg1: memref<512x8xf32, #tpu.memory_space<vmem>>, %arg2: memref<8x16xf32, #tpu.memory_space<vmem>>, %arg3: memref<512x16xf32, #tpu.memory_space<vmem>>) attributes {dimension_semantics = [#tpu.dimension_semantics<parallel>], iteration_bounds = array<i64: 8>, scalar_prefetch = 0 : i64, scratch_operands = 0 : i64, tpu.core_type = #tpu.core_type<tc>, window_params = [{transform_indices = @transform_0, window_bounds = array<i64: 512, 8>}, {pipeline_mode = #tpu.pipeline_mode<synchronous>, transform_indices = @transform_1, window_bounds = array<i64: 8, 16>}, {transform_indices = @transform_2, window_bounds = array<i64: 512, 16>}]} {
    %c0 = arith.constant 0 : index
    %c0_0 = arith.constant 0 : index
    %0 = vector.load %arg1[%c0, %c0_0] : memref<512x8xf32, #tpu.memory_space<vmem>>, vector<512x8xf32>
    %c0_1 = arith.constant 0 : index
    %c0_2 = arith.constant 0 : index
    %1 = vector.load %arg2[%c0_1, %c0_2] : memref<8x16xf32, #tpu.memory_space<vmem>>, vector<8x16xf32>
    %cst = arith.constant dense<0.000000e+00> : vector<512x16xf32>
    %2 = tpu.matmul %0, %1, %cst {dimension_numbers = #tpu.dot_dimension_numbers<[1], [0], [0], [1], [0, 0, 1, 1], [], []>} : vector<512x8xf32>, vector<8x16xf32>, vector<512x16xf32> -> vector<512x16xf32>
    %c0_3 = arith.constant 0 : index
    %c0_4 = arith.constant 0 : index
    %3 = vector.load %arg3[%c0_3, %c0_4] : memref<512x16xf32, #tpu.memory_space<vmem>>, vector<512x16xf32>
    tpu.vector_store %arg3[%c0_3, %c0_4], %2 {strides = array<i32>} : memref<512x16xf32, #tpu.memory_space<vmem>>, vector<512x16xf32>,
    return
  }
  func.func @transform_0(%arg0: i32) -> (i32, i32) {
    %c0_i32 = arith.constant 0 : i32
    %c0_i32_0 = arith.constant 0 : i32
    return %arg0, %c0_i32 : i32, i32
  }
  func.func @transform_1(%arg0: i32) -> (i32, i32) {
    %c0_i32 = arith.constant 0 : i32
    %c0_i32_0 = arith.constant 0 : i32
    %c0_i32_1 = arith.constant 0 : i32
    return %c0_i32, %c0_i32_0 : i32, i32
  }
  func.func @transform_2(%arg0: i32) -> (i32, i32) {
    %c0_i32 = arith.constant 0 : i32
    %c0_i32_0 = arith.constant 0 : i32
    return %arg0, %c0_i32 : i32, i32
  }
}

module attributes {stable_mosaic.version = 11 : i64} {
  func.func @_rowtile_matmul_kernel(%arg0: i32, %arg1: memref<512x8xf32, #tpu.memory_space<vmem>>, %arg2: memref<8x16xf32, #tpu.memory_space<vmem>>, %arg3: memref<512x16xf32, #tpu.memory_space<vmem>>) attributes {dimension_semantics = [#tpu.dimension_semantics<parallel>], iteration_bounds = array<i64: 4>, scalar_prefetch = 0 : i64, scratch_operands = 0 : i64, tpu.core_type = #tpu.core_type<tc>, window_params = [{transform_indices = @transform_0, window_bounds = array<i64: 512, 8>}, {pipeline_mode = #tpu.pipeline_mode<synchronous>, transform_indices = @transform_1, window_bounds = array<i64: 8, 16>}, {transform_indices = @transform_2, window_bounds = array<i64: 512, 16>}]} {
    %c0 = arith.constant 0 : index
    %c0_0 = arith.constant 0 : index
    %0 = vector.load %arg1[%c0, %c0_0] : memref<512x8xf32, #tpu.memory_space<vmem>>, vector<512x8xf32>
    %c0_1 = arith.constant 0 : index
    %c0_2 = arith.constant 0 : index
    %1 = vector.load %arg2[%c0_1, %c0_2] : memref<8x16xf32, #tpu.memory_space<vmem>>, vector<8x16xf32>
    %cst = arith.constant dense<0.000000e+00> : vector<512x16xf32>
    %2 = tpu.matmul %0, %1, %cst {dimension_numbers = #tpu.dot_dimension_numbers<[1], [0], [0], [1], [0, 0, 1, 1], [], []>} : vector<512x8xf32>, vector<8x16xf32>, vector<512x16xf32> -> vector<512x16xf32>
    %c0_3 = arith.constant 0 : index
    %c0_4 = arith.constant 0 : index
    %3 = vector.load %arg3[%c0_3, %c0_4] : memref<512x16xf32, #tpu.memory_space<vmem>>, vector<512x16xf32>
    tpu.vector_store %arg3[%c0_3, %c0_4], %2 {strides = array<i32>} : memref<512x16xf32, #tpu.memory_space<vmem>>, vector<512x16xf32>,
    return
  }
  func.func @transform_0(%arg0: i32) -> (i32, i32) {
    %c0_i32 = arith.constant 0 : i32
    %c0_i32_0 = arith.constant 0 : i32
    return %arg0, %c0_i32 : i32, i32
  }
  func.func @transform_1(%arg0: i32) -> (i32, i32) {
    %c0_i32 = arith.constant 0 : i32
    %c0_i32_0 = arith.constant 0 : i32
    %c0_i32_1 = arith.constant 0 : i32
    return %c0_i32, %c0_i32_0 : i32, i32
  }
  func.func @transform_2(%arg0: i32) -> (i32, i32) {
    %c0_i32 = arith.constant 0 : i32
    %c0_i32_0 = arith.constant 0 : i32
    return %arg0, %c0_i32 : i32, i32
  }
}

module attributes {stable_mosaic.version = 11 : i64} {
  func.func @_conv3x3_stats_kernel(%arg0: i32, %arg1: i32, %arg2: memref<1x18x18x256xbf16, #tpu.memory_space<vmem>>, %arg3: memref<9x256x128xbf16, #tpu.memory_space<vmem>>, %arg4: memref<1x1x16x128xf32, #tpu.memory_space<vmem>>, %arg5: memref<1x8x128xf32, #tpu.memory_space<vmem>>) attributes {dimension_semantics = [#tpu.dimension_semantics<parallel>, #tpu.dimension_semantics<arbitrary>], iteration_bounds = array<i64: 2, 16>, scalar_prefetch = 0 : i64, scratch_operands = 0 : i64, tpu.core_type = #tpu.core_type<tc>, window_params = [{transform_indices = @transform_0, window_bounds = array<i64: 1, 18, 18, 256>}, {pipeline_mode = #tpu.pipeline_mode<synchronous>, transform_indices = @transform_1, window_bounds = array<i64: 9, 256, 128>}, {transform_indices = @transform_2, window_bounds = array<i64: 1, 1, 16, 128>}, {transform_indices = @transform_3, window_bounds = array<i64: 1, 8, 128>}]} {
    %cst = arith.constant 0.000000e+00 : f32
    %0 = vector.broadcast %cst : f32 to vector<16x128xf32>
    %c0_i32 = arith.constant 0 : i32
    %1 = arith.addi %arg1, %c0_i32 : i32
    %c0 = arith.constant 0 : index
    %2 = arith.index_cast %1 : i32 to index
    %c0_0 = arith.constant 0 : index
    %c0_1 = arith.constant 0 : index
    %3 = vector.load %arg2[%c0, %2, %c0_0, %c0_1] : memref<1x18x18x256xbf16, #tpu.memory_space<vmem>>, vector<1x1x18x256xbf16>
    %4 = vector.shape_cast %3 : vector<1x1x18x256xbf16> to vector<18x256xbf16>
    %5 = vector.extract_strided_slice %4 {offsets = [0, 0], sizes = [16, 256], strides = [1, 1]} : vector<18x256xbf16> to vector<16x256xbf16>
    %c0_2 = arith.constant 0 : index
    %c0_3 = arith.constant 0 : index
    %c0_4 = arith.constant 0 : index
    %6 = vector.load %arg3[%c0_2, %c0_3, %c0_4] : memref<9x256x128xbf16, #tpu.memory_space<vmem>>, vector<1x256x128xbf16>
    %7 = vector.shape_cast %6 : vector<1x256x128xbf16> to vector<256x128xbf16>
    %cst_5 = arith.constant dense<0.000000e+00> : vector<16x128xf32>
    %8 = tpu.matmul %5, %7, %cst_5 {dimension_numbers = #tpu.dot_dimension_numbers<[1], [0], [0], [1], [0, 0, 1, 1], [], []>} : vector<16x256xbf16>, vector<256x128xbf16>, vector<16x128xf32> -> vector<16x128xf32>
    %9 = arith.addf %0, %8 : vector<16x128xf32>
    %10 = vector.extract_strided_slice %4 {offsets = [1, 0], sizes = [16, 256], strides = [1, 1]} : vector<18x256xbf16> to vector<16x256xbf16>
    %c1 = arith.constant 1 : index
    %c0_6 = arith.constant 0 : index
    %c0_7 = arith.constant 0 : index
    %11 = vector.load %arg3[%c1, %c0_6, %c0_7] : memref<9x256x128xbf16, #tpu.memory_space<vmem>>, vector<1x256x128xbf16>
    %12 = vector.shape_cast %11 : vector<1x256x128xbf16> to vector<256x128xbf16>
    %cst_8 = arith.constant dense<0.000000e+00> : vector<16x128xf32>
    %13 = tpu.matmul %10, %12, %cst_8 {dimension_numbers = #tpu.dot_dimension_numbers<[1], [0], [0], [1], [0, 0, 1, 1], [], []>} : vector<16x256xbf16>, vector<256x128xbf16>, vector<16x128xf32> -> vector<16x128xf32>
    %14 = arith.addf %9, %13 : vector<16x128xf32>
    %15 = vector.extract_strided_slice %4 {offsets = [2, 0], sizes = [16, 256], strides = [1, 1]} : vector<18x256xbf16> to vector<16x256xbf16>
    %c2 = arith.constant 2 : index
    %c0_9 = arith.constant 0 : index
    %c0_10 = arith.constant 0 : index
    %16 = vector.load %arg3[%c2, %c0_9, %c0_10] : memref<9x256x128xbf16, #tpu.memory_space<vmem>>, vector<1x256x128xbf16>
    %17 = vector.shape_cast %16 : vector<1x256x128xbf16> to vector<256x128xbf16>
    %cst_11 = arith.constant dense<0.000000e+00> : vector<16x128xf32>
    %18 = tpu.matmul %15, %17, %cst_11 {dimension_numbers = #tpu.dot_dimension_numbers<[1], [0], [0], [1], [0, 0, 1, 1], [], []>} : vector<16x256xbf16>, vector<256x128xbf16>, vector<16x128xf32> -> vector<16x128xf32>
    %19 = arith.addf %14, %18 : vector<16x128xf32>
    %c1_i32 = arith.constant 1 : i32
    %20 = arith.addi %arg1, %c1_i32 : i32
    %c0_12 = arith.constant 0 : index
    %21 = arith.index_cast %20 : i32 to index
    %c0_13 = arith.constant 0 : index
    %c0_14 = arith.constant 0 : index
    %22 = vector.load %arg2[%c0_12, %21, %c0_13, %c0_14] : memref<1x18x18x256xbf16, #tpu.memory_space<vmem>>, vector<1x1x18x256xbf16>
    %23 = vector.shape_cast %22 : vector<1x1x18x256xbf16> to vector<18x256xbf16>
    %24 = vector.extract_strided_slice %23 {offsets = [0, 0], sizes = [16, 256], strides = [1, 1]} : vector<18x256xbf16> to vector<16x256xbf16>
    %c3 = arith.constant 3 : index
    %c0_15 = arith.constant 0 : index
    %c0_16 = arith.constant 0 : index
    %25 = vector.load %arg3[%c3, %c0_15, %c0_16] : memref<9x256x128xbf16, #tpu.memory_space<vmem>>, vector<1x256x128xbf16>
    %26 = vector.shape_cast %25 : vector<1x256x128xbf16> to vector<256x128xbf16>
    %cst_17 = arith.constant dense<0.000000e+00> : vector<16x128xf32>
    %27 = tpu.matmul %24, %26, %cst_17 {dimension_numbers = #tpu.dot_dimension_numbers<[1], [0], [0], [1], [0, 0, 1, 1], [], []>} : vector<16x256xbf16>, vector<256x128xbf16>, vector<16x128xf32> -> vector<16x128xf32>
    %28 = arith.addf %19, %27 : vector<16x128xf32>
    %29 = vector.extract_strided_slice %23 {offsets = [1, 0], sizes = [16, 256], strides = [1, 1]} : vector<18x256xbf16> to vector<16x256xbf16>
    %c4 = arith.constant 4 : index
    %c0_18 = arith.constant 0 : index
    %c0_19 = arith.constant 0 : index
    %30 = vector.load %arg3[%c4, %c0_18, %c0_19] : memref<9x256x128xbf16, #tpu.memory_space<vmem>>, vector<1x256x128xbf16>
    %31 = vector.shape_cast %30 : vector<1x256x128xbf16> to vector<256x128xbf16>
    %cst_20 = arith.constant dense<0.000000e+00> : vector<16x128xf32>
    %32 = tpu.matmul %29, %31, %cst_20 {dimension_numbers = #tpu.dot_dimension_numbers<[1], [0], [0], [1], [0, 0, 1, 1], [], []>} : vector<16x256xbf16>, vector<256x128xbf16>, vector<16x128xf32> -> vector<16x128xf32>
    %33 = arith.addf %28, %32 : vector<16x128xf32>
    %34 = vector.extract_strided_slice %23 {offsets = [2, 0], sizes = [16, 256], strides = [1, 1]} : vector<18x256xbf16> to vector<16x256xbf16>
    %c5 = arith.constant 5 : index
    %c0_21 = arith.constant 0 : index
    %c0_22 = arith.constant 0 : index
    %35 = vector.load %arg3[%c5, %c0_21, %c0_22] : memref<9x256x128xbf16, #tpu.memory_space<vmem>>, vector<1x256x128xbf16>
    %36 = vector.shape_cast %35 : vector<1x256x128xbf16> to vector<256x128xbf16>
    %cst_23 = arith.constant dense<0.000000e+00> : vector<16x128xf32>
    %37 = tpu.matmul %34, %36, %cst_23 {dimension_numbers = #tpu.dot_dimension_numbers<[1], [0], [0], [1], [0, 0, 1, 1], [], []>} : vector<16x256xbf16>, vector<256x128xbf16>, vector<16x128xf32> -> vector<16x128xf32>
    %38 = arith.addf %33, %37 : vector<16x128xf32>
    %c2_i32 = arith.constant 2 : i32
    %39 = arith.addi %arg1, %c2_i32 : i32
    %c0_24 = arith.constant 0 : index
    %40 = arith.index_cast %39 : i32 to index
    %c0_25 = arith.constant 0 : index
    %c0_26 = arith.constant 0 : index
    %41 = vector.load %arg2[%c0_24, %40, %c0_25, %c0_26] : memref<1x18x18x256xbf16, #tpu.memory_space<vmem>>, vector<1x1x18x256xbf16>
    %42 = vector.shape_cast %41 : vector<1x1x18x256xbf16> to vector<18x256xbf16>
    %43 = vector.extract_strided_slice %42 {offsets = [0, 0], sizes = [16, 256], strides = [1, 1]} : vector<18x256xbf16> to vector<16x256xbf16>
    %c6 = arith.constant 6 : index
    %c0_27 = arith.constant 0 : index
    %c0_28 = arith.constant 0 : index
    %44 = vector.load %arg3[%c6, %c0_27, %c0_28] : memref<9x256x128xbf16, #tpu.memory_space<vmem>>, vector<1x256x128xbf16>
    %45 = vector.shape_cast %44 : vector<1x256x128xbf16> to vector<256x128xbf16>
    %cst_29 = arith.constant dense<0.000000e+00> : vector<16x128xf32>
    %46 = tpu.matmul %43, %45, %cst_29 {dimension_numbers = #tpu.dot_dimension_numbers<[1], [0], [0], [1], [0, 0, 1, 1], [], []>} : vector<16x256xbf16>, vector<256x128xbf16>, vector<16x128xf32> -> vector<16x128xf32>
    %47 = arith.addf %38, %46 : vector<16x128xf32>
    %48 = vector.extract_strided_slice %42 {offsets = [1, 0], sizes = [16, 256], strides = [1, 1]} : vector<18x256xbf16> to vector<16x256xbf16>
    %c7 = arith.constant 7 : index
    %c0_30 = arith.constant 0 : index
    %c0_31 = arith.constant 0 : index
    %49 = vector.load %arg3[%c7, %c0_30, %c0_31] : memref<9x256x128xbf16, #tpu.memory_space<vmem>>, vector<1x256x128xbf16>
    %50 = vector.shape_cast %49 : vector<1x256x128xbf16> to vector<256x128xbf16>
    %cst_32 = arith.constant dense<0.000000e+00> : vector<16x128xf32>
    %51 = tpu.matmul %48, %50, %cst_32 {dimension_numbers = #tpu.dot_dimension_numbers<[1], [0], [0], [1], [0, 0, 1, 1], [], []>} : vector<16x256xbf16>, vector<256x128xbf16>, vector<16x128xf32> -> vector<16x128xf32>
    %52 = arith.addf %47, %51 : vector<16x128xf32>
    %53 = vector.extract_strided_slice %42 {offsets = [2, 0], sizes = [16, 256], strides = [1, 1]} : vector<18x256xbf16> to vector<16x256xbf16>
    %c8 = arith.constant 8 : index
    %c0_33 = arith.constant 0 : index
    %c0_34 = arith.constant 0 : index
    %54 = vector.load %arg3[%c8, %c0_33, %c0_34] : memref<9x256x128xbf16, #tpu.memory_space<vmem>>, vector<1x256x128xbf16>
    %55 = vector.shape_cast %54 : vector<1x256x128xbf16> to vector<256x128xbf16>
    %cst_35 = arith.constant dense<0.000000e+00> : vector<16x128xf32>
    %56 = tpu.matmul %53, %55, %cst_35 {dimension_numbers = #tpu.dot_dimension_numbers<[1], [0], [0], [1], [0, 0, 1, 1], [], []>} : vector<16x256xbf16>, vector<256x128xbf16>, vector<16x128xf32> -> vector<16x128xf32>
    %57 = arith.addf %52, %56 : vector<16x128xf32>
    %c0_36 = arith.constant 0 : index
    %c0_37 = arith.constant 0 : index
    %c0_38 = arith.constant 0 : index
    %c0_39 = arith.constant 0 : index
    %58 = vector.load %arg4[%c0_36, %c0_37, %c0_38, %c0_39] : memref<1x1x16x128xf32, #tpu.memory_space<vmem>>, vector<1x1x16x128xf32>
    %59 = vector.shape_cast %58 : vector<1x1x16x128xf32> to vector<16x128xf32>
    %60 = vector.shape_cast %57 : vector<16x128xf32> to vector<1x1x16x128xf32>
    tpu.vector_store %arg4[%c0_36, %c0_37, %c0_38, %c0_39], %60 {strides = array<i32>} : memref<1x1x16x128xf32, #tpu.memory_space<vmem>>, vector<1x1x16x128xf32>,
    %c0_i32_40 = arith.constant 0 : i32
    %61 = arith.cmpi eq, %arg1, %c0_i32_40 : i32
    %62 = arith.extui %61 : i1 to i32
    %c0_i32_41 = arith.constant 0 : i32
    %63 = arith.cmpi ne, %62, %c0_i32_41 : i32
    scf.if %63 {
      %cst_56 = arith.constant 0.000000e+00 : f32
      %81 = vector.broadcast %cst_56 : f32 to vector<1x8x128xf32>
      %c0_57 = arith.constant 0 : index
      %c0_58 = arith.constant 0 : index
      %c0_59 = arith.constant 0 : index
      %82 = vector.load %arg5[%c0_57, %c0_58, %c0_59] : memref<1x8x128xf32, #tpu.memory_space<vmem>>, vector<1x8x128xf32>
      tpu.vector_store %arg5[%c0_57, %c0_58, %c0_59], %81 {strides = array<i32>} : memref<1x8x128xf32, #tpu.memory_space<vmem>>, vector<1x8x128xf32>,
    } else {
    }
    %cst_42 = arith.constant dense<0.000000e+00> : vector<128xf32>
    %64 = vector.multi_reduction <add>, %57, %cst_42 [0] : vector<16x128xf32> to vector<128xf32>
    %65 = vector.shape_cast %64 : vector<128xf32> to vector<1x128xf32>
    %66 = arith.mulf %57, %57 : vector<16x128xf32>
    %cst_43 = arith.constant dense<0.000000e+00> : vector<128xf32>
    %67 = vector.multi_reduction <add>, %66, %cst_43 [0] : vector<16x128xf32> to vector<128xf32>
    %68 = vector.shape_cast %67 : vector<128xf32> to vector<1x128xf32>
    %c0_44 = arith.constant 0 : index
    %c0_45 = arith.constant 0 : index
    %c0_46 = arith.constant 0 : index
    %69 = vector.load %arg5[%c0_44, %c0_45, %c0_46] : memref<1x8x128xf32, #tpu.memory_space<vmem>>, vector<1x1x128xf32>
    %70 = vector.shape_cast %69 : vector<1x1x128xf32> to vector<1x128xf32>
    %71 = arith.addf %70, %65 : vector<1x128xf32>
    %c0_47 = arith.constant 0 : index
    %c0_48 = arith.constant 0 : index
    %c0_49 = arith.constant 0 : index
    %72 = vector.load %arg5[%c0_47, %c0_48, %c0_49] : memref<1x8x128xf32, #tpu.memory_space<vmem>>, vector<1x1x128xf32>
    %73 = vector.shape_cast %72 : vector<1x1x128xf32> to vector<1x128xf32>
    %74 = vector.shape_cast %71 : vector<1x128xf32> to vector<1x1x128xf32>
    tpu.vector_store %arg5[%c0_47, %c0_48, %c0_49], %74 {strides = array<i32>} : memref<1x8x128xf32, #tpu.memory_space<vmem>>, vector<1x1x128xf32>,
    %c0_50 = arith.constant 0 : index
    %c1_51 = arith.constant 1 : index
    %c0_52 = arith.constant 0 : index
    %75 = vector.load %arg5[%c0_50, %c1_51, %c0_52] : memref<1x8x128xf32, #tpu.memory_space<vmem>>, vector<1x1x128xf32>
    %76 = vector.shape_cast %75 : vector<1x1x128xf32> to vector<1x128xf32>
    %77 = arith.addf %76, %68 : vector<1x128xf32>
    %c0_53 = arith.constant 0 : index
    %c1_54 = arith.constant 1 : index
    %c0_55 = arith.constant 0 : index
    %78 = vector.load %arg5[%c0_53, %c1_54, %c0_55] : memref<1x8x128xf32, #tpu.memory_space<vmem>>, vector<1x1x128xf32>
    %79 = vector.shape_cast %78 : vector<1x1x128xf32> to vector<1x128xf32>
    %80 = vector.shape_cast %77 : vector<1x128xf32> to vector<1x1x128xf32>
    tpu.vector_store %arg5[%c0_53, %c1_54, %c0_55], %80 {strides = array<i32>} : memref<1x8x128xf32, #tpu.memory_space<vmem>>, vector<1x1x128xf32>,
    return
  }
  func.func @transform_0(%arg0: i32, %arg1: i32) -> (i32, i32, i32, i32) {
    %c0_i32 = arith.constant 0 : i32
    %c0_i32_0 = arith.constant 0 : i32
    %c0_i32_1 = arith.constant 0 : i32
    %c0_i32_2 = arith.constant 0 : i32
    return %arg0, %c0_i32, %c0_i32_0, %c0_i32_1 : i32, i32, i32, i32
  }
  func.func @transform_1(%arg0: i32, %arg1: i32) -> (i32, i32, i32) {
    %c0_i32 = arith.constant 0 : i32
    %c0_i32_0 = arith.constant 0 : i32
    %c0_i32_1 = arith.constant 0 : i32
    %c0_i32_2 = arith.constant 0 : i32
    return %c0_i32, %c0_i32_0, %c0_i32_1 : i32, i32, i32
  }
  func.func @transform_2(%arg0: i32, %arg1: i32) -> (i32, i32, i32, i32) {
    %c0_i32 = arith.constant 0 : i32
    %c0_i32_0 = arith.constant 0 : i32
    %c0_i32_1 = arith.constant 0 : i32
    return %arg0, %arg1, %c0_i32, %c0_i32_0 : i32, i32, i32, i32
  }
  func.func @transform_3(%arg0: i32, %arg1: i32) -> (i32, i32, i32) {
    %c0_i32 = arith.constant 0 : i32
    %c0_i32_0 = arith.constant 0 : i32
    %c0_i32_1 = arith.constant 0 : i32
    return %arg0, %c0_i32, %c0_i32_0 : i32, i32, i32
  }
}

module attributes {stable_mosaic.version = 11 : i64} {
  func.func @_bn_relu_kernel(%arg0: i32, %arg1: memref<512x128xf32, #tpu.memory_space<vmem>>, %arg2: memref<1x128xf32, #tpu.memory_space<vmem>>, %arg3: memref<1x128xf32, #tpu.memory_space<vmem>>, %arg4: memref<512x128xbf16, #tpu.memory_space<vmem>>) attributes {dimension_semantics = [#tpu.dimension_semantics<parallel>], iteration_bounds = array<i64: 1>, scalar_prefetch = 0 : i64, scratch_operands = 0 : i64, tpu.core_type = #tpu.core_type<tc>, window_params = [{transform_indices = @transform_0, window_bounds = array<i64: 512, 128>}, {pipeline_mode = #tpu.pipeline_mode<synchronous>, transform_indices = @transform_1, window_bounds = array<i64: 1, 128>}, {pipeline_mode = #tpu.pipeline_mode<synchronous>, transform_indices = @transform_2, window_bounds = array<i64: 1, 128>}, {transform_indices = @transform_3, window_bounds = array<i64: 512, 128>}]} {
    %c0 = arith.constant 0 : index
    %c0_0 = arith.constant 0 : index
    %0 = vector.load %arg1[%c0, %c0_0] : memref<512x128xf32, #tpu.memory_space<vmem>>, vector<512x128xf32>
    %c0_1 = arith.constant 0 : index
    %c0_2 = arith.constant 0 : index
    %1 = vector.load %arg2[%c0_1, %c0_2] : memref<1x128xf32, #tpu.memory_space<vmem>>, vector<1x128xf32>
    %2 = vector.broadcast %1 : vector<1x128xf32> to vector<512x128xf32>
    %3 = arith.mulf %0, %2 : vector<512x128xf32>
    %c0_3 = arith.constant 0 : index
    %c0_4 = arith.constant 0 : index
    %4 = vector.load %arg3[%c0_3, %c0_4] : memref<1x128xf32, #tpu.memory_space<vmem>>, vector<1x128xf32>
    %5 = vector.broadcast %4 : vector<1x128xf32> to vector<512x128xf32>
    %6 = arith.addf %3, %5 : vector<512x128xf32>
    %cst = arith.constant 0.000000e+00 : f32
    %7 = vector.broadcast %cst : f32 to vector<512x128xf32>
    %8 = arith.maximumf %6, %7 : vector<512x128xf32>
    %9 = arith.truncf %8 : vector<512x128xf32> to vector<512x128xbf16>
    %c0_5 = arith.constant 0 : index
    %c0_6 = arith.constant 0 : index
    %10 = vector.load %arg4[%c0_5, %c0_6] : memref<512x128xbf16, #tpu.memory_space<vmem>>, vector<512x128xbf16>
    tpu.vector_store %arg4[%c0_5, %c0_6], %9 {strides = array<i32>} : memref<512x128xbf16, #tpu.memory_space<vmem>>, vector<512x128xbf16>,
    return
  }
  func.func @transform_0(%arg0: i32) -> (i32, i32) {
    %c0_i32 = arith.constant 0 : i32
    %c0_i32_0 = arith.constant 0 : i32
    return %arg0, %c0_i32 : i32, i32
  }
  func.func @transform_1(%arg0: i32) -> (i32, i32) {
    %c0_i32 = arith.constant 0 : i32
    %c0_i32_0 = arith.constant 0 : i32
    %c0_i32_1 = arith.constant 0 : i32
    return %c0_i32, %c0_i32_0 : i32, i32
  }
  func.func @transform_2(%arg0: i32) -> (i32, i32) {
    %c0_i32 = arith.constant 0 : i32
    %c0_i32_0 = arith.constant 0 : i32
    %c0_i32_1 = arith.constant 0 : i32
    return %c0_i32, %c0_i32_0 : i32, i32
  }
  func.func @transform_3(%arg0: i32) -> (i32, i32) {
    %c0_i32 = arith.constant 0 : i32
    %c0_i32_0 = arith.constant 0 : i32
    return %arg0, %c0_i32 : i32, i32
  }
}

module attributes {stable_mosaic.version = 11 : i64} {
  func.func @_conv3x3_stats_kernel(%arg0: i32, %arg1: i32, %arg2: memref<1x18x18x128xbf16, #tpu.memory_space<vmem>>, %arg3: memref<9x128x128xbf16, #tpu.memory_space<vmem>>, %arg4: memref<1x1x16x128xf32, #tpu.memory_space<vmem>>, %arg5: memref<1x8x128xf32, #tpu.memory_space<vmem>>) attributes {dimension_semantics = [#tpu.dimension_semantics<parallel>, #tpu.dimension_semantics<arbitrary>], iteration_bounds = array<i64: 2, 16>, scalar_prefetch = 0 : i64, scratch_operands = 0 : i64, tpu.core_type = #tpu.core_type<tc>, window_params = [{transform_indices = @transform_0, window_bounds = array<i64: 1, 18, 18, 128>}, {pipeline_mode = #tpu.pipeline_mode<synchronous>, transform_indices = @transform_1, window_bounds = array<i64: 9, 128, 128>}, {transform_indices = @transform_2, window_bounds = array<i64: 1, 1, 16, 128>}, {transform_indices = @transform_3, window_bounds = array<i64: 1, 8, 128>}]} {
    %cst = arith.constant 0.000000e+00 : f32
    %0 = vector.broadcast %cst : f32 to vector<16x128xf32>
    %c0_i32 = arith.constant 0 : i32
    %1 = arith.addi %arg1, %c0_i32 : i32
    %c0 = arith.constant 0 : index
    %2 = arith.index_cast %1 : i32 to index
    %c0_0 = arith.constant 0 : index
    %c0_1 = arith.constant 0 : index
    %3 = vector.load %arg2[%c0, %2, %c0_0, %c0_1] : memref<1x18x18x128xbf16, #tpu.memory_space<vmem>>, vector<1x1x18x128xbf16>
    %4 = vector.shape_cast %3 : vector<1x1x18x128xbf16> to vector<18x128xbf16>
    %5 = vector.extract_strided_slice %4 {offsets = [0, 0], sizes = [16, 128], strides = [1, 1]} : vector<18x128xbf16> to vector<16x128xbf16>
    %c0_2 = arith.constant 0 : index
    %c0_3 = arith.constant 0 : index
    %c0_4 = arith.constant 0 : index
    %6 = vector.load %arg3[%c0_2, %c0_3, %c0_4] : memref<9x128x128xbf16, #tpu.memory_space<vmem>>, vector<1x128x128xbf16>
    %7 = vector.shape_cast %6 : vector<1x128x128xbf16> to vector<128x128xbf16>
    %cst_5 = arith.constant dense<0.000000e+00> : vector<16x128xf32>
    %8 = tpu.matmul %5, %7, %cst_5 {dimension_numbers = #tpu.dot_dimension_numbers<[1], [0], [0], [1], [0, 0, 1, 1], [], []>} : vector<16x128xbf16>, vector<128x128xbf16>, vector<16x128xf32> -> vector<16x128xf32>
    %9 = arith.addf %0, %8 : vector<16x128xf32>
    %10 = vector.extract_strided_slice %4 {offsets = [1, 0], sizes = [16, 128], strides = [1, 1]} : vector<18x128xbf16> to vector<16x128xbf16>
    %c1 = arith.constant 1 : index
    %c0_6 = arith.constant 0 : index
    %c0_7 = arith.constant 0 : index
    %11 = vector.load %arg3[%c1, %c0_6, %c0_7] : memref<9x128x128xbf16, #tpu.memory_space<vmem>>, vector<1x128x128xbf16>
    %12 = vector.shape_cast %11 : vector<1x128x128xbf16> to vector<128x128xbf16>
    %cst_8 = arith.constant dense<0.000000e+00> : vector<16x128xf32>
    %13 = tpu.matmul %10, %12, %cst_8 {dimension_numbers = #tpu.dot_dimension_numbers<[1], [0], [0], [1], [0, 0, 1, 1], [], []>} : vector<16x128xbf16>, vector<128x128xbf16>, vector<16x128xf32> -> vector<16x128xf32>
    %14 = arith.addf %9, %13 : vector<16x128xf32>
    %15 = vector.extract_strided_slice %4 {offsets = [2, 0], sizes = [16, 128], strides = [1, 1]} : vector<18x128xbf16> to vector<16x128xbf16>
    %c2 = arith.constant 2 : index
    %c0_9 = arith.constant 0 : index
    %c0_10 = arith.constant 0 : index
    %16 = vector.load %arg3[%c2, %c0_9, %c0_10] : memref<9x128x128xbf16, #tpu.memory_space<vmem>>, vector<1x128x128xbf16>
    %17 = vector.shape_cast %16 : vector<1x128x128xbf16> to vector<128x128xbf16>
    %cst_11 = arith.constant dense<0.000000e+00> : vector<16x128xf32>
    %18 = tpu.matmul %15, %17, %cst_11 {dimension_numbers = #tpu.dot_dimension_numbers<[1], [0], [0], [1], [0, 0, 1, 1], [], []>} : vector<16x128xbf16>, vector<128x128xbf16>, vector<16x128xf32> -> vector<16x128xf32>
    %19 = arith.addf %14, %18 : vector<16x128xf32>
    %c1_i32 = arith.constant 1 : i32
    %20 = arith.addi %arg1, %c1_i32 : i32
    %c0_12 = arith.constant 0 : index
    %21 = arith.index_cast %20 : i32 to index
    %c0_13 = arith.constant 0 : index
    %c0_14 = arith.constant 0 : index
    %22 = vector.load %arg2[%c0_12, %21, %c0_13, %c0_14] : memref<1x18x18x128xbf16, #tpu.memory_space<vmem>>, vector<1x1x18x128xbf16>
    %23 = vector.shape_cast %22 : vector<1x1x18x128xbf16> to vector<18x128xbf16>
    %24 = vector.extract_strided_slice %23 {offsets = [0, 0], sizes = [16, 128], strides = [1, 1]} : vector<18x128xbf16> to vector<16x128xbf16>
    %c3 = arith.constant 3 : index
    %c0_15 = arith.constant 0 : index
    %c0_16 = arith.constant 0 : index
    %25 = vector.load %arg3[%c3, %c0_15, %c0_16] : memref<9x128x128xbf16, #tpu.memory_space<vmem>>, vector<1x128x128xbf16>
    %26 = vector.shape_cast %25 : vector<1x128x128xbf16> to vector<128x128xbf16>
    %cst_17 = arith.constant dense<0.000000e+00> : vector<16x128xf32>
    %27 = tpu.matmul %24, %26, %cst_17 {dimension_numbers = #tpu.dot_dimension_numbers<[1], [0], [0], [1], [0, 0, 1, 1], [], []>} : vector<16x128xbf16>, vector<128x128xbf16>, vector<16x128xf32> -> vector<16x128xf32>
    %28 = arith.addf %19, %27 : vector<16x128xf32>
    %29 = vector.extract_strided_slice %23 {offsets = [1, 0], sizes = [16, 128], strides = [1, 1]} : vector<18x128xbf16> to vector<16x128xbf16>
    %c4 = arith.constant 4 : index
    %c0_18 = arith.constant 0 : index
    %c0_19 = arith.constant 0 : index
    %30 = vector.load %arg3[%c4, %c0_18, %c0_19] : memref<9x128x128xbf16, #tpu.memory_space<vmem>>, vector<1x128x128xbf16>
    %31 = vector.shape_cast %30 : vector<1x128x128xbf16> to vector<128x128xbf16>
    %cst_20 = arith.constant dense<0.000000e+00> : vector<16x128xf32>
    %32 = tpu.matmul %29, %31, %cst_20 {dimension_numbers = #tpu.dot_dimension_numbers<[1], [0], [0], [1], [0, 0, 1, 1], [], []>} : vector<16x128xbf16>, vector<128x128xbf16>, vector<16x128xf32> -> vector<16x128xf32>
    %33 = arith.addf %28, %32 : vector<16x128xf32>
    %34 = vector.extract_strided_slice %23 {offsets = [2, 0], sizes = [16, 128], strides = [1, 1]} : vector<18x128xbf16> to vector<16x128xbf16>
    %c5 = arith.constant 5 : index
    %c0_21 = arith.constant 0 : index
    %c0_22 = arith.constant 0 : index
    %35 = vector.load %arg3[%c5, %c0_21, %c0_22] : memref<9x128x128xbf16, #tpu.memory_space<vmem>>, vector<1x128x128xbf16>
    %36 = vector.shape_cast %35 : vector<1x128x128xbf16> to vector<128x128xbf16>
    %cst_23 = arith.constant dense<0.000000e+00> : vector<16x128xf32>
    %37 = tpu.matmul %34, %36, %cst_23 {dimension_numbers = #tpu.dot_dimension_numbers<[1], [0], [0], [1], [0, 0, 1, 1], [], []>} : vector<16x128xbf16>, vector<128x128xbf16>, vector<16x128xf32> -> vector<16x128xf32>
    %38 = arith.addf %33, %37 : vector<16x128xf32>
    %c2_i32 = arith.constant 2 : i32
    %39 = arith.addi %arg1, %c2_i32 : i32
    %c0_24 = arith.constant 0 : index
    %40 = arith.index_cast %39 : i32 to index
    %c0_25 = arith.constant 0 : index
    %c0_26 = arith.constant 0 : index
    %41 = vector.load %arg2[%c0_24, %40, %c0_25, %c0_26] : memref<1x18x18x128xbf16, #tpu.memory_space<vmem>>, vector<1x1x18x128xbf16>
    %42 = vector.shape_cast %41 : vector<1x1x18x128xbf16> to vector<18x128xbf16>
    %43 = vector.extract_strided_slice %42 {offsets = [0, 0], sizes = [16, 128], strides = [1, 1]} : vector<18x128xbf16> to vector<16x128xbf16>
    %c6 = arith.constant 6 : index
    %c0_27 = arith.constant 0 : index
    %c0_28 = arith.constant 0 : index
    %44 = vector.load %arg3[%c6, %c0_27, %c0_28] : memref<9x128x128xbf16, #tpu.memory_space<vmem>>, vector<1x128x128xbf16>
    %45 = vector.shape_cast %44 : vector<1x128x128xbf16> to vector<128x128xbf16>
    %cst_29 = arith.constant dense<0.000000e+00> : vector<16x128xf32>
    %46 = tpu.matmul %43, %45, %cst_29 {dimension_numbers = #tpu.dot_dimension_numbers<[1], [0], [0], [1], [0, 0, 1, 1], [], []>} : vector<16x128xbf16>, vector<128x128xbf16>, vector<16x128xf32> -> vector<16x128xf32>
    %47 = arith.addf %38, %46 : vector<16x128xf32>
    %48 = vector.extract_strided_slice %42 {offsets = [1, 0], sizes = [16, 128], strides = [1, 1]} : vector<18x128xbf16> to vector<16x128xbf16>
    %c7 = arith.constant 7 : index
    %c0_30 = arith.constant 0 : index
    %c0_31 = arith.constant 0 : index
    %49 = vector.load %arg3[%c7, %c0_30, %c0_31] : memref<9x128x128xbf16, #tpu.memory_space<vmem>>, vector<1x128x128xbf16>
    %50 = vector.shape_cast %49 : vector<1x128x128xbf16> to vector<128x128xbf16>
    %cst_32 = arith.constant dense<0.000000e+00> : vector<16x128xf32>
    %51 = tpu.matmul %48, %50, %cst_32 {dimension_numbers = #tpu.dot_dimension_numbers<[1], [0], [0], [1], [0, 0, 1, 1], [], []>} : vector<16x128xbf16>, vector<128x128xbf16>, vector<16x128xf32> -> vector<16x128xf32>
    %52 = arith.addf %47, %51 : vector<16x128xf32>
    %53 = vector.extract_strided_slice %42 {offsets = [2, 0], sizes = [16, 128], strides = [1, 1]} : vector<18x128xbf16> to vector<16x128xbf16>
    %c8 = arith.constant 8 : index
    %c0_33 = arith.constant 0 : index
    %c0_34 = arith.constant 0 : index
    %54 = vector.load %arg3[%c8, %c0_33, %c0_34] : memref<9x128x128xbf16, #tpu.memory_space<vmem>>, vector<1x128x128xbf16>
    %55 = vector.shape_cast %54 : vector<1x128x128xbf16> to vector<128x128xbf16>
    %cst_35 = arith.constant dense<0.000000e+00> : vector<16x128xf32>
    %56 = tpu.matmul %53, %55, %cst_35 {dimension_numbers = #tpu.dot_dimension_numbers<[1], [0], [0], [1], [0, 0, 1, 1], [], []>} : vector<16x128xbf16>, vector<128x128xbf16>, vector<16x128xf32> -> vector<16x128xf32>
    %57 = arith.addf %52, %56 : vector<16x128xf32>
    %c0_36 = arith.constant 0 : index
    %c0_37 = arith.constant 0 : index
    %c0_38 = arith.constant 0 : index
    %c0_39 = arith.constant 0 : index
    %58 = vector.load %arg4[%c0_36, %c0_37, %c0_38, %c0_39] : memref<1x1x16x128xf32, #tpu.memory_space<vmem>>, vector<1x1x16x128xf32>
    %59 = vector.shape_cast %58 : vector<1x1x16x128xf32> to vector<16x128xf32>
    %60 = vector.shape_cast %57 : vector<16x128xf32> to vector<1x1x16x128xf32>
    tpu.vector_store %arg4[%c0_36, %c0_37, %c0_38, %c0_39], %60 {strides = array<i32>} : memref<1x1x16x128xf32, #tpu.memory_space<vmem>>, vector<1x1x16x128xf32>,
    %c0_i32_40 = arith.constant 0 : i32
    %61 = arith.cmpi eq, %arg1, %c0_i32_40 : i32
    %62 = arith.extui %61 : i1 to i32
    %c0_i32_41 = arith.constant 0 : i32
    %63 = arith.cmpi ne, %62, %c0_i32_41 : i32
    scf.if %63 {
      %cst_56 = arith.constant 0.000000e+00 : f32
      %81 = vector.broadcast %cst_56 : f32 to vector<1x8x128xf32>
      %c0_57 = arith.constant 0 : index
      %c0_58 = arith.constant 0 : index
      %c0_59 = arith.constant 0 : index
      %82 = vector.load %arg5[%c0_57, %c0_58, %c0_59] : memref<1x8x128xf32, #tpu.memory_space<vmem>>, vector<1x8x128xf32>
      tpu.vector_store %arg5[%c0_57, %c0_58, %c0_59], %81 {strides = array<i32>} : memref<1x8x128xf32, #tpu.memory_space<vmem>>, vector<1x8x128xf32>,
    } else {
    }
    %cst_42 = arith.constant dense<0.000000e+00> : vector<128xf32>
    %64 = vector.multi_reduction <add>, %57, %cst_42 [0] : vector<16x128xf32> to vector<128xf32>
    %65 = vector.shape_cast %64 : vector<128xf32> to vector<1x128xf32>
    %66 = arith.mulf %57, %57 : vector<16x128xf32>
    %cst_43 = arith.constant dense<0.000000e+00> : vector<128xf32>
    %67 = vector.multi_reduction <add>, %66, %cst_43 [0] : vector<16x128xf32> to vector<128xf32>
    %68 = vector.shape_cast %67 : vector<128xf32> to vector<1x128xf32>
    %c0_44 = arith.constant 0 : index
    %c0_45 = arith.constant 0 : index
    %c0_46 = arith.constant 0 : index
    %69 = vector.load %arg5[%c0_44, %c0_45, %c0_46] : memref<1x8x128xf32, #tpu.memory_space<vmem>>, vector<1x1x128xf32>
    %70 = vector.shape_cast %69 : vector<1x1x128xf32> to vector<1x128xf32>
    %71 = arith.addf %70, %65 : vector<1x128xf32>
    %c0_47 = arith.constant 0 : index
    %c0_48 = arith.constant 0 : index
    %c0_49 = arith.constant 0 : index
    %72 = vector.load %arg5[%c0_47, %c0_48, %c0_49] : memref<1x8x128xf32, #tpu.memory_space<vmem>>, vector<1x1x128xf32>
    %73 = vector.shape_cast %72 : vector<1x1x128xf32> to vector<1x128xf32>
    %74 = vector.shape_cast %71 : vector<1x128xf32> to vector<1x1x128xf32>
    tpu.vector_store %arg5[%c0_47, %c0_48, %c0_49], %74 {strides = array<i32>} : memref<1x8x128xf32, #tpu.memory_space<vmem>>, vector<1x1x128xf32>,
    %c0_50 = arith.constant 0 : index
    %c1_51 = arith.constant 1 : index
    %c0_52 = arith.constant 0 : index
    %75 = vector.load %arg5[%c0_50, %c1_51, %c0_52] : memref<1x8x128xf32, #tpu.memory_space<vmem>>, vector<1x1x128xf32>
    %76 = vector.shape_cast %75 : vector<1x1x128xf32> to vector<1x128xf32>
    %77 = arith.addf %76, %68 : vector<1x128xf32>
    %c0_53 = arith.constant 0 : index
    %c1_54 = arith.constant 1 : index
    %c0_55 = arith.constant 0 : index
    %78 = vector.load %arg5[%c0_53, %c1_54, %c0_55] : memref<1x8x128xf32, #tpu.memory_space<vmem>>, vector<1x1x128xf32>
    %79 = vector.shape_cast %78 : vector<1x1x128xf32> to vector<1x128xf32>
    %80 = vector.shape_cast %77 : vector<1x128xf32> to vector<1x1x128xf32>
    tpu.vector_store %arg5[%c0_53, %c1_54, %c0_55], %80 {strides = array<i32>} : memref<1x8x128xf32, #tpu.memory_space<vmem>>, vector<1x1x128xf32>,
    return
  }
  func.func @transform_0(%arg0: i32, %arg1: i32) -> (i32, i32, i32, i32) {
    %c0_i32 = arith.constant 0 : i32
    %c0_i32_0 = arith.constant 0 : i32
    %c0_i32_1 = arith.constant 0 : i32
    %c0_i32_2 = arith.constant 0 : i32
    return %arg0, %c0_i32, %c0_i32_0, %c0_i32_1 : i32, i32, i32, i32
  }
  func.func @transform_1(%arg0: i32, %arg1: i32) -> (i32, i32, i32) {
    %c0_i32 = arith.constant 0 : i32
    %c0_i32_0 = arith.constant 0 : i32
    %c0_i32_1 = arith.constant 0 : i32
    %c0_i32_2 = arith.constant 0 : i32
    return %c0_i32, %c0_i32_0, %c0_i32_1 : i32, i32, i32
  }
  func.func @transform_2(%arg0: i32, %arg1: i32) -> (i32, i32, i32, i32) {
    %c0_i32 = arith.constant 0 : i32
    %c0_i32_0 = arith.constant 0 : i32
    %c0_i32_1 = arith.constant 0 : i32
    return %arg0, %arg1, %c0_i32, %c0_i32_0 : i32, i32, i32, i32
  }
  func.func @transform_3(%arg0: i32, %arg1: i32) -> (i32, i32, i32) {
    %c0_i32 = arith.constant 0 : i32
    %c0_i32_0 = arith.constant 0 : i32
    %c0_i32_1 = arith.constant 0 : i32
    return %arg0, %c0_i32, %c0_i32_0 : i32, i32, i32
  }
}

module attributes {stable_mosaic.version = 11 : i64} {
  func.func @_bn_relu_kernel(%arg0: i32, %arg1: memref<512x128xf32, #tpu.memory_space<vmem>>, %arg2: memref<1x128xf32, #tpu.memory_space<vmem>>, %arg3: memref<1x128xf32, #tpu.memory_space<vmem>>, %arg4: memref<512x128xf32, #tpu.memory_space<vmem>>) attributes {dimension_semantics = [#tpu.dimension_semantics<parallel>], iteration_bounds = array<i64: 1>, scalar_prefetch = 0 : i64, scratch_operands = 0 : i64, tpu.core_type = #tpu.core_type<tc>, window_params = [{transform_indices = @transform_0, window_bounds = array<i64: 512, 128>}, {pipeline_mode = #tpu.pipeline_mode<synchronous>, transform_indices = @transform_1, window_bounds = array<i64: 1, 128>}, {pipeline_mode = #tpu.pipeline_mode<synchronous>, transform_indices = @transform_2, window_bounds = array<i64: 1, 128>}, {transform_indices = @transform_3, window_bounds = array<i64: 512, 128>}]} {
    %c0 = arith.constant 0 : index
    %c0_0 = arith.constant 0 : index
    %0 = vector.load %arg1[%c0, %c0_0] : memref<512x128xf32, #tpu.memory_space<vmem>>, vector<512x128xf32>
    %c0_1 = arith.constant 0 : index
    %c0_2 = arith.constant 0 : index
    %1 = vector.load %arg2[%c0_1, %c0_2] : memref<1x128xf32, #tpu.memory_space<vmem>>, vector<1x128xf32>
    %2 = vector.broadcast %1 : vector<1x128xf32> to vector<512x128xf32>
    %3 = arith.mulf %0, %2 : vector<512x128xf32>
    %c0_3 = arith.constant 0 : index
    %c0_4 = arith.constant 0 : index
    %4 = vector.load %arg3[%c0_3, %c0_4] : memref<1x128xf32, #tpu.memory_space<vmem>>, vector<1x128xf32>
    %5 = vector.broadcast %4 : vector<1x128xf32> to vector<512x128xf32>
    %6 = arith.addf %3, %5 : vector<512x128xf32>
    %cst = arith.constant 0.000000e+00 : f32
    %7 = vector.broadcast %cst : f32 to vector<512x128xf32>
    %8 = arith.maximumf %6, %7 : vector<512x128xf32>
    %c0_5 = arith.constant 0 : index
    %c0_6 = arith.constant 0 : index
    %9 = vector.load %arg4[%c0_5, %c0_6] : memref<512x128xf32, #tpu.memory_space<vmem>>, vector<512x128xf32>
    tpu.vector_store %arg4[%c0_5, %c0_6], %8 {strides = array<i32>} : memref<512x128xf32, #tpu.memory_space<vmem>>, vector<512x128xf32>,
    return
  }
  func.func @transform_0(%arg0: i32) -> (i32, i32) {
    %c0_i32 = arith.constant 0 : i32
    %c0_i32_0 = arith.constant 0 : i32
    return %arg0, %c0_i32 : i32, i32
  }
  func.func @transform_1(%arg0: i32) -> (i32, i32) {
    %c0_i32 = arith.constant 0 : i32
    %c0_i32_0 = arith.constant 0 : i32
    %c0_i32_1 = arith.constant 0 : i32
    return %c0_i32, %c0_i32_0 : i32, i32
  }
  func.func @transform_2(%arg0: i32) -> (i32, i32) {
    %c0_i32 = arith.constant 0 : i32
    %c0_i32_0 = arith.constant 0 : i32
    %c0_i32_1 = arith.constant 0 : i32
    return %c0_i32, %c0_i32_0 : i32, i32
  }
  func.func @transform_3(%arg0: i32) -> (i32, i32) {
    %c0_i32 = arith.constant 0 : i32
    %c0_i32_0 = arith.constant 0 : i32
    return %arg0, %c0_i32 : i32, i32
  }
}

</mosaic_0001>

<bundles_post_ra>
// kernel: up_forward.7
= control target key start
LH: loop header
LB: loop body
LE: loop exit
PB: predicated region body
PF: predicated region fallthrough
CT: control target
= control target key end

     0   :  { %s1182_s9 = smov 0   ;;  %s1469_s0 = inlined_call_operand.vmem [shape: f32[4096,8], index: 0, kind: input, shape index: {}]   ;;  %s1470_s1 = inlined_call_operand.vmem [shape: f32[8,16], index: 1, kind: input, shape index: {}]   ;;  %s1471_s2 = inlined_call_operand.vmem [shape: f32[4096,16], index: 2, kind: output, shape index: {}]  }
   0x1 LB: > { %s911_s10 = sadd.s32 4294967295, %s1165_s9   ;;  %p915_p0 = scmp.ge.s32.totalorder %s1165_s9, 1  ;;  %s1165_s9 = sphi %s1182_s9, %s12_s9  }
   0x2   : > { %p113_p1 = scmp.lt.s32.totalorder %s1165_s9, 9 }
   0x4   : > { %p114_p2 = pnand %p915_p0, %p113_p1 }
   0x5   : > { %v211_v0 = vld [vmem:[%s1470_s1] sm:$0xff] (!%p114_p2)  ;;  %s916_s13 = sshll.u32 (!%p114_p2), %s911_s10, 6  ;;  %vm212_vm0 = vcmask (!%p114_p2), 64512   ;;  %vm790_vm1 = vcmask (!%p114_p2), 130048  }
   0x6   : > { %117 = sbr.rel (%p114_p2) target bundleno = 293 (0x125), region = 28  ;;  %1051 = vmatprep.subr.mxu0 (!%p114_p2), %v211_v0  ;;  %1149 = vmatprep.subr.mxu1 (!%p114_p2), %v211_v0  ;;  %p136_p3 = scmp.lt.s32.totalorder (!%p114_p2), %s916_s13, 511 }
   0x7   : > { %1052 = vmatpush3.msra.mxu0 (!%p114_p2), %v211_v0  ;;  %1150 = vmatpush3.msra.mxu1 (!%p114_p2), %v211_v0 }
   0xd   : > { %s1473_s13 = smov (!%p136_p3, %s916_s13), 511 }
   0xe   : > { %s917_s14 = sshll.u32 %s1473_s13, 3 }
   0xf   : > { %s1201_s17 = scalar_lea.vmem %s1469_s0, %s917_s14  ;;  %s1336_s20 = scalar_lea.vmem %s1471_s2, %s917_s14 }
  0x10   : > { %v147_v1 = vld [vmem:[%s1201_s17] sm:$0xff]  ;;  %v148_v3 = vld [vmem:[%s1201_s17 + $0x8] sm:$0xff]  ;;  %v149_v5 = vld [vmem:[%s1201_s17 + $0x10] sm:$0xff] }
  0x11   : > { %v179_v2 = vld [vmem:[%s1201_s17 + $0x100] sm:$0xff]  ;;  %1053 = vmatprep.mubr.msk.f32.mxu0 %vm212_vm0, %v147_v1  ;;  %v180_v4 = vld [vmem:[%s1201_s17 + $0x108] sm:$0xff]  ;;  %v181_v6 = vld [vmem:[%s1201_s17 + $0x110] sm:$0xff] }
  0x12   : > { %1101 = vmatprep.mubr.msk.f32.mxu1 %vm212_vm0, %v179_v2  ;;  %1054 = vmatmul.mubr.msk.f32.vlgmr.msra.gmra.mrb[0].mxu0 %vm212_vm0, %v148_v3  ;;  %v150_v7 = vld [vmem:[%s1201_s17 + $0x18] sm:$0xff]  ;;  %v151_v9 = vld [vmem:[%s1201_s17 + $0x20] sm:$0xff]  ;;  %v152_v11 = vld [vmem:[%s1201_s17 + $0x28] sm:$0xff] }
  0x13   : > { %1102 = vmatmul.mubr.msk.f32.vlgmr.msra.gmra.mrb[0].mxu1 %vm212_vm0, %v180_v4  ;;  %1056 = vmatprep.mubr.msk.f32.mxu0 %vm212_vm0, %v149_v5  ;;  %v182_v8 = vld [vmem:[%s1201_s17 + $0x118] sm:$0xff]  ;;  %v183_v10 = vld [vmem:[%s1201_s17 + $0x120] sm:$0xff]  ;;  %v184_v12 = vld [vmem:[%s1201_s17 + $0x128] sm:$0xff] }
  0x14   : > { %1104 = vmatprep.mubr.msk.f32.mxu1 %vm212_vm0, %v181_v6  ;;  %v153_v13 = vld [vmem:[%s1201_s17 + $0x30] sm:$0xff]  ;;  %v154_v15 = vld [vmem:[%s1201_s17 + $0x38] sm:$0xff]  ;;  %v155_v17 = vld [vmem:[%s1201_s17 + $0x40] sm:$0xff] }
  0x15   : > { %v185_v14 = vld [vmem:[%s1201_s17 + $0x130] sm:$0xff]  ;;  %v186_v16 = vld [vmem:[%s1201_s17 + $0x138] sm:$0xff]  ;;  %v187_v18 = vld [vmem:[%s1201_s17 + $0x140] sm:$0xff] }
  0x16   : > { %1057 = vmatmul.mubr.msk.f32.gmra.mrb[2].mxu0 %vm212_vm0, %v150_v7  ;;  %v156_v19 = vld [vmem:[%s1201_s17 + $0x48] sm:$0xff]  ;;  %v157_v21 = vld [vmem:[%s1201_s17 + $0x50] sm:$0xff]  ;;  %v158_v23 = vld [vmem:[%s1201_s17 + $0x58] sm:$0xff] }
  0x17   : > { %1105 = vmatmul.mubr.msk.f32.gmra.mrb[2].mxu1 %vm212_vm0, %v182_v8  ;;  %1059 = vmatprep.mubr.msk.f32.mxu0 %vm212_vm0, %v151_v9  ;;  %v188_v20 = vld [vmem:[%s1201_s17 + $0x148] sm:$0xff]  ;;  %v189_v22 = vld [vmem:[%s1201_s17 + $0x150] sm:$0xff]  ;;  %v190_v24 = vld [vmem:[%s1201_s17 + $0x158] sm:$0xff] }
  0x18   : > { %1107 = vmatprep.mubr.msk.f32.mxu1 %vm212_vm0, %v183_v10  ;;  %v159_v25 = vld [vmem:[%s1201_s17 + $0x60] sm:$0xff]  ;;  %v160_v27 = vld [vmem:[%s1201_s17 + $0x68] sm:$0xff]  ;;  %v161_v29 = vld [vmem:[%s1201_s17 + $0x70] sm:$0xff] }
  0x19   : > { %v191_v26 = vld [vmem:[%s1201_s17 + $0x160] sm:$0xff]  ;;  %v192_v28 = vld [vmem:[%s1201_s17 + $0x168] sm:$0xff]  ;;  %v193_v30 = vld [vmem:[%s1201_s17 + $0x170] sm:$0xff] }
  0x1a   : > { %1060 = vmatmul.mubr.msk.f32.gmra.mrb[4].mxu0 %vm212_vm0, %v152_v11  ;;  %v162_v31 = vld [vmem:[%s1201_s17 + $0x78] sm:$0xff]  ;;  %v163_v33 = vld [vmem:[%s1201_s17 + $0x80] sm:$0xff]  ;;  %v164_v35 = vld [vmem:[%s1201_s17 + $0x88] sm:$0xff] }
  0x1b   : > { %1108 = vmatmul.mubr.msk.f32.gmra.mrb[4].mxu1 %vm212_vm0, %v184_v12  ;;  %1062 = vmatprep.mubr.msk.f32.mxu0 %vm212_vm0, %v153_v13  ;;  %v194_v32 = vld [vmem:[%s1201_s17 + $0x178] sm:$0xff]  ;;  %v195_v34 = vld [vmem:[%s1201_s17 + $0x180] sm:$0xff]  ;;  %v196_v36 = vld [vmem:[%s1201_s17 + $0x188] sm:$0xff] }
  0x1c   : > { %1110 = vmatprep.mubr.msk.f32.mxu1 %vm212_vm0, %v185_v14  ;;  %v165_v37 = vld [vmem:[%s1201_s17 + $0x90] sm:$0xff]  ;;  %v166_v39 = vld [vmem:[%s1201_s17 + $0x98] sm:$0xff]  ;;  %v167_v41 = vld [vmem:[%s1201_s17 + $0xa0] sm:$0xff] }
  0x1d   : > { %v197_v38 = vld [vmem:[%s1201_s17 + $0x190] sm:$0xff]  ;;  %v198_v40 = vld [vmem:[%s1201_s17 + $0x198] sm:$0xff]  ;;  %v199_v42 = vld [vmem:[%s1201_s17 + $0x1a0] sm:$0xff] }
  0x1e   : > { %1063 = vmatmul.mubr.msk.f32.gmra.mrb[6].mxu0 %vm212_vm0, %v154_v15  ;;  %v168_v43 = vld [vmem:[%s1201_s17 + $0xa8] sm:$0xff]  ;;  %v169_v45 = vld [vmem:[%s1201_s17 + $0xb0] sm:$0xff]  ;;  %v170_v47 = vld [vmem:[%s1201_s17 + $0xb8] sm:$0xff] }
  0x1f   : > { %1111 = vmatmul.mubr.msk.f32.gmra.mrb[6].mxu1 %vm212_vm0, %v186_v16  ;;  %1065 = vmatprep.mubr.msk.f32.mxu0 %vm212_vm0, %v155_v17  ;;  %v200_v44 = vld [vmem:[%s1201_s17 + $0x1a8] sm:$0xff]  ;;  %v201_v46 = vld [vmem:[%s1201_s17 + $0x1b0] sm:$0xff]  ;;  %v202_v48 = vld [vmem:[%s1201_s17 + $0x1b8] sm:$0xff] }
  0x20   : > { %1113 = vmatprep.mubr.msk.f32.mxu1 %vm212_vm0, %v187_v18  ;;  %v171_v49 = vld [vmem:[%s1201_s17 + $0xc0] sm:$0xff]  ;;  %v172_v51 = vld [vmem:[%s1201_s17 + $0xc8] sm:$0xff]  ;;  %v173_v53 = vld [vmem:[%s1201_s17 + $0xd0] sm:$0xff] }
  0x21   : > { %v203_v50 = vld [vmem:[%s1201_s17 + $0x1c0] sm:$0xff]  ;;  %v204_v52 = vld [vmem:[%s1201_s17 + $0x1c8] sm:$0xff]  ;;  %v205_v54 = vld [vmem:[%s1201_s17 + $0x1d0] sm:$0xff] }
  0x22   : > { %1066 = vmatmul.mubr.msk.f32.gmra.mrb[8].mxu0 %vm212_vm0, %v156_v19  ;;  %v174_v55 = vld [vmem:[%s1201_s17 + $0xd8] sm:$0xff]  ;;  %v175_v57 = vld [vmem:[%s1201_s17 + $0xe0] sm:$0xff]  ;;  %v176_v59 = vld [vmem:[%s1201_s17 + $0xe8] sm:$0xff] }
  0x23   : > { %1114 = vmatmul.mubr.msk.f32.gmra.mrb[8].mxu1 %vm212_vm0, %v188_v20  ;;  %1068 = vmatprep.mubr.msk.f32.mxu0 %vm212_vm0, %v157_v21  ;;  %v206_v56 = vld [vmem:[%s1201_s17 + $0x1d8] sm:$0xff]  ;;  %v207_v58 = vld [vmem:[%s1201_s17 + $0x1e0] sm:$0xff]  ;;  %v208_v60 = vld [vmem:[%s1201_s17 + $0x1e8] sm:$0xff] }
  0x24   : > { %1116 = vmatprep.mubr.msk.f32.mxu1 %vm212_vm0, %v189_v22  ;;  %v177_v61 = vld [vmem:[%s1201_s17 + $0xf0] sm:$0xff]  ;;  %v178_v63 = vld [vmem:[%s1201_s17 + $0xf8] sm:$0xff] }
  0x25   : > { %v209_v62 = vld [vmem:[%s1201_s17 + $0x1f0] sm:$0xff]  ;;  %v210_v0 = vld [vmem:[%s1201_s17 + $0x1f8] sm:$0xff] }
  0x26   : > { %1069 = vmatmul.mubr.msk.f32.gmra.mrb[10].mxu0 %vm212_vm0, %v158_v23 }
  0x27   : > { %1117 = vmatmul.mubr.msk.f32.gmra.mrb[10].mxu1 %vm212_vm0, %v190_v24  ;;  %1071 = vmatprep.mubr.msk.f32.mxu0 %vm212_vm0, %v159_v25 }
  0x28   : > { %1119 = vmatprep.mubr.msk.f32.mxu1 %vm212_vm0, %v191_v26 }
  0x2a   : > { %1072 = vmatmul.mubr.msk.f32.gmra.mrb[12].mxu0 %vm212_vm0, %v160_v27 }
  0x2b   : > { %1120 = vmatmul.mubr.msk.f32.gmra.mrb[12].mxu1 %vm212_vm0, %v192_v28  ;;  %1074 = vmatprep.mubr.msk.f32.mxu0 %vm212_vm0, %v161_v29 }
  0x2c   : > { %1122 = vmatprep.mubr.msk.f32.mxu1 %vm212_vm0, %v193_v30 }
  0x2e   : > { %1075 = vmatmul.mubr.msk.f32.gmra.mrb[14].mxu0 %vm212_vm0, %v162_v31 }
  0x2f   : > { %1123 = vmatmul.mubr.msk.f32.gmra.mrb[14].mxu1 %vm212_vm0, %v194_v32  ;;  %1077 = vmatprep.mubr.msk.f32.mxu0 %vm212_vm0, %v163_v33 }
  0x30   : > { %1125 = vmatprep.mubr.msk.f32.mxu1 %vm212_vm0, %v195_v34 }
  0x32   : > { %1078 = vmatmul.mubr.msk.f32.gmra.mrb[16].mxu0 %vm212_vm0, %v164_v35 }
  0x33   : > { %1126 = vmatmul.mubr.msk.f32.gmra.mrb[16].mxu1 %vm212_vm0, %v196_v36  ;;  %1080 = vmatprep.mubr.msk.f32.mxu0 %vm212_vm0, %v165_v37 }
  0x34   : > { %1128 = vmatprep.mubr.msk.f32.mxu1 %vm212_vm0, %v197_v38 }
  0x36   : > { %1081 = vmatmul.mubr.msk.f32.gmra.mrb[18].mxu0 %vm212_vm0, %v166_v39 }
  0x37   : > { %1129 = vmatmul.mubr.msk.f32.gmra.mrb[18].mxu1 %vm212_vm0, %v198_v40  ;;  %1083 = vmatprep.mubr.msk.f32.mxu0 %vm212_vm0, %v167_v41 }
  0x38   : > { %1131 = vmatprep.mubr.msk.f32.mxu1 %vm212_vm0, %v199_v42 }
  0x3a   : > { %1084 = vmatmul.mubr.msk.f32.gmra.mrb[20].mxu0 %vm212_vm0, %v168_v43 }
  0x3b   : > { %1132 = vmatmul.mubr.msk.f32.gmra.mrb[20].mxu1 %vm212_vm0, %v200_v44  ;;  %1086 = vmatprep.mubr.msk.f32.mxu0 %vm212_vm0, %v169_v45 }
  0x3c   : > { %1134 = vmatprep.mubr.msk.f32.mxu1 %vm212_vm0, %v201_v46 }
  0x3e   : > { %1087 = vmatmul.mubr.msk.f32.gmra.mrb[22].mxu0 %vm212_vm0, %v170_v47 }
  0x3f   : > { %1135 = vmatmul.mubr.msk.f32.gmra.mrb[22].mxu1 %vm212_vm0, %v202_v48  ;;  %1089 = vmatprep.mubr.msk.f32.mxu0 %vm212_vm0, %v171_v49 }
  0x40   : > { %1137 = vmatprep.mubr.msk.f32.mxu1 %vm212_vm0, %v203_v50 }
  0x42   : > { %1090 = vmatmul.mubr.msk.f32.gmra.mrb[24].mxu0 %vm212_vm0, %v172_v51 }
  0x43   : > { %1138 = vmatmul.mubr.msk.f32.gmra.mrb[24].mxu1 %vm212_vm0, %v204_v52  ;;  %1092 = vmatprep.mubr.msk.f32.mxu0 %vm212_vm0, %v173_v53 }
  0x44   : > { %1140 = vmatprep.mubr.msk.f32.mxu1 %vm212_vm0, %v205_v54 }
  0x46   : > { %1093 = vmatmul.mubr.msk.f32.gmra.mrb[26].mxu0 %vm212_vm0, %v174_v55 }
  0x47   : > { %1141 = vmatmul.mubr.msk.f32.gmra.mrb[26].mxu1 %vm212_vm0, %v206_v56  ;;  %1095 = vmatprep.mubr.msk.f32.mxu0 %vm212_vm0, %v175_v57 }
  0x48   : > { %1143 = vmatprep.mubr.msk.f32.mxu1 %vm212_vm0, %v207_v58 }
  0x4a   : > { %1096 = vmatmul.mubr.msk.f32.gmra.mrb[28].mxu0 %vm212_vm0, %v176_v59 }
  0x4b   : > { %1144 = vmatmul.mubr.msk.f32.gmra.mrb[28].mxu1 %vm212_vm0, %v208_v60  ;;  %1098 = vmatprep.mubr.msk.f32.mxu0 %vm212_vm0, %v177_v61 }
  0x4c   : > { %1146 = vmatprep.mubr.msk.f32.mxu1 %vm212_vm0, %v209_v62 }
  0x4e   : > { %1099 = vmatmul.mubr.msk.f32.gmra.mrb[30].mxu0 %vm212_vm0, %v178_v63 }
  0x4f   : > { %1147 = vmatmul.mubr.msk.f32.gmra.mrb[30].mxu1 %vm212_vm0, %v210_v0 }
  0xe5   : > { %v1055_v1 = vpop.f32.mrb[0].mxu0 }
  0xe6   : > { %v1103_v2 = vpop.f32.mrb[0].mxu1  ;;  %792 = vst.msk [vmem:[%s1336_s20 + $0x8] sm:$0xff] %vm790_vm1, %v1055_v1  ;;  %v471_v3 = vpop.f32.mrb[1].mxu0 }
  0xe7   : > { %824 = vst.msk [vmem:[%s1336_s20 + $0x108] sm:$0xff] %vm790_vm1, %v1103_v2  ;;  %v631_v4 = vpop.f32.mrb[1].mxu1  ;;  %791 = vst.msk [vmem:[%s1336_s20] sm:$0xff] %vm790_vm1, %v471_v3 }
  0xe8   : > { %823 = vst.msk [vmem:[%s1336_s20 + $0x100] sm:$0xff] %vm790_vm1, %v631_v4 }
  0xe9   : > { %v1058_v5 = vpop.f32.mrb[2].mxu0 }
  0xea   : > { %v1106_v6 = vpop.f32.mrb[2].mxu1  ;;  %794 = vst.msk [vmem:[%s1336_s20 + $0x18] sm:$0xff] %vm790_vm1, %v1058_v5  ;;  %v481_v7 = vpop.f32.mrb[3].mxu0 }
  0xeb   : > { %826 = vst.msk [vmem:[%s1336_s20 + $0x118] sm:$0xff] %vm790_vm1, %v1106_v6  ;;  %v641_v8 = vpop.f32.mrb[3].mxu1  ;;  %793 = vst.msk [vmem:[%s1336_s20 + $0x10] sm:$0xff] %vm790_vm1, %v481_v7 }
  0xec   : > { %825 = vst.msk [vmem:[%s1336_s20 + $0x110] sm:$0xff] %vm790_vm1, %v641_v8 }
  0xed   : > { %v1061_v9 = vpop.f32.mrb[4].mxu0 }
  0xee   : > { %v1109_v10 = vpop.f32.mrb[4].mxu1  ;;  %796 = vst.msk [vmem:[%s1336_s20 + $0x28] sm:$0xff] %vm790_vm1, %v1061_v9  ;;  %v491_v11 = vpop.f32.mrb[5].mxu0 }
  0xef   : > { %828 = vst.msk [vmem:[%s1336_s20 + $0x128] sm:$0xff] %vm790_vm1, %v1109_v10  ;;  %v651_v12 = vpop.f32.mrb[5].mxu1  ;;  %795 = vst.msk [vmem:[%s1336_s20 + $0x20] sm:$0xff] %vm790_vm1, %v491_v11 }
  0xf0   : > { %827 = vst.msk [vmem:[%s1336_s20 + $0x120] sm:$0xff] %vm790_vm1, %v651_v12 }
  0xf1   : > { %v1064_v13 = vpop.f32.mrb[6].mxu0 }
  0xf2   : > { %v1112_v14 = vpop.f32.mrb[6].mxu1  ;;  %798 = vst.msk [vmem:[%s1336_s20 + $0x38] sm:$0xff] %vm790_vm1, %v1064_v13  ;;  %v501_v15 = vpop.f32.mrb[7].mxu0 }
  0xf3   : > { %830 = vst.msk [vmem:[%s1336_s20 + $0x138] sm:$0xff] %vm790_vm1, %v1112_v14  ;;  %v661_v16 = vpop.f32.mrb[7].mxu1  ;;  %797 = vst.msk [vmem:[%s1336_s20 + $0x30] sm:$0xff] %vm790_vm1, %v501_v15 }
  0xf4   : > { %829 = vst.msk [vmem:[%s1336_s20 + $0x130] sm:$0xff] %vm790_vm1, %v661_v16 }
  0xf5   : > { %v1067_v17 = vpop.f32.mrb[8].mxu0 }
  0xf6   : > { %v1115_v18 = vpop.f32.mrb[8].mxu1  ;;  %800 = vst.msk [vmem:[%s1336_s20 + $0x48] sm:$0xff] %vm790_vm1, %v1067_v17  ;;  %v511_v19 = vpop.f32.mrb[9].mxu0 }
  0xf7   : > { %832 = vst.msk [vmem:[%s1336_s20 + $0x148] sm:$0xff] %vm790_vm1, %v1115_v18  ;;  %v671_v20 = vpop.f32.mrb[9].mxu1  ;;  %799 = vst.msk [vmem:[%s1336_s20 + $0x40] sm:$0xff] %vm790_vm1, %v511_v19 }
  0xf8   : > { %831 = vst.msk [vmem:[%s1336_s20 + $0x140] sm:$0xff] %vm790_vm1, %v671_v20 }
  0xf9   : > { %v1070_v21 = vpop.f32.mrb[10].mxu0 }
  0xfa   : > { %v1118_v22 = vpop.f32.mrb[10].mxu1  ;;  %802 = vst.msk [vmem:[%s1336_s20 + $0x58] sm:$0xff] %vm790_vm1, %v1070_v21  ;;  %v521_v23 = vpop.f32.mrb[11].mxu0 }
  0xfb   : > { %834 = vst.msk [vmem:[%s1336_s20 + $0x158] sm:$0xff] %vm790_vm1, %v1118_v22  ;;  %v681_v24 = vpop.f32.mrb[11].mxu1  ;;  %801 = vst.msk [vmem:[%s1336_s20 + $0x50] sm:$0xff] %vm790_vm1, %v521_v23 }
  0xfc   : > { %833 = vst.msk [vmem:[%s1336_s20 + $0x150] sm:$0xff] %vm790_vm1, %v681_v24 }
  0xfd   : > { %v1073_v25 = vpop.f32.mrb[12].mxu0 }
  0xfe   : > { %v1121_v26 = vpop.f32.mrb[12].mxu1  ;;  %804 = vst.msk [vmem:[%s1336_s20 + $0x68] sm:$0xff] %vm790_vm1, %v1073_v25  ;;  %v531_v27 = vpop.f32.mrb[13].mxu0 }
  0xff   : > { %836 = vst.msk [vmem:[%s1336_s20 + $0x168] sm:$0xff] %vm790_vm1, %v1121_v26  ;;  %v691_v28 = vpop.f32.mrb[13].mxu1  ;;  %803 = vst.msk [vmem:[%s1336_s20 + $0x60] sm:$0xff] %vm790_vm1, %v531_v27 }
 0x100   : > { %835 = vst.msk [vmem:[%s1336_s20 + $0x160] sm:$0xff] %vm790_vm1, %v691_v28 }
 0x101   : > { %v1076_v29 = vpop.f32.mrb[14].mxu0 }
 0x102   : > { %v1124_v30 = vpop.f32.mrb[14].mxu1  ;;  %806 = vst.msk [vmem:[%s1336_s20 + $0x78] sm:$0xff] %vm790_vm1, %v1076_v29  ;;  %v541_v31 = vpop.f32.mrb[15].mxu0 }
 0x103   : > { %838 = vst.msk [vmem:[%s1336_s20 + $0x178] sm:$0xff] %vm790_vm1, %v1124_v30  ;;  %v701_v32 = vpop.f32.mrb[15].mxu1  ;;  %805 = vst.msk [vmem:[%s1336_s20 + $0x70] sm:$0xff] %vm790_vm1, %v541_v31 }
 0x104   : > { %837 = vst.msk [vmem:[%s1336_s20 + $0x170] sm:$0xff] %vm790_vm1, %v701_v32 }
 0x105   : > { %v1079_v33 = vpop.f32.mrb[16].mxu0 }
 0x106   : > { %v1127_v34 = vpop.f32.mrb[16].mxu1  ;;  %808 = vst.msk [vmem:[%s1336_s20 + $0x88] sm:$0xff] %vm790_vm1, %v1079_v33  ;;  %v551_v35 = vpop.f32.mrb[17].mxu0 }
 0x107   : > { %840 = vst.msk [vmem:[%s1336_s20 + $0x188] sm:$0xff] %vm790_vm1, %v1127_v34  ;;  %v711_v36 = vpop.f32.mrb[17].mxu1  ;;  %807 = vst.msk [vmem:[%s1336_s20 + $0x80] sm:$0xff] %vm790_vm1, %v551_v35 }
 0x108   : > { %839 = vst.msk [vmem:[%s1336_s20 + $0x180] sm:$0xff] %vm790_vm1, %v711_v36 }
 0x109   : > { %v1082_v37 = vpop.f32.mrb[18].mxu0 }
 0x10a   : > { %v1130_v38 = vpop.f32.mrb[18].mxu1  ;;  %810 = vst.msk [vmem:[%s1336_s20 + $0x98] sm:$0xff] %vm790_vm1, %v1082_v37  ;;  %v561_v39 = vpop.f32.mrb[19].mxu0 }
 0x10b   : > { %842 = vst.msk [vmem:[%s1336_s20 + $0x198] sm:$0xff] %vm790_vm1, %v1130_v38  ;;  %v721_v40 = vpop.f32.mrb[19].mxu1  ;;  %809 = vst.msk [vmem:[%s1336_s20 + $0x90] sm:$0xff] %vm790_vm1, %v561_v39 }
 0x10c   : > { %841 = vst.msk [vmem:[%s1336_s20 + $0x190] sm:$0xff] %vm790_vm1, %v721_v40 }
 0x10d   : > { %v1085_v41 = vpop.f32.mrb[20].mxu0 }
 0x10e   : > { %v1133_v42 = vpop.f32.mrb[20].mxu1  ;;  %812 = vst.msk [vmem:[%s1336_s20 + $0xa8] sm:$0xff] %vm790_vm1, %v1085_v41  ;;  %v571_v43 = vpop.f32.mrb[21].mxu0 }
 0x10f   : > { %844 = vst.msk [vmem:[%s1336_s20 + $0x1a8] sm:$0xff] %vm790_vm1, %v1133_v42  ;;  %v731_v44 = vpop.f32.mrb[21].mxu1  ;;  %811 = vst.msk [vmem:[%s1336_s20 + $0xa0] sm:$0xff] %vm790_vm1, %v571_v43 }
 0x110   : > { %843 = vst.msk [vmem:[%s1336_s20 + $0x1a0] sm:$0xff] %vm790_vm1, %v731_v44 }
 0x111   : > { %v1088_v45 = vpop.f32.mrb[22].mxu0 }
 0x112   : > { %v1136_v46 = vpop.f32.mrb[22].mxu1  ;;  %814 = vst.msk [vmem:[%s1336_s20 + $0xb8] sm:$0xff] %vm790_vm1, %v1088_v45  ;;  %v581_v47 = vpop.f32.mrb[23].mxu0 }
 0x113   : > { %846 = vst.msk [vmem:[%s1336_s20 + $0x1b8] sm:$0xff] %vm790_vm1, %v1136_v46  ;;  %v741_v48 = vpop.f32.mrb[23].mxu1  ;;  %813 = vst.msk [vmem:[%s1336_s20 + $0xb0] sm:$0xff] %vm790_vm1, %v581_v47 }
 0x114   : > { %845 = vst.msk [vmem:[%s1336_s20 + $0x1b0] sm:$0xff] %vm790_vm1, %v741_v48 }
 0x115   : > { %v1091_v49 = vpop.f32.mrb[24].mxu0 }
 0x116   : > { %v1139_v50 = vpop.f32.mrb[24].mxu1  ;;  %816 = vst.msk [vmem:[%s1336_s20 + $0xc8] sm:$0xff] %vm790_vm1, %v1091_v49  ;;  %v591_v51 = vpop.f32.mrb[25].mxu0 }
 0x117   : > { %848 = vst.msk [vmem:[%s1336_s20 + $0x1c8] sm:$0xff] %vm790_vm1, %v1139_v50  ;;  %v751_v52 = vpop.f32.mrb[25].mxu1  ;;  %815 = vst.msk [vmem:[%s1336_s20 + $0xc0] sm:$0xff] %vm790_vm1, %v591_v51 }
 0x118   : > { %847 = vst.msk [vmem:[%s1336_s20 + $0x1c0] sm:$0xff] %vm790_vm1, %v751_v52 }
 0x119   : > { %v1094_v53 = vpop.f32.mrb[26].mxu0 }
 0x11a   : > { %v1142_v54 = vpop.f32.mrb[26].mxu1  ;;  %818 = vst.msk [vmem:[%s1336_s20 + $0xd8] sm:$0xff] %vm790_vm1, %v1094_v53  ;;  %v601_v55 = vpop.f32.mrb[27].mxu0 }
 0x11b   : > { %850 = vst.msk [vmem:[%s1336_s20 + $0x1d8] sm:$0xff] %vm790_vm1, %v1142_v54  ;;  %v761_v56 = vpop.f32.mrb[27].mxu1  ;;  %817 = vst.msk [vmem:[%s1336_s20 + $0xd0] sm:$0xff] %vm790_vm1, %v601_v55 }
 0x11c   : > { %849 = vst.msk [vmem:[%s1336_s20 + $0x1d0] sm:$0xff] %vm790_vm1, %v761_v56 }
 0x11d   : > { %v1097_v57 = vpop.f32.mrb[28].mxu0 }
 0x11e   : > { %v1145_v58 = vpop.f32.mrb[28].mxu1  ;;  %820 = vst.msk [vmem:[%s1336_s20 + $0xe8] sm:$0xff] %vm790_vm1, %v1097_v57  ;;  %v611_v59 = vpop.f32.mrb[29].mxu0 }
 0x11f   : > { %852 = vst.msk [vmem:[%s1336_s20 + $0x1e8] sm:$0xff] %vm790_vm1, %v1145_v58  ;;  %v771_v60 = vpop.f32.mrb[29].mxu1  ;;  %819 = vst.msk [vmem:[%s1336_s20 + $0xe0] sm:$0xff] %vm790_vm1, %v611_v59 }
 0x120   : > { %851 = vst.msk [vmem:[%s1336_s20 + $0x1e0] sm:$0xff] %vm790_vm1, %v771_v60 }
 0x121   : > { %v1100_v61 = vpop.f32.mrb[30].mxu0 }
 0x122   : > { %v1148_v62 = vpop.f32.mrb[30].mxu1  ;;  %822 = vst.msk [vmem:[%s1336_s20 + $0xf8] sm:$0xff] %vm790_vm1, %v1100_v61  ;;  %v621_v63 = vpop.f32.mrb[31].mxu0 }
 0x123   : > { %854 = vst.msk [vmem:[%s1336_s20 + $0x1f8] sm:$0xff] %vm790_vm1, %v1148_v62  ;;  %v781_v0 = vpop.f32.mrb[31].mxu1  ;;  %821 = vst.msk [vmem:[%s1336_s20 + $0xf0] sm:$0xff] %vm790_vm1, %v621_v63 }
 0x124   : > { %853 = vst.msk [vmem:[%s1336_s20 + $0x1f0] sm:$0xff] %vm790_vm1, %v781_v0 }
 0x125 PF: > { %s12_s9 = sadd.s32 1, %s1165_s9  }
 0x126   : > { %p9_p4 = scmp.ge.s32.totalorder %s12_s9, 10  }
 0x128   :  { %11 = sbr.rel (!%p9_p4) target bundleno = 1 (0x1), region = 58 }

// kernel: up_forward.6
= control target key start
LH: loop header
LB: loop body
LE: loop exit
PB: predicated region body
PF: predicated region fallthrough
CT: control target
= control target key end

     0   :  { %7 = vsyncpa [#allocation3], 0  ;;  %s1253_s9 = smov 0   ;;  %s1579_s0 = inlined_call_operand.vmem [shape: f32[2048,8], index: 0, kind: input, shape index: {}]   ;;  %s1580_s1 = inlined_call_operand.hbm [shape: f32[8,16], index: 1, kind: input, shape index: {}]   ;;  %s1581_s2 = inlined_call_operand.vmem [shape: f32[2048,16], index: 2, kind: output, shape index: {}]  }
   0x1 LB: > { %s936_s10 = sadd.s32 4294967295, %s1235_s9   ;;  %p938_p0 = scmp.ge.s32.totalorder %s1235_s9, 1  ;;  %s1235_s9 = sphi %s1253_s9, %s13_s9  }
   0x2   : > { %p91_p1 = scmp.lt.s32.totalorder %s1235_s9, 5  ;;  %p1267_p3 = scmp.eq.s32.totalorder %s936_s10, 0 }
   0x3   : > { %s1237_s13 = smov [#allocation2]   ;;  %s1197_s18 = scalar_lea.hbm %s1580_s1, 128 }
   0x4   : > { %p1261_p2 = pnand %p938_p0, %p91_p1  ;;  %s104_s14 = sshll.u32 %s1237_s13, 4  ;;  %s105_s14 = int_to_ptr.vmem [resolvable:$true] %s104_s14 }
   0x5   : > { %s1586_s12 = scalar_select %p1267_p3, 1, 0 }
   0x6   : > { %s1585_s11 = scalar_select %p1261_p2, 1, 0 }
   0x7   : > { %p1182_p4 = pneg %p1261_p2  ;;  %p1198_p6 = scmp.ne.s32.totalorder %s1580_s1, %s1197_s18 }
   0x8   : > { %p1204_p10 = scmp.lt.u32.totalorder %s1197_s18, %s1580_s1 }
   0x9   : > { %p1275_p5 = pnand %p1267_p3, %p1182_p4 }
   0xb   : > { %p1199_p7 = pneg %p1275_p5 }
   0xd   : > { %p1200_p8 = pnand %p1199_p7, %p1198_p6 }
   0xf   : > { %p1201_p9 = pneg %p1200_p8 }
  0x11   : > { %p1206_p11 = pnand %p1204_p10, %p1201_p9 }
  0x13   : > { %1209 = shalt.err (!%p1206_p11)
}
  0x14   : > { %s1210_s23 = scalar_lea.vmem %s105_s14, 128  ;;  %p1218_p1 = scmp.lt.s32.totalorder %s105_s14, %s105_s14 }
  0x15   : > { %p1211_p12 = scmp.ne.s32.totalorder %s105_s14, %s1210_s23  ;;  %p1219_p4 = scmp.lt.s32.totalorder %s1210_s23, %s1210_s23 }
  0x17   : > { %p1213_p13 = pnand %p1211_p12, %p1199_p7  ;;  %p1220_p3 = por %p1219_p4, %p1218_p1 }
  0x19   : > { %p1214_p0 = pneg %p1213_p13 }
  0x1b   : > { %p1221_p2 = pnand %p1220_p3, %p1214_p0 }
  0x1d   : > { %1224 = shalt.err (!%p1221_p2)
}
  0x1e   : > { %1185 = dma.hbm_to_vmem [thread:$0]  (!%p1275_p5), %s1580_s1, 128, %s105_s14, [#allocation3]  }
  0x1f   : > { %p1588_p6 = scmp.ne.s32.totalorder %s1585_s11, 0 }
  0x20   : > { %p1589_p8 = scmp.ne.s32.totalorder (!%p1588_p6), %s1586_s12, 0 }
  0x21   : > { %126 = sbr.rel (%p1588_p6) target bundleno = 324 (0x144), region = 28 }
  0x28   : > { %1230 = dma.done.wait (%p1589_p8), [#allocation3], 128  }
  0x29   : > { %1232 = vsyncadd (%p1589_p8), [#allocation3], 4294967168  ;;  %s943_s26 = sshll.u32 %s936_s10, 6  ;;  %v224_v0 = vld [vmem:[#allocation2] sm:$0xff]  ;;  %vm225_vm0 = vcmask 64512   ;;  %vm803_vm1 = vcmask 130048  }
  0x2a   : > { %p149_p3 = scmp.lt.s32.totalorder %s943_s26, 255  ;;  %1078 = vmatprep.subr.mxu0 %v224_v0  ;;  %1176 = vmatprep.subr.mxu1 %v224_v0 }
  0x2b   : > { %1079 = vmatpush3.msra.mxu0 %v224_v0  ;;  %1177 = vmatpush3.msra.mxu1 %v224_v0 }
  0x2c   : > { %s1591_s26 = smov (!%p149_p3, %s943_s26), 255 }
  0x2d   : > { %s944_s27 = sshll.u32 %s1591_s26, 3 }
  0x2e   : > { %s1311_s30 = scalar_lea.vmem %s1579_s0, %s944_s27  ;;  %s1446_s5 = scalar_lea.vmem %s1581_s2, %s944_s27 }
  0x2f   : > { %v160_v1 = vld [vmem:[%s1311_s30] sm:$0xff]  ;;  %v161_v3 = vld [vmem:[%s1311_s30 + $0x8] sm:$0xff]  ;;  %v162_v5 = vld [vmem:[%s1311_s30 + $0x10] sm:$0xff] }
  0x30   : > { %v192_v2 = vld [vmem:[%s1311_s30 + $0x100] sm:$0xff]  ;;  %v193_v4 = vld [vmem:[%s1311_s30 + $0x108] sm:$0xff]  ;;  %v194_v6 = vld [vmem:[%s1311_s30 + $0x110] sm:$0xff]  ;;  %1080 = vmatprep.mubr.msk.f32.mxu0 %vm225_vm0, %v160_v1 }
  0x31   : > { %1128 = vmatprep.mubr.msk.f32.mxu1 %vm225_vm0, %v192_v2  ;;  %1081 = vmatmul.mubr.msk.f32.vlgmr.msra.gmra.mrb[0].mxu0 %vm225_vm0, %v161_v3  ;;  %v163_v7 = vld [vmem:[%s1311_s30 + $0x18] sm:$0xff]  ;;  %v164_v9 = vld [vmem:[%s1311_s30 + $0x20] sm:$0xff]  ;;  %v165_v11 = vld [vmem:[%s1311_s30 + $0x28] sm:$0xff] }
  0x32   : > { %1129 = vmatmul.mubr.msk.f32.vlgmr.msra.gmra.mrb[0].mxu1 %vm225_vm0, %v193_v4  ;;  %1083 = vmatprep.mubr.msk.f32.mxu0 %vm225_vm0, %v162_v5  ;;  %v195_v8 = vld [vmem:[%s1311_s30 + $0x118] sm:$0xff]  ;;  %v196_v10 = vld [vmem:[%s1311_s30 + $0x120] sm:$0xff]  ;;  %v197_v12 = vld [vmem:[%s1311_s30 + $0x128] sm:$0xff] }
  0x33   : > { %1131 = vmatprep.mubr.msk.f32.mxu1 %vm225_vm0, %v194_v6  ;;  %v166_v13 = vld [vmem:[%s1311_s30 + $0x30] sm:$0xff]  ;;  %v167_v15 = vld [vmem:[%s1311_s30 + $0x38] sm:$0xff]  ;;  %v168_v17 = vld [vmem:[%s1311_s30 + $0x40] sm:$0xff] }
  0x34   : > { %v198_v14 = vld [vmem:[%s1311_s30 + $0x130] sm:$0xff]  ;;  %v199_v16 = vld [vmem:[%s1311_s30 + $0x138] sm:$0xff]  ;;  %v200_v18 = vld [vmem:[%s1311_s30 + $0x140] sm:$0xff] }
  0x35   : > { %1084 = vmatmul.mubr.msk.f32.gmra.mrb[2].mxu0 %vm225_vm0, %v163_v7  ;;  %v169_v19 = vld [vmem:[%s1311_s30 + $0x48] sm:$0xff]  ;;  %v170_v21 = vld [vmem:[%s1311_s30 + $0x50] sm:$0xff]  ;;  %v171_v23 = vld [vmem:[%s1311_s30 + $0x58] sm:$0xff] }
  0x36   : > { %1132 = vmatmul.mubr.msk.f32.gmra.mrb[2].mxu1 %vm225_vm0, %v195_v8  ;;  %1086 = vmatprep.mubr.msk.f32.mxu0 %vm225_vm0, %v164_v9  ;;  %v201_v20 = vld [vmem:[%s1311_s30 + $0x148] sm:$0xff]  ;;  %v202_v22 = vld [vmem:[%s1311_s30 + $0x150] sm:$0xff]  ;;  %v203_v24 = vld [vmem:[%s1311_s30 + $0x158] sm:$0xff] }
  0x37   : > { %1134 = vmatprep.mubr.msk.f32.mxu1 %vm225_vm0, %v196_v10  ;;  %v172_v25 = vld [vmem:[%s1311_s30 + $0x60] sm:$0xff]  ;;  %v173_v27 = vld [vmem:[%s1311_s30 + $0x68] sm:$0xff]  ;;  %v174_v29 = vld [vmem:[%s1311_s30 + $0x70] sm:$0xff] }
  0x38   : > { %v204_v26 = vld [vmem:[%s1311_s30 + $0x160] sm:$0xff]  ;;  %v205_v28 = vld [vmem:[%s1311_s30 + $0x168] sm:$0xff]  ;;  %v206_v30 = vld [vmem:[%s1311_s30 + $0x170] sm:$0xff] }
  0x39   : > { %1087 = vmatmul.mubr.msk.f32.gmra.mrb[4].mxu0 %vm225_vm0, %v165_v11  ;;  %v175_v31 = vld [vmem:[%s1311_s30 + $0x78] sm:$0xff]  ;;  %v176_v33 = vld [vmem:[%s1311_s30 + $0x80] sm:$0xff]  ;;  %v177_v35 = vld [vmem:[%s1311_s30 + $0x88] sm:$0xff] }
  0x3a   : > { %1135 = vmatmul.mubr.msk.f32.gmra.mrb[4].mxu1 %vm225_vm0, %v197_v12  ;;  %1089 = vmatprep.mubr.msk.f32.mxu0 %vm225_vm0, %v166_v13  ;;  %v207_v32 = vld [vmem:[%s1311_s30 + $0x178] sm:$0xff]  ;;  %v208_v34 = vld [vmem:[%s1311_s30 + $0x180] sm:$0xff]  ;;  %v209_v36 = vld [vmem:[%s1311_s30 + $0x188] sm:$0xff] }
  0x3b   : > { %1137 = vmatprep.mubr.msk.f32.mxu1 %vm225_vm0, %v198_v14  ;;  %v178_v37 = vld [vmem:[%s1311_s30 + $0x90] sm:$0xff]  ;;  %v179_v39 = vld [vmem:[%s1311_s30 + $0x98] sm:$0xff]  ;;  %v180_v41 = vld [vmem:[%s1311_s30 + $0xa0] sm:$0xff] }
  0x3c   : > { %v210_v38 = vld [vmem:[%s1311_s30 + $0x190] sm:$0xff]  ;;  %v211_v40 = vld [vmem:[%s1311_s30 + $0x198] sm:$0xff]  ;;  %v212_v42 = vld [vmem:[%s1311_s30 + $0x1a0] sm:$0xff] }
  0x3d   : > { %1090 = vmatmul.mubr.msk.f32.gmra.mrb[6].mxu0 %vm225_vm0, %v167_v15  ;;  %v181_v43 = vld [vmem:[%s1311_s30 + $0xa8] sm:$0xff]  ;;  %v182_v45 = vld [vmem:[%s1311_s30 + $0xb0] sm:$0xff]  ;;  %v183_v47 = vld [vmem:[%s1311_s30 + $0xb8] sm:$0xff] }
  0x3e   : > { %1138 = vmatmul.mubr.msk.f32.gmra.mrb[6].mxu1 %vm225_vm0, %v199_v16  ;;  %1092 = vmatprep.mubr.msk.f32.mxu0 %vm225_vm0, %v168_v17  ;;  %v213_v44 = vld [vmem:[%s1311_s30 + $0x1a8] sm:$0xff]  ;;  %v214_v46 = vld [vmem:[%s1311_s30 + $0x1b0] sm:$0xff]  ;;  %v215_v48 = vld [vmem:[%s1311_s30 + $0x1b8] sm:$0xff] }
  0x3f   : > { %1140 = vmatprep.mubr.msk.f32.mxu1 %vm225_vm0, %v200_v18  ;;  %v184_v49 = vld [vmem:[%s1311_s30 + $0xc0] sm:$0xff]  ;;  %v185_v51 = vld [vmem:[%s1311_s30 + $0xc8] sm:$0xff]  ;;  %v186_v53 = vld [vmem:[%s1311_s30 + $0xd0] sm:$0xff] }
  0x40   : > { %v216_v50 = vld [vmem:[%s1311_s30 + $0x1c0] sm:$0xff]  ;;  %v217_v52 = vld [vmem:[%s1311_s30 + $0x1c8] sm:$0xff]  ;;  %v218_v54 = vld [vmem:[%s1311_s30 + $0x1d0] sm:$0xff] }
  0x41   : > { %1093 = vmatmul.mubr.msk.f32.gmra.mrb[8].mxu0 %vm225_vm0, %v169_v19  ;;  %v187_v55 = vld [vmem:[%s1311_s30 + $0xd8] sm:$0xff]  ;;  %v188_v57 = vld [vmem:[%s1311_s30 + $0xe0] sm:$0xff]  ;;  %v189_v59 = vld [vmem:[%s1311_s30 + $0xe8] sm:$0xff] }
  0x42   : > { %1141 = vmatmul.mubr.msk.f32.gmra.mrb[8].mxu1 %vm225_vm0, %v201_v20  ;;  %1095 = vmatprep.mubr.msk.f32.mxu0 %vm225_vm0, %v170_v21  ;;  %v219_v56 = vld [vmem:[%s1311_s30 + $0x1d8] sm:$0xff]  ;;  %v220_v58 = vld [vmem:[%s1311_s30 + $0x1e0] sm:$0xff]  ;;  %v221_v60 = vld [vmem:[%s1311_s30 + $0x1e8] sm:$0xff] }
  0x43   : > { %1143 = vmatprep.mubr.msk.f32.mxu1 %vm225_vm0, %v202_v22  ;;  %v190_v61 = vld [vmem:[%s1311_s30 + $0xf0] sm:$0xff]  ;;  %v191_v63 = vld [vmem:[%s1311_s30 + $0xf8] sm:$0xff] }
  0x44   : > { %v222_v62 = vld [vmem:[%s1311_s30 + $0x1f0] sm:$0xff]  ;;  %v223_v0 = vld [vmem:[%s1311_s30 + $0x1f8] sm:$0xff] }
  0x45   : > { %1096 = vmatmul.mubr.msk.f32.gmra.mrb[10].mxu0 %vm225_vm0, %v171_v23 }
  0x46   : > { %1144 = vmatmul.mubr.msk.f32.gmra.mrb[10].mxu1 %vm225_vm0, %v203_v24  ;;  %1098 = vmatprep.mubr.msk.f32.mxu0 %vm225_vm0, %v172_v25 }
  0x47   : > { %1146 = vmatprep.mubr.msk.f32.mxu1 %vm225_vm0, %v204_v26 }
  0x49   : > { %1099 = vmatmul.mubr.msk.f32.gmra.mrb[12].mxu0 %vm225_vm0, %v173_v27 }
  0x4a   : > { %1147 = vmatmul.mubr.msk.f32.gmra.mrb[12].mxu1 %vm225_vm0, %v205_v28  ;;  %1101 = vmatprep.mubr.msk.f32.mxu0 %vm225_vm0, %v174_v29 }
  0x4b   : > { %1149 = vmatprep.mubr.msk.f32.mxu1 %vm225_vm0, %v206_v30 }
  0x4d   : > { %1102 = vmatmul.mubr.msk.f32.gmra.mrb[14].mxu0 %vm225_vm0, %v175_v31 }
  0x4e   : > { %1150 = vmatmul.mubr.msk.f32.gmra.mrb[14].mxu1 %vm225_vm0, %v207_v32  ;;  %1104 = vmatprep.mubr.msk.f32.mxu0 %vm225_vm0, %v176_v33 }
  0x4f   : > { %1152 = vmatprep.mubr.msk.f32.mxu1 %vm225_vm0, %v208_v34 }
  0x51   : > { %1105 = vmatmul.mubr.msk.f32.gmra.mrb[16].mxu0 %vm225_vm0, %v177_v35 }
  0x52   : > { %1153 = vmatmul.mubr.msk.f32.gmra.mrb[16].mxu1 %vm225_vm0, %v209_v36  ;;  %1107 = vmatprep.mubr.msk.f32.mxu0 %vm225_vm0, %v178_v37 }
  0x53   : > { %1155 = vmatprep.mubr.msk.f32.mxu1 %vm225_vm0, %v210_v38 }
  0x55   : > { %1108 = vmatmul.mubr.msk.f32.gmra.mrb[18].mxu0 %vm225_vm0, %v179_v39 }
  0x56   : > { %1156 = vmatmul.mubr.msk.f32.gmra.mrb[18].mxu1 %vm225_vm0, %v211_v40  ;;  %1110 = vmatprep.mubr.msk.f32.mxu0 %vm225_vm0, %v180_v41 }
  0x57   : > { %1158 = vmatprep.mubr.msk.f32.mxu1 %vm225_vm0, %v212_v42 }
  0x59   : > { %1111 = vmatmul.mubr.msk.f32.gmra.mrb[20].mxu0 %vm225_vm0, %v181_v43 }
  0x5a   : > { %1159 = vmatmul.mubr.msk.f32.gmra.mrb[20].mxu1 %vm225_vm0, %v213_v44  ;;  %1113 = vmatprep.mubr.msk.f32.mxu0 %vm225_vm0, %v182_v45 }
  0x5b   : > { %1161 = vmatprep.mubr.msk.f32.mxu1 %vm225_vm0, %v214_v46 }
  0x5d   : > { %1114 = vmatmul.mubr.msk.f32.gmra.mrb[22].mxu0 %vm225_vm0, %v183_v47 }
  0x5e   : > { %1162 = vmatmul.mubr.msk.f32.gmra.mrb[22].mxu1 %vm225_vm0, %v215_v48  ;;  %1116 = vmatprep.mubr.msk.f32.mxu0 %vm225_vm0, %v184_v49 }
  0x5f   : > { %1164 = vmatprep.mubr.msk.f32.mxu1 %vm225_vm0, %v216_v50 }
  0x61   : > { %1117 = vmatmul.mubr.msk.f32.gmra.mrb[24].mxu0 %vm225_vm0, %v185_v51 }
  0x62   : > { %1165 = vmatmul.mubr.msk.f32.gmra.mrb[24].mxu1 %vm225_vm0, %v217_v52  ;;  %1119 = vmatprep.mubr.msk.f32.mxu0 %vm225_vm0, %v186_v53 }
  0x63   : > { %1167 = vmatprep.mubr.msk.f32.mxu1 %vm225_vm0, %v218_v54 }
  0x65   : > { %1120 = vmatmul.mubr.msk.f32.gmra.mrb[26].mxu0 %vm225_vm0, %v187_v55 }
  0x66   : > { %1168 = vmatmul.mubr.msk.f32.gmra.mrb[26].mxu1 %vm225_vm0, %v219_v56  ;;  %1122 = vmatprep.mubr.msk.f32.mxu0 %vm225_vm0, %v188_v57 }
  0x67   : > { %1170 = vmatprep.mubr.msk.f32.mxu1 %vm225_vm0, %v220_v58 }
  0x69   : > { %1123 = vmatmul.mubr.msk.f32.gmra.mrb[28].mxu0 %vm225_vm0, %v189_v59 }
  0x6a   : > { %1171 = vmatmul.mubr.msk.f32.gmra.mrb[28].mxu1 %vm225_vm0, %v221_v60  ;;  %1125 = vmatprep.mubr.msk.f32.mxu0 %vm225_vm0, %v190_v61 }
  0x6b   : > { %1173 = vmatprep.mubr.msk.f32.mxu1 %vm225_vm0, %v222_v62 }
  0x6d   : > { %1126 = vmatmul.mubr.msk.f32.gmra.mrb[30].mxu0 %vm225_vm0, %v191_v63 }
  0x6e   : > { %1174 = vmatmul.mubr.msk.f32.gmra.mrb[30].mxu1 %vm225_vm0, %v223_v0 }
 0x104   : > { %v1082_v1 = vpop.f32.mrb[0].mxu0 }
 0x105   : > { %v1130_v2 = vpop.f32.mrb[0].mxu1  ;;  %805 = vst.msk [vmem:[%s1446_s5 + $0x8] sm:$0xff] %vm803_vm1, %v1082_v1  ;;  %v484_v3 = vpop.f32.mrb[1].mxu0 }
 0x106   : > { %837 = vst.msk [vmem:[%s1446_s5 + $0x108] sm:$0xff] %vm803_vm1, %v1130_v2  ;;  %v644_v4 = vpop.f32.mrb[1].mxu1  ;;  %804 = vst.msk [vmem:[%s1446_s5] sm:$0xff] %vm803_vm1, %v484_v3 }
 0x107   : > { %836 = vst.msk [vmem:[%s1446_s5 + $0x100] sm:$0xff] %vm803_vm1, %v644_v4 }
 0x108   : > { %v1085_v5 = vpop.f32.mrb[2].mxu0 }
 0x109   : > { %v1133_v6 = vpop.f32.mrb[2].mxu1  ;;  %807 = vst.msk [vmem:[%s1446_s5 + $0x18] sm:$0xff] %vm803_vm1, %v1085_v5  ;;  %v494_v7 = vpop.f32.mrb[3].mxu0 }
 0x10a   : > { %839 = vst.msk [vmem:[%s1446_s5 + $0x118] sm:$0xff] %vm803_vm1, %v1133_v6  ;;  %v654_v8 = vpop.f32.mrb[3].mxu1  ;;  %806 = vst.msk [vmem:[%s1446_s5 + $0x10] sm:$0xff] %vm803_vm1, %v494_v7 }
 0x10b   : > { %838 = vst.msk [vmem:[%s1446_s5 + $0x110] sm:$0xff] %vm803_vm1, %v654_v8 }
 0x10c   : > { %v1088_v9 = vpop.f32.mrb[4].mxu0 }
 0x10d   : > { %v1136_v10 = vpop.f32.mrb[4].mxu1  ;;  %809 = vst.msk [vmem:[%s1446_s5 + $0x28] sm:$0xff] %vm803_vm1, %v1088_v9  ;;  %v504_v11 = vpop.f32.mrb[5].mxu0 }
 0x10e   : > { %841 = vst.msk [vmem:[%s1446_s5 + $0x128] sm:$0xff] %vm803_vm1, %v1136_v10  ;;  %v664_v12 = vpop.f32.mrb[5].mxu1  ;;  %808 = vst.msk [vmem:[%s1446_s5 + $0x20] sm:$0xff] %vm803_vm1, %v504_v11 }
 0x10f   : > { %840 = vst.msk [vmem:[%s1446_s5 + $0x120] sm:$0xff] %vm803_vm1, %v664_v12 }
 0x110   : > { %v1091_v13 = vpop.f32.mrb[6].mxu0 }
 0x111   : > { %v1139_v14 = vpop.f32.mrb[6].mxu1  ;;  %811 = vst.msk [vmem:[%s1446_s5 + $0x38] sm:$0xff] %vm803_vm1, %v1091_v13  ;;  %v514_v15 = vpop.f32.mrb[7].mxu0 }
 0x112   : > { %843 = vst.msk [vmem:[%s1446_s5 + $0x138] sm:$0xff] %vm803_vm1, %v1139_v14  ;;  %v674_v16 = vpop.f32.mrb[7].mxu1  ;;  %810 = vst.msk [vmem:[%s1446_s5 + $0x30] sm:$0xff] %vm803_vm1, %v514_v15 }
 0x113   : > { %842 = vst.msk [vmem:[%s1446_s5 + $0x130] sm:$0xff] %vm803_vm1, %v674_v16 }
 0x114   : > { %v1094_v17 = vpop.f32.mrb[8].mxu0 }
 0x115   : > { %v1142_v18 = vpop.f32.mrb[8].mxu1  ;;  %813 = vst.msk [vmem:[%s1446_s5 + $0x48] sm:$0xff] %vm803_vm1, %v1094_v17  ;;  %v524_v19 = vpop.f32.mrb[9].mxu0 }
 0x116   : > { %845 = vst.msk [vmem:[%s1446_s5 + $0x148] sm:$0xff] %vm803_vm1, %v1142_v18  ;;  %v684_v20 = vpop.f32.mrb[9].mxu1  ;;  %812 = vst.msk [vmem:[%s1446_s5 + $0x40] sm:$0xff] %vm803_vm1, %v524_v19 }
 0x117   : > { %844 = vst.msk [vmem:[%s1446_s5 + $0x140] sm:$0xff] %vm803_vm1, %v684_v20 }
 0x118   : > { %v1097_v21 = vpop.f32.mrb[10].mxu0 }
 0x119   : > { %v1145_v22 = vpop.f32.mrb[10].mxu1  ;;  %815 = vst.msk [vmem:[%s1446_s5 + $0x58] sm:$0xff] %vm803_vm1, %v1097_v21  ;;  %v534_v23 = vpop.f32.mrb[11].mxu0 }
 0x11a   : > { %847 = vst.msk [vmem:[%s1446_s5 + $0x158] sm:$0xff] %vm803_vm1, %v1145_v22  ;;  %v694_v24 = vpop.f32.mrb[11].mxu1  ;;  %814 = vst.msk [vmem:[%s1446_s5 + $0x50] sm:$0xff] %vm803_vm1, %v534_v23 }
 0x11b   : > { %846 = vst.msk [vmem:[%s1446_s5 + $0x150] sm:$0xff] %vm803_vm1, %v694_v24 }
 0x11c   : > { %v1100_v25 = vpop.f32.mrb[12].mxu0 }
 0x11d   : > { %v1148_v26 = vpop.f32.mrb[12].mxu1  ;;  %817 = vst.msk [vmem:[%s1446_s5 + $0x68] sm:$0xff] %vm803_vm1, %v1100_v25  ;;  %v544_v27 = vpop.f32.mrb[13].mxu0 }
 0x11e   : > { %849 = vst.msk [vmem:[%s1446_s5 + $0x168] sm:$0xff] %vm803_vm1, %v1148_v26  ;;  %v704_v28 = vpop.f32.mrb[13].mxu1  ;;  %816 = vst.msk [vmem:[%s1446_s5 + $0x60] sm:$0xff] %vm803_vm1, %v544_v27 }
 0x11f   : > { %848 = vst.msk [vmem:[%s1446_s5 + $0x160] sm:$0xff] %vm803_vm1, %v704_v28 }
 0x120   : > { %v1103_v29 = vpop.f32.mrb[14].mxu0 }
 0x121   : > { %v1151_v30 = vpop.f32.mrb[14].mxu1  ;;  %819 = vst.msk [vmem:[%s1446_s5 + $0x78] sm:$0xff] %vm803_vm1, %v1103_v29  ;;  %v554_v31 = vpop.f32.mrb[15].mxu0 }
 0x122   : > { %851 = vst.msk [vmem:[%s1446_s5 + $0x178] sm:$0xff] %vm803_vm1, %v1151_v30  ;;  %v714_v32 = vpop.f32.mrb[15].mxu1  ;;  %818 = vst.msk [vmem:[%s1446_s5 + $0x70] sm:$0xff] %vm803_vm1, %v554_v31 }
 0x123   : > { %850 = vst.msk [vmem:[%s1446_s5 + $0x170] sm:$0xff] %vm803_vm1, %v714_v32 }
 0x124   : > { %v1106_v33 = vpop.f32.mrb[16].mxu0 }
 0x125   : > { %v1154_v34 = vpop.f32.mrb[16].mxu1  ;;  %821 = vst.msk [vmem:[%s1446_s5 + $0x88] sm:$0xff] %vm803_vm1, %v1106_v33  ;;  %v564_v35 = vpop.f32.mrb[17].mxu0 }
 0x126   : > { %853 = vst.msk [vmem:[%s1446_s5 + $0x188] sm:$0xff] %vm803_vm1, %v1154_v34  ;;  %v724_v36 = vpop.f32.mrb[17].mxu1  ;;  %820 = vst.msk [vmem:[%s1446_s5 + $0x80] sm:$0xff] %vm803_vm1, %v564_v35 }
 0x127   : > { %852 = vst.msk [vmem:[%s1446_s5 + $0x180] sm:$0xff] %vm803_vm1, %v724_v36 }
 0x128   : > { %v1109_v37 = vpop.f32.mrb[18].mxu0 }
 0x129   : > { %v1157_v38 = vpop.f32.mrb[18].mxu1  ;;  %823 = vst.msk [vmem:[%s1446_s5 + $0x98] sm:$0xff] %vm803_vm1, %v1109_v37  ;;  %v574_v39 = vpop.f32.mrb[19].mxu0 }
 0x12a   : > { %855 = vst.msk [vmem:[%s1446_s5 + $0x198] sm:$0xff] %vm803_vm1, %v1157_v38  ;;  %v734_v40 = vpop.f32.mrb[19].mxu1  ;;  %822 = vst.msk [vmem:[%s1446_s5 + $0x90] sm:$0xff] %vm803_vm1, %v574_v39 }
 0x12b   : > { %854 = vst.msk [vmem:[%s1446_s5 + $0x190] sm:$0xff] %vm803_vm1, %v734_v40 }
 0x12c   : > { %v1112_v41 = vpop.f32.mrb[20].mxu0 }
 0x12d   : > { %v1160_v42 = vpop.f32.mrb[20].mxu1  ;;  %825 = vst.msk [vmem:[%s1446_s5 + $0xa8] sm:$0xff] %vm803_vm1, %v1112_v41  ;;  %v584_v43 = vpop.f32.mrb[21].mxu0 }
 0x12e   : > { %857 = vst.msk [vmem:[%s1446_s5 + $0x1a8] sm:$0xff] %vm803_vm1, %v1160_v42  ;;  %v744_v44 = vpop.f32.mrb[21].mxu1  ;;  %824 = vst.msk [vmem:[%s1446_s5 + $0xa0] sm:$0xff] %vm803_vm1, %v584_v43 }
 0x12f   : > { %856 = vst.msk [vmem:[%s1446_s5 + $0x1a0] sm:$0xff] %vm803_vm1, %v744_v44 }
 0x130   : > { %v1115_v45 = vpop.f32.mrb[22].mxu0 }
 0x131   : > { %v1163_v46 = vpop.f32.mrb[22].mxu1  ;;  %827 = vst.msk [vmem:[%s1446_s5 + $0xb8] sm:$0xff] %vm803_vm1, %v1115_v45  ;;  %v594_v47 = vpop.f32.mrb[23].mxu0 }
 0x132   : > { %859 = vst.msk [vmem:[%s1446_s5 + $0x1b8] sm:$0xff] %vm803_vm1, %v1163_v46  ;;  %v754_v48 = vpop.f32.mrb[23].mxu1  ;;  %826 = vst.msk [vmem:[%s1446_s5 + $0xb0] sm:$0xff] %vm803_vm1, %v594_v47 }
 0x133   : > { %858 = vst.msk [vmem:[%s1446_s5 + $0x1b0] sm:$0xff] %vm803_vm1, %v754_v48 }
 0x134   : > { %v1118_v49 = vpop.f32.mrb[24].mxu0 }
 0x135   : > { %v1166_v50 = vpop.f32.mrb[24].mxu1  ;;  %829 = vst.msk [vmem:[%s1446_s5 + $0xc8] sm:$0xff] %vm803_vm1, %v1118_v49  ;;  %v604_v51 = vpop.f32.mrb[25].mxu0 }
 0x136   : > { %861 = vst.msk [vmem:[%s1446_s5 + $0x1c8] sm:$0xff] %vm803_vm1, %v1166_v50  ;;  %v764_v52 = vpop.f32.mrb[25].mxu1  ;;  %828 = vst.msk [vmem:[%s1446_s5 + $0xc0] sm:$0xff] %vm803_vm1, %v604_v51 }
 0x137   : > { %860 = vst.msk [vmem:[%s1446_s5 + $0x1c0] sm:$0xff] %vm803_vm1, %v764_v52 }
 0x138   : > { %v1121_v53 = vpop.f32.mrb[26].mxu0 }
 0x139   : > { %v1169_v54 = vpop.f32.mrb[26].mxu1  ;;  %831 = vst.msk [vmem:[%s1446_s5 + $0xd8] sm:$0xff] %vm803_vm1, %v1121_v53  ;;  %v614_v55 = vpop.f32.mrb[27].mxu0 }
 0x13a   : > { %863 = vst.msk [vmem:[%s1446_s5 + $0x1d8] sm:$0xff] %vm803_vm1, %v1169_v54  ;;  %v774_v56 = vpop.f32.mrb[27].mxu1  ;;  %830 = vst.msk [vmem:[%s1446_s5 + $0xd0] sm:$0xff] %vm803_vm1, %v614_v55 }
 0x13b   : > { %862 = vst.msk [vmem:[%s1446_s5 + $0x1d0] sm:$0xff] %vm803_vm1, %v774_v56 }
 0x13c   : > { %v1124_v57 = vpop.f32.mrb[28].mxu0 }
 0x13d   : > { %v1172_v58 = vpop.f32.mrb[28].mxu1  ;;  %833 = vst.msk [vmem:[%s1446_s5 + $0xe8] sm:$0xff] %vm803_vm1, %v1124_v57  ;;  %v624_v59 = vpop.f32.mrb[29].mxu0 }
 0x13e   : > { %865 = vst.msk [vmem:[%s1446_s5 + $0x1e8] sm:$0xff] %vm803_vm1, %v1172_v58  ;;  %v784_v60 = vpop.f32.mrb[29].mxu1  ;;  %832 = vst.msk [vmem:[%s1446_s5 + $0xe0] sm:$0xff] %vm803_vm1, %v624_v59 }
 0x13f   : > { %864 = vst.msk [vmem:[%s1446_s5 + $0x1e0] sm:$0xff] %vm803_vm1, %v784_v60 }
 0x140   : > { %v1127_v61 = vpop.f32.mrb[30].mxu0 }
 0x141   : > { %v1175_v62 = vpop.f32.mrb[30].mxu1  ;;  %835 = vst.msk [vmem:[%s1446_s5 + $0xf8] sm:$0xff] %vm803_vm1, %v1127_v61  ;;  %v634_v63 = vpop.f32.mrb[31].mxu0 }
 0x142   : > { %867 = vst.msk [vmem:[%s1446_s5 + $0x1f8] sm:$0xff] %vm803_vm1, %v1175_v62  ;;  %v794_v0 = vpop.f32.mrb[31].mxu1  ;;  %834 = vst.msk [vmem:[%s1446_s5 + $0xf0] sm:$0xff] %vm803_vm1, %v634_v63 }
 0x143   : > { %866 = vst.msk [vmem:[%s1446_s5 + $0x1f0] sm:$0xff] %vm803_vm1, %v794_v0 }
 0x144 PF: > { %s13_s9 = sadd.s32 1, %s1235_s9  }
 0x145   : > { %p10_p2 = scmp.ge.s32.totalorder %s13_s9, 6  }
 0x147   :  { %12 = sbr.rel (!%p10_p2) target bundleno = 1 (0x1), region = 63 }
 0x14e   :  { %890 = vsyncpa [#allocation3], 1 }
 0x14f   :  { %892 = vsyncpa [#allocation3 + $0x1], 1 }

// kernel: up_forward.8
= control target key start
LH: loop header
LB: loop body
LE: loop exit
PB: predicated region body
PF: predicated region fallthrough
CT: control target
= control target key end

     0   :  { %s2964_s12 = smov 0   ;;  %s2966_s13 = smov 0   ;;  %s3519_s0 = inlined_call_operand.vmem [shape: bf16[2,18,18,256], index: 0, kind: input, shape index: {}]   ;;  %s3520_s1 = inlined_call_operand.vmem [shape: bf16[9,256,128], index: 1, kind: input, shape index: {}]   ;;  %s3521_s2 = inlined_call_operand.vmem [shape: f32[2,16,16,128], index: 2, kind: output, shape index: {0}]   ;;  %s3522_s3 = inlined_call_operand.vmem [shape: f32[2,8,128], index: 3, kind: output, shape index: {1}]  }
   0x1   :  { %s2968_s14 = smov 0   ;;  %s2970_s15 = smov 0  }
   0x2   :  { %s2972_s16 = smov 0  }
   0x3 LB: > { %s23_s17 = sadd.s32 1, %s2933_s14  ;;  %s26_s18 = sadd.s32 1, %s2937_s15  ;;  %s2941_s16 = sphi %s2972_s16, %s14_s16   ;;  %s2937_s15 = sphi %s2970_s15, %s3526_s15   ;;  %s2933_s14 = sphi %s2968_s14, %s3525_s14   ;;  %s2929_s13 = sphi %s2966_s13, %s3524_s13   ;;  %s2925_s12 = sphi %s2964_s12, %s3523_s12  }
   0x4   : > { %p24_p0 = scmp.ge.s32.totalorder %s23_s17, 16  ;;  %p2075_p1 = scmp.ge.s32.totalorder %s2941_s16, 1 }
   0x5   : > { %p154_p2 = scmp.lt.s32.totalorder %s2941_s16, 33 }
   0x6   : > { %s3528_s17 = smov (%p24_p0, %s23_s17), 0  ;;  %s3530_s18 = smov (!%p24_p0, %s26_s18), %s2937_s15 }
   0x7   : > { %p155_p3 = pnand %p2075_p1, %p154_p2  ;;  %p28_p4 = scmp.ge.s32.totalorder %s3530_s18, 2 }
   0x8   : > { %v2744_v0 = vld [vmem:[%s3520_s1 + $0xc0] sm:$0xff] (!%p155_p3)   ;;  %p186_p5 = scmp.lt.s32.totalorder (!%p155_p3), %s2929_s13, 1  ;;  %v2748_v4 = vld [vmem:[%s3520_s1 + $0xc8] sm:$0xff] (!%p155_p3)   ;;  %v2752_v8 = vld [vmem:[%s3520_s1 + $0xd0] sm:$0xff] (!%p155_p3)   ;;  %s2503_s11 = smul.u32 (!%p155_p3), 24, %s2925_s12  ;;  %vm625_vm1 = vcmask (!%p155_p3), 1046528  }
   0x9   : > { %s3532_s18 = smov (%p28_p4, %s3530_s18), 0  ;;  %158 = sbr.rel (%p155_p3) target bundleno = 410 (0x19a), region = 28 }
   0xa   : > { %v2745_v1 = vld [vmem:[%s3520_s1 + $0x40] sm:$0xff] (!%p155_p3)   ;;  %2504 = vmatprep.subr.bf16.mxu0 (!%p155_p3), %v2744_v0  ;;  %v2749_v5 = vld [vmem:[%s3520_s1 + $0x48] sm:$0xff] (!%p155_p3)   ;;  %v2753_v9 = vld [vmem:[%s3520_s1 + $0x50] sm:$0xff] (!%p155_p3)   ;;  %vm289_vm0 = vsmask.f32 (!%p155_p3), 7424  ;;  %p193_p6 = scmp.lt.s32.totalorder (!%p155_p3), %s2925_s12, 15 }
   0xb   : > { %v2746_v2 = vld [vmem:[%s3520_s1 + $0x80] sm:$0xff] (!%p155_p3)   ;;  %2526 = vmatprep.subr.bf16.mxu1 (!%p155_p3), %v2745_v1  ;;  %v2750_v6 = vld [vmem:[%s3520_s1 + $0x88] sm:$0xff] (!%p155_p3)   ;;  %v2754_v10 = vld [vmem:[%s3520_s1 + $0x90] sm:$0xff] (!%p155_p3)   ;;  %p2500_p7 = scmp.ne.s32.totalorder (!%p155_p3), %s2925_s12, 0 }
   0xc   : > { %v2747_v3 = vld [vmem:[%s3520_s1] sm:$0xff] (!%p155_p3)   ;;  %2505 = vmatpush3.bf16.msra.mxu0 (!%p155_p3), %v2746_v2  ;;  %v2751_v7 = vld [vmem:[%s3520_s1 + $0x8] sm:$0xff] (!%p155_p3)   ;;  %v2755_v11 = vld [vmem:[%s3520_s1 + $0x10] sm:$0xff] (!%p155_p3)  }
   0xd   : > { %2527 = vmatpush3.bf16.msra.mxu1 (!%p155_p3), %v2747_v3  ;;  %2506 = vmatprep.subr.bf16.mxu0 (!%p155_p3), %v2748_v4  ;;  %v2756_v12 = vld [vmem:[%s3520_s1 + $0xd8] sm:$0xff] (!%p155_p3)   ;;  %v2760_v16 = vld [vmem:[%s3520_s1 + $0xe0] sm:$0xff] (!%p155_p3)   ;;  %v2764_v20 = vld [vmem:[%s3520_s1 + $0xe8] sm:$0xff] (!%p155_p3)  }
   0xe   : > { %2528 = vmatprep.subr.bf16.mxu1 (!%p155_p3), %v2749_v5  ;;  %v2757_v13 = vld [vmem:[%s3520_s1 + $0x58] sm:$0xff] (!%p155_p3)   ;;  %v2761_v17 = vld [vmem:[%s3520_s1 + $0x60] sm:$0xff] (!%p155_p3)   ;;  %v2765_v21 = vld [vmem:[%s3520_s1 + $0x68] sm:$0xff] (!%p155_p3)  }
   0xf   : > { %v2758_v14 = vld [vmem:[%s3520_s1 + $0x98] sm:$0xff] (!%p155_p3)   ;;  %v2762_v18 = vld [vmem:[%s3520_s1 + $0xa0] sm:$0xff] (!%p155_p3)   ;;  %v2766_v22 = vld [vmem:[%s3520_s1 + $0xa8] sm:$0xff] (!%p155_p3)  }
  0x10   : > { %s3534_s13 = smov (!%p186_p5, %s2929_s13), 1  ;;  %2507 = vmatpush3.bf16.msra.mxu0 %v2750_v6  ;;  %v2759_v15 = vld [vmem:[%s3520_s1 + $0x18] sm:$0xff]   ;;  %v2763_v19 = vld [vmem:[%s3520_s1 + $0x20] sm:$0xff]   ;;  %v2767_v23 = vld [vmem:[%s3520_s1 + $0x28] sm:$0xff]  }
  0x11   : > { %s2080_s4 = sshll.u32 %s3534_s13, 3  ;;  %2529 = vmatpush3.bf16.msra.mxu1 %v2751_v7  ;;  %2508 = vmatprep.subr.bf16.mxu0 %v2752_v8  ;;  %s2702_s30 = smul.u32 432, %s3534_s13  ;;  %v2768_v24 = vld [vmem:[%s3520_s1 + $0xf0] sm:$0xff]   ;;  %v2772_v28 = vld [vmem:[%s3520_s1 + $0xf8] sm:$0xff]   ;;  %v2781_v37 = vld [vmem:[%s3520_s1 + $0x140] sm:$0xff]  }
  0x12   : > { %s3023_s9 = scalar_lea.vmem %s3522_s3, %s2080_s4  ;;  %2530 = vmatprep.subr.bf16.mxu1 %v2753_v9  ;;  %v2769_v25 = vld [vmem:[%s3520_s1 + $0x70] sm:$0xff]   ;;  %v2773_v29 = vld [vmem:[%s3520_s1 + $0x78] sm:$0xff]   ;;  %v2783_v44 = vld [vmem:[%s3520_s1 + $0x1c0] sm:$0xff]   ;;  %s2078_s24 = sshll.u32 %s3534_s13, 5 }
  0x13   : > { %v2770_v26 = vld [vmem:[%s3520_s1 + $0xb0] sm:$0xff]   ;;  %s190_s23 = scalar_lea.vmem %s3519_s0, %s2702_s30  ;;  %v2774_v30 = vld [vmem:[%s3520_s1 + $0xb8] sm:$0xff]   ;;  %v2782_v49 = vld [vmem:[%s3520_s1 + $0x100] sm:$0xff]  }
  0x14   : > { %2509 = vmatpush3.bf16.msra.mxu0 %v2754_v10  ;;  %v2771_v27 = vld [vmem:[%s3520_s1 + $0x30] sm:$0xff]   ;;  %s3099_s4 = scalar_lea.vmem %s190_s23, %s2503_s11  ;;  %v2775_v31 = vld [vmem:[%s3520_s1 + $0x38] sm:$0xff]   ;;  %v2784_v50 = vld [vmem:[%s3520_s1 + $0x180] sm:$0xff]  }
  0x15   : > { %2531 = vmatpush3.bf16.msra.mxu1 %v2755_v11  ;;  %2510 = vmatprep.subr.bf16.mxu0 %v2756_v12  ;;  %v210_v32 = vld [vmem:[%s3099_s4 + $0x10] sm:$0x11]  ;;  %v2776_v33 = vld [vmem:[%s3099_s4 + $0x4] ss:$8 sps:$4 sm:$0xff]   ;;  %v3110_v35 = vld [vmem:[%s3099_s4] ss:$8 sps:$4 sm:$0xff]  }
  0x16   : > { %2532 = vmatprep.subr.bf16.mxu1 %v2757_v13  ;;  %v2117_v34 = vcombine.high %v210_v32, %v210_v32  ;;  %v3112_v36 = vcombine.low %v210_v32, %v210_v32  ;;  %v303_v38 = vshrl.u32 %v2776_v33, 16  ;;  %v305_v39 = vshll.u32 %v2776_v33, 16  ;;  %583 = vmatprep.mubr.bf16.mxu1 %v2776_v33  ;;  %v2785_v53 = vld [vmem:[%s3520_s1 + $0x148] sm:$0xff]   ;;  %v2789_v62 = vld [vmem:[%s3520_s1 + $0x150] sm:$0xff]   ;;  %v2793_v2 = vld [vmem:[%s3520_s1 + $0x158] sm:$0xff]   ;;  %s194_s22 = scalar_select %p193_p6, %s2925_s12, 15 }
  0x17   : > { %v291_v41 = vshrl.u32 %v3110_v35, 16  ;;  %v293_v42 = vshll.u32 %v3110_v35, 16  ;;  %v629_v54 = vrot.slane %v2776_v33, 1  ;;  %v2787_v56 = vld [vmem:[%s3520_s1 + $0x1c8] sm:$0xff]   ;;  %v2791_v63 = vld [vmem:[%s3520_s1 + $0x1d0] sm:$0xff]   ;;  %v2795_v3 = vld [vmem:[%s3520_s1 + $0x1d8] sm:$0xff]  }
  0x18   : > { %2511 = vmatpush3.bf16.msra.mxu0 %v2758_v14  ;;  %v310_v40 = vshll.u32 %v2117_v34, 16  ;;  %v298_v43 = vshll.u32 %v3112_v36, 16  ;;  %v307_v45 = vrot.slane %v305_v39, 1  ;;  %v630_v57 = vrot.slane %v2117_v34, 1  ;;  %v2788_v59 = vld [vmem:[%s3520_s1 + $0x188] sm:$0xff]   ;;  %v2792_v0 = vld [vmem:[%s3520_s1 + $0x190] sm:$0xff]  }
  0x19   : > { %2533 = vmatpush3.bf16.msra.mxu1 %v2759_v15  ;;  %2512 = vmatprep.subr.bf16.mxu0 %v2760_v16  ;;  %v295_v47 = vrot.slane %v293_v42, 1  ;;  %v2786_v60 = vld [vmem:[%s3520_s1 + $0x108] sm:$0xff]   ;;  %v2790_v1 = vld [vmem:[%s3520_s1 + $0x110] sm:$0xff]   ;;  %v2796_v4 = vld [vmem:[%s3520_s1 + $0x198] sm:$0xff]   ;;  %s2077_s23 = sshll.u32 %s194_s22, 1 }
  0x1a   : > { %2534 = vmatprep.subr.bf16.mxu1 %v2761_v17  ;;  %v312_v46 = vrot.slane %v310_v40, 1  ;;  %v300_v48 = vrot.slane %v298_v43, 1  ;;  %v308_v51 = vor.u32 %v307_v45, %v303_v38  ;;  %v631_v61 = vsel %vm625_vm1, %v629_v54, %v630_v57  ;;  %v2794_v5 = vld [vmem:[%s3520_s1 + $0x118] sm:$0xff]   ;;  %v2797_v6 = vld [vmem:[%s3520_s1 + $0x160] sm:$0xff]   ;;  %v2801_v10 = vld [vmem:[%s3520_s1 + $0x168] sm:$0xff]   ;;  %s197_s25 = sadd.s32 %s2078_s24, %s2077_s23 }
  0x1b   : > { %v296_v52 = vor.u32 %v295_v47, %v291_v41  ;;  %v2799_v7 = vld [vmem:[%s3520_s1 + $0x1e0] sm:$0xff]   ;;  %v2803_v11 = vld [vmem:[%s3520_s1 + $0x1e8] sm:$0xff]   ;;  %v2805_v14 = vld [vmem:[%s3520_s1 + $0x170] sm:$0xff]   ;;  %s2079_s26 = sshll.u32 %s197_s25, 3 }
  0x1c   : > { %2513 = vmatpush3.bf16.msra.mxu0 %v2762_v18  ;;  %v313_v55 = vsel %vm289_vm0, %v308_v51, %v312_v46  ;;  %v2800_v8 = vld [vmem:[%s3520_s1 + $0x1a0] sm:$0xff]   ;;  %v2804_v12 = vld [vmem:[%s3520_s1 + $0x1a8] sm:$0xff]   ;;  %v2807_v15 = vld [vmem:[%s3520_s1 + $0x1f0] sm:$0xff]   ;;  %s199_s29 = scalar_lea.vmem %s3521_s2, %s2079_s26 }
  0x1d   : > { %2535 = vmatpush3.bf16.msra.mxu1 %v2763_v19  ;;  %2514 = vmatprep.subr.bf16.mxu0 %v2764_v20  ;;  %v301_v58 = vsel %vm289_vm0, %v296_v52, %v300_v48  ;;  %v2798_v9 = vld [vmem:[%s3520_s1 + $0x120] sm:$0xff]   ;;  %v2802_v13 = vld [vmem:[%s3520_s1 + $0x128] sm:$0xff]   ;;  %v2808_v16 = vld [vmem:[%s3520_s1 + $0x1b0] sm:$0xff]  }
  0x1e   : > { %2536 = vmatprep.subr.bf16.mxu1 %v2765_v21  ;;  %444 = vmatprep.mubr.bf16.mxu0 %v313_v55  ;;  %v2806_v17 = vld [vmem:[%s3520_s1 + $0x130] sm:$0xff]   ;;  %v2809_v18 = vld [vmem:[%s3520_s1 + $0x178] sm:$0xff]   ;;  %v2822_v32 = vld [vmem:[%s3520_s1 + $0x2c8] sm:$0xff]  }
  0x1f   : > { %v2811_v19 = vld [vmem:[%s3520_s1 + $0x1f8] sm:$0xff]   ;;  %v2823_v33 = vld [vmem:[%s3520_s1 + $0x288] sm:$0xff]   ;;  %v2825_v38 = vld [vmem:[%s3520_s1 + $0x210] sm:$0xff]  }
  0x20   : > { %2515 = vmatpush3.bf16.msra.mxu0 %v2766_v22  ;;  %v2812_v20 = vld [vmem:[%s3520_s1 + $0x1b8] sm:$0xff]   ;;  %v626_v22 = vrot.slane %v3110_v35, 1  ;;  %v2821_v34 = vld [vmem:[%s3520_s1 + $0x208] sm:$0xff]   ;;  %v2832_v43 = vld [vmem:[%s3520_s1 + $0x260] sm:$0xff]  }
  0x21   : > { %2537 = vmatpush3.bf16.msra.mxu1 %v2767_v23  ;;  %2516 = vmatprep.subr.bf16.mxu0 %v2768_v24  ;;  %v2810_v21 = vld [vmem:[%s3520_s1 + $0x138] sm:$0xff]   ;;  %v627_v23 = vrot.slane %v3112_v36, 1  ;;  %v2826_v36 = vld [vmem:[%s3520_s1 + $0x2d0] sm:$0xff]   ;;  %v2835_v45 = vld [vmem:[%s3520_s1 + $0x2a0] sm:$0xff]  }
  0x22   : > { %2538 = vmatprep.subr.bf16.mxu1 %v2769_v25  ;;  %v3220_v24 = vld [vmem:[%s3099_s4 + $0x1c] ss:$8 sps:$4 sm:$0xff]   ;;  %v2836_v47 = vld [vmem:[%s3520_s1 + $0x268] sm:$0xff]   ;;  %v2840_v52 = vld [vmem:[%s3520_s1 + $0x270] sm:$0xff]  }
  0x23   : > { %v2813_v25 = vld [vmem:[%s3520_s1 + $0x240] sm:$0xff]   ;;  %v2828_v39 = vld [vmem:[%s3520_s1 + $0x258] sm:$0xff]   ;;  %v2838_v48 = vld [vmem:[%s3520_s1 + $0x2e8] sm:$0xff]   ;;  %v1015_v51 = vshll.u32 %v3220_v24, 16  ;;  %v1013_v55 = vshrl.u32 %v3220_v24, 16 }
  0x24   : > { %2517 = vmatpush3.bf16.msra.mxu0 %v2770_v26  ;;  %v3226_v26 = vld [vmem:[%s3099_s4 + $0x18] ss:$8 sps:$4 sm:$0xff]   ;;  %v2842_v54 = vld [vmem:[%s3520_s1 + $0x2f0] sm:$0xff]  }
  0x25   : > { %2539 = vmatpush3.bf16.msra.mxu1 %v2771_v27  ;;  %2518 = vmatprep.subr.bf16.mxu0 %v2772_v28  ;;  %v2818_v27 = vld [vmem:[%s3520_s1 + $0x2c0] sm:$0xff]   ;;  %v2830_v40 = vld [vmem:[%s3520_s1 + $0x2d8] sm:$0xff]   ;;  %v1001_v57 = vshrl.u32 %v3226_v26, 16 }
  0x26   : > { %2540 = vmatprep.subr.bf16.mxu1 %v2773_v29  ;;  %v2819_v28 = vld [vmem:[%s3520_s1 + $0x280] sm:$0xff]   ;;  %v628_v29 = vsel %vm625_vm1, %v626_v22, %v627_v23  ;;  %v2831_v41 = vld [vmem:[%s3520_s1 + $0x298] sm:$0xff]   ;;  %v2854_v22 = vld [vmem:[%s3520_s1 + $0x348] sm:$0xff]  }
  0x27   : > { %v2829_v42 = vld [vmem:[%s3520_s1 + $0x218] sm:$0xff]   ;;  %v2833_v46 = vld [vmem:[%s3520_s1 + $0x220] sm:$0xff]   ;;  %v2856_v23 = vld [vmem:[%s3520_s1 + $0x3c8] sm:$0xff]  }
  0x28   : > { %2519 = vmatpush3.bf16.msra.mxu0 %v2774_v30  ;;  %v2816_v30 = vld [vmem:[%s3520_s1 + $0x200] sm:$0xff]  }
  0x29   : > { %2541 = vmatpush3.bf16.msra.mxu1 %v2775_v31  ;;  %2548 = vmatprep.subr.bf16.mxu0 %v2781_v37  ;;  %v2820_v31 = vld [vmem:[%s3520_s1 + $0x248] sm:$0xff]   ;;  %v2827_v37 = vld [vmem:[%s3520_s1 + $0x290] sm:$0xff]  }
  0x2a   : > { %2570 = vmatprep.subr.bf16.mxu1 %v2783_v44  ;;  %v2834_v44 = vld [vmem:[%s3520_s1 + $0x2e0] sm:$0xff]  }
  0x2b   : > { %445 = vmatmul.mubr.bf16.vlgmr.msra.gmra.mrb[0].mxu0 %v301_v58  ;;  %v2841_v58 = vld [vmem:[%s3520_s1 + $0x230] sm:$0xff]  }
  0x2c   : > { %584 = vmatmul.mubr.bf16.vlgmr.msra.gmra.mrb[0].mxu1 %v3110_v35  ;;  %2549 = vmatpush3.bf16.msra.mxu0 %v2782_v49  ;;  %v2824_v35 = vld [vmem:[%s3520_s1 + $0x250] sm:$0xff]   ;;  %v2839_v49 = vld [vmem:[%s3520_s1 + $0x2a8] sm:$0xff]  }
  0x2d   : > { %2571 = vmatpush3.bf16.msra.mxu1 %v2784_v50  ;;  %2550 = vmatprep.subr.bf16.mxu0 %v2785_v53  ;;  %v2837_v50 = vld [vmem:[%s3520_s1 + $0x228] sm:$0xff]   ;;  %v1003_v53 = vshll.u32 %v3226_v26, 16 }
  0x2e   : > { %2572 = vmatprep.subr.bf16.mxu1 %v2787_v56  ;;  %762 = vmatprep.mubr.bf16.mxu0 %v631_v61  ;;  %v2843_v56 = vld [vmem:[%s3520_s1 + $0x2b0] sm:$0xff]  }
  0x2f   : > { %951 = vmatprep.mubr.bf16.mxu1 %v3220_v24  ;;  %v1005_v61 = vrot.slane %v1003_v53, 1  ;;  %v2351_v53 = vld [vmem:[%s3099_s4 + $0x40] sm:$0x11] }
  0x30   : > { %2551 = vmatpush3.bf16.msra.mxu0 %v2786_v60  ;;  %v2844_v60 = vld [vmem:[%s3520_s1 + $0x278] sm:$0xff]  }
  0x31   : > { %2573 = vmatpush3.bf16.msra.mxu1 %v2788_v59  ;;  %2552 = vmatprep.subr.bf16.mxu0 %v2789_v62  ;;  %v1017_v59 = vrot.slane %v1015_v51, 1  ;;  %v2845_v62 = vld [vmem:[%s3520_s1 + $0x238] sm:$0xff]  }
  0x32   : > { %2574 = vmatprep.subr.bf16.mxu1 %v2791_v63  ;;  %v2846_v63 = vld [vmem:[%s3520_s1 + $0x2f8] sm:$0xff]  }
  0x33   : > { %v3433_v51 = vld [vmem:[%s3099_s4 + $0x30] ss:$8 sps:$4 sm:$0xff]  }
  0x34   : > { %2553 = vmatpush3.bf16.msra.mxu0 %v2790_v1  ;;  %v2200_v1 = vld [vmem:[%s3099_s4 + $0x28] sm:$0x11] }
  0x35   : > { %2575 = vmatpush3.bf16.msra.mxu1 %v2792_v0  ;;  %2554 = vmatprep.subr.bf16.mxu0 %v2793_v2  ;;  %v1201_v0 = vrot.slane %v3220_v24, 1  ;;  %v2284_v2 = vcombine.high %v2200_v1, %v2200_v1  ;;  %v2857_v24 = vld [vmem:[%s3520_s1 + $0x388] sm:$0xff]  }
  0x36   : > { %2576 = vmatprep.subr.bf16.mxu1 %v2795_v3  ;;  %v2848_v3 = vld [vmem:[%s3520_s1 + $0x2b8] sm:$0xff]  }
  0x38   : > { %2555 = vmatpush3.bf16.msra.mxu0 %v2794_v5  ;;  %v1198_v5 = vrot.slane %v3226_v26, 1 }
  0x39   : > { %2577 = vmatpush3.bf16.msra.mxu1 %v2796_v4  ;;  %2556 = vmatprep.subr.bf16.mxu0 %v2797_v6  ;;  %v2283_v4 = vcombine.low %v2200_v1, %v2200_v1  ;;  %v1018_v6 = vor.u32 %v1017_v59, %v1013_v55  ;;  %v1575_v59 = vshll.u32 %v3433_v51, 16  ;;  %v2889_v1 = vld [vmem:[%s3520_s1 + $0x448] sm:$0xff]  }
  0x3a   : > { %2578 = vmatprep.subr.bf16.mxu1 %v2799_v7  ;;  %v1006_v7 = vor.u32 %v1005_v61, %v1001_v57  ;;  %v2434_v57 = vcombine.low %v2351_v53, %v2351_v53  ;;  %v2887_v61 = vld [vmem:[%s3520_s1 + $0x400] sm:$0xff]  }
  0x3c   : > { %2557 = vmatpush3.bf16.msra.mxu0 %v2798_v9  ;;  %v1020_v9 = vshll.u32 %v2284_v2, 16 }
  0x3d   : > { %2579 = vmatpush3.bf16.msra.mxu1 %v2800_v8  ;;  %2558 = vmatprep.subr.bf16.mxu0 %v2801_v10  ;;  %v2850_v8 = vld [vmem:[%s3520_s1 + $0x340] sm:$0xff]   ;;  %v1008_v10 = vshll.u32 %v2283_v4, 16 }
  0x3e   : > { %2580 = vmatprep.subr.bf16.mxu1 %v2803_v11  ;;  %v1202_v11 = vrot.slane %v2284_v2, 1 }
  0x40   : > { %2559 = vmatpush3.bf16.msra.mxu0 %v2802_v13  ;;  %v2852_v13 = vld [vmem:[%s3520_s1 + $0x3c0] sm:$0xff]  }
  0x41   : > { %2581 = vmatpush3.bf16.msra.mxu1 %v2804_v12  ;;  %2560 = vmatprep.subr.bf16.mxu0 %v2805_v14  ;;  %v1199_v12 = vrot.slane %v2283_v4, 1  ;;  %v1022_v14 = vrot.slane %v1020_v9, 1 }
  0x42   : > { %2582 = vmatprep.subr.bf16.mxu1 %v2807_v15  ;;  %v1010_v15 = vrot.slane %v1008_v10, 1 }
  0x44   : > { %2561 = vmatpush3.bf16.msra.mxu0 %v2806_v17  ;;  %v2851_v17 = vld [vmem:[%s3520_s1 + $0x300] sm:$0xff]  }
  0x45   : > { %2583 = vmatpush3.bf16.msra.mxu1 %v2808_v16  ;;  %2562 = vmatprep.subr.bf16.mxu0 %v2809_v18  ;;  %v1203_v16 = vsel %vm625_vm1, %v1201_v0, %v1202_v11  ;;  %v1200_v18 = vsel %vm625_vm1, %v1198_v5, %v1199_v12  ;;  %v1580_v0 = vshll.u32 %v2434_v57, 16  ;;  %v2891_v11 = vld [vmem:[%s3520_s1 + $0x450] sm:$0xff]  }
  0x46   : > { %2584 = vmatprep.subr.bf16.mxu1 %v2811_v19  ;;  %v2853_v19 = vld [vmem:[%s3520_s1 + $0x380] sm:$0xff]  }
  0x48   : > { %2563 = vmatpush3.bf16.msra.mxu0 %v2810_v21  ;;  %v1011_v21 = vsel %vm289_vm0, %v1006_v7, %v1010_v15  ;;  %v2890_v7 = vld [vmem:[%s3520_s1 + $0x408] sm:$0xff]   ;;  %v2894_v15 = vld [vmem:[%s3520_s1 + $0x418] sm:$0xff]  }
  0x49   : > { %2585 = vmatpush3.bf16.msra.mxu1 %v2812_v20  ;;  %2592 = vmatprep.subr.bf16.mxu0 %v2813_v25  ;;  %v1023_v20 = vsel %vm289_vm0, %v1018_v6, %v1022_v14  ;;  %v2855_v25 = vld [vmem:[%s3520_s1 + $0x308] sm:$0xff]   ;;  %v1582_v6 = vrot.slane %v1580_v0, 1  ;;  %v2893_v14 = vld [vmem:[%s3520_s1 + $0x458] sm:$0xff]  }
  0x4a   : > { %2614 = vmatprep.subr.bf16.mxu1 %v2818_v27  ;;  %v2860_v27 = vld [vmem:[%s3520_s1 + $0x3d0] sm:$0xff]  }
  0x4b   : > { %763 = vmatmul.mubr.bf16.vlgmr.msra.gmra.mrb[4].mxu0 %v628_v29  ;;  %v2859_v29 = vld [vmem:[%s3520_s1 + $0x310] sm:$0xff]  }
  0x4c   : > { %952 = vmatmul.mubr.bf16.vlgmr.msra.gmra.mrb[4].mxu1 %v3226_v26  ;;  %2593 = vmatpush3.bf16.msra.mxu0 %v2816_v30  ;;  %v2858_v26 = vld [vmem:[%s3520_s1 + $0x350] sm:$0xff]   ;;  %v2862_v30 = vld [vmem:[%s3520_s1 + $0x358] sm:$0xff]  }
  0x4d   : > { %2615 = vmatpush3.bf16.msra.mxu1 %v2819_v28  ;;  %2594 = vmatprep.subr.bf16.mxu0 %v2820_v31  ;;  %v2861_v28 = vld [vmem:[%s3520_s1 + $0x390] sm:$0xff]   ;;  %v2864_v31 = vld [vmem:[%s3520_s1 + $0x3d8] sm:$0xff]  }
  0x4e   : > { %2616 = vmatprep.subr.bf16.mxu1 %v2822_v32  ;;  %1334 = vmatprep.mubr.bf16.mxu1 %v1203_v16  ;;  %v2865_v32 = vld [vmem:[%s3520_s1 + $0x398] sm:$0xff]   ;;  %v2895_v16 = vld [vmem:[%s3520_s1 + $0x460] sm:$0xff]  }
  0x4f   : > { %1154 = vmatprep.mubr.bf16.mxu0 %v1023_v20  ;;  %v2899_v20 = vld [vmem:[%s3520_s1 + $0x470] sm:$0xff]  }
  0x50   : > { %2595 = vmatpush3.bf16.msra.mxu0 %v2821_v34  ;;  %v2866_v34 = vld [vmem:[%s3520_s1 + $0x360] sm:$0xff]  }
  0x51   : > { %2617 = vmatpush3.bf16.msra.mxu1 %v2823_v33  ;;  %2596 = vmatprep.subr.bf16.mxu0 %v2824_v35  ;;  %v2863_v33 = vld [vmem:[%s3520_s1 + $0x318] sm:$0xff]   ;;  %v2868_v35 = vld [vmem:[%s3520_s1 + $0x3e0] sm:$0xff]  }
  0x52   : > { %2618 = vmatprep.subr.bf16.mxu1 %v2826_v36  ;;  %v2869_v36 = vld [vmem:[%s3520_s1 + $0x3a0] sm:$0xff]  }
  0x54   : > { %2597 = vmatpush3.bf16.msra.mxu0 %v2825_v38  ;;  %v2870_v38 = vld [vmem:[%s3520_s1 + $0x368] sm:$0xff]  }
  0x55   : > { %2619 = vmatpush3.bf16.msra.mxu1 %v2827_v37  ;;  %2598 = vmatprep.subr.bf16.mxu0 %v2828_v39  ;;  %v2867_v37 = vld [vmem:[%s3520_s1 + $0x320] sm:$0xff]   ;;  %v2872_v39 = vld [vmem:[%s3520_s1 + $0x3e8] sm:$0xff]  }
  0x56   : > { %2620 = vmatprep.subr.bf16.mxu1 %v2830_v40  ;;  %v2873_v40 = vld [vmem:[%s3520_s1 + $0x3a8] sm:$0xff]  }
  0x58   : > { %2599 = vmatpush3.bf16.msra.mxu0 %v2829_v42  ;;  %v2874_v42 = vld [vmem:[%s3520_s1 + $0x370] sm:$0xff]  }
  0x59   : > { %2621 = vmatpush3.bf16.msra.mxu1 %v2831_v41  ;;  %2600 = vmatprep.subr.bf16.mxu0 %v2832_v43  ;;  %v2871_v41 = vld [vmem:[%s3520_s1 + $0x328] sm:$0xff]   ;;  %v2876_v43 = vld [vmem:[%s3520_s1 + $0x3f0] sm:$0xff]  }
  0x5a   : > { %2622 = vmatprep.subr.bf16.mxu1 %v2834_v44  ;;  %v2877_v44 = vld [vmem:[%s3520_s1 + $0x3b0] sm:$0xff]  }
  0x5c   : > { %2601 = vmatpush3.bf16.msra.mxu0 %v2833_v46  ;;  %v2878_v46 = vld [vmem:[%s3520_s1 + $0x378] sm:$0xff]  }
  0x5d   : > { %2623 = vmatpush3.bf16.msra.mxu1 %v2835_v45  ;;  %2602 = vmatprep.subr.bf16.mxu0 %v2836_v47  ;;  %v2875_v45 = vld [vmem:[%s3520_s1 + $0x330] sm:$0xff]   ;;  %v2879_v47 = vld [vmem:[%s3520_s1 + $0x338] sm:$0xff]  }
  0x5e   : > { %2624 = vmatprep.subr.bf16.mxu1 %v2838_v48  ;;  %v2880_v48 = vld [vmem:[%s3520_s1 + $0x3f8] sm:$0xff]  }
  0x60   : > { %2603 = vmatpush3.bf16.msra.mxu0 %v2837_v50  ;;  %v2883_v50 = vld [vmem:[%s3520_s1 + $0x3b8] sm:$0xff]  }
  0x61   : > { %2625 = vmatpush3.bf16.msra.mxu1 %v2839_v49  ;;  %2604 = vmatprep.subr.bf16.mxu0 %v2840_v52  ;;  %v2881_v49 = vld [vmem:[%s3099_s4 + $0x34] ss:$8 sps:$4 sm:$0xff]   ;;  %v2885_v52 = vld [vmem:[%s3520_s1 + $0x440] sm:$0xff]  }
  0x62   : > { %2626 = vmatprep.subr.bf16.mxu1 %v2842_v54  ;;  %v1585_v54 = vshrl.u32 %v2881_v49, 16  ;;  %v1587_v55 = vshll.u32 %v2881_v49, 16 }
  0x64   : > { %2605 = vmatpush3.bf16.msra.mxu0 %v2841_v58  ;;  %v1573_v58 = vshrl.u32 %v3433_v51, 16 }
  0x65   : > { %2627 = vmatpush3.bf16.msra.mxu1 %v2843_v56  ;;  %2606 = vmatprep.subr.bf16.mxu0 %v2844_v60  ;;  %v2435_v56 = vcombine.high %v2351_v53, %v2351_v53  ;;  %v1589_v60 = vrot.slane %v1587_v55, 1 }
  0x66   : > { %2628 = vmatprep.subr.bf16.mxu1 %v2846_v63  ;;  %v1577_v63 = vrot.slane %v1575_v59, 1 }
  0x67   : > { %v1590_v2 = vor.u32 %v1589_v60, %v1585_v54 }
  0x68   : > { %2607 = vmatpush3.bf16.msra.mxu0 %v2845_v62  ;;  %v1592_v62 = vshll.u32 %v2435_v56, 16  ;;  %v1578_v5 = vor.u32 %v1577_v63, %v1573_v58 }
  0x69   : > { %2629 = vmatpush3.bf16.msra.mxu1 %v2848_v3  ;;  %2636 = vmatprep.subr.bf16.mxu0 %v2850_v8  ;;  %v1773_v3 = vrot.slane %v2881_v49, 1  ;;  %v1774_v8 = vrot.slane %v2435_v56, 1 }
  0x6a   : > { %2658 = vmatprep.subr.bf16.mxu1 %v2852_v13  ;;  %v1594_v4 = vrot.slane %v1592_v62, 1  ;;  %v1583_v10 = vsel %vm289_vm0, %v1578_v5, %v1582_v6  ;;  %v2892_v13 = vld [vmem:[%s3520_s1 + $0x410] sm:$0xff]  }
  0x6b   : > { %1155 = vmatmul.mubr.bf16.vlgmr.msra.gmra.mrb[8].mxu0 %v1011_v21  ;;  %v1775_v12 = vsel %vm625_vm1, %v1773_v3, %v1774_v8  ;;  %v2900_v21 = vld [vmem:[%s3520_s1 + $0x430] sm:$0xff]  }
  0x6c   : > { %1335 = vmatmul.mubr.bf16.vlgmr.msra.gmra.mrb[8].mxu1 %v1200_v18  ;;  %2637 = vmatpush3.bf16.msra.mxu0 %v2851_v17  ;;  %v1595_v9 = vsel %vm289_vm0, %v1590_v2, %v1594_v4  ;;  %v2896_v17 = vld [vmem:[%s3520_s1 + $0x420] sm:$0xff]   ;;  %v2897_v18 = vld [vmem:[%s3520_s1 + $0x468] sm:$0xff]  }
  0x6d   : > { %2659 = vmatpush3.bf16.msra.mxu1 %v2853_v19  ;;  %2638 = vmatprep.subr.bf16.mxu0 %v2854_v22  ;;  %v2898_v19 = vld [vmem:[%s3520_s1 + $0x428] sm:$0xff]   ;;  %v2901_v22 = vld [vmem:[%s3520_s1 + $0x478] sm:$0xff]  }
  0x6e   : > { %2660 = vmatprep.subr.bf16.mxu1 %v2856_v23  ;;  %1523 = vmatprep.mubr.bf16.mxu0 %v2881_v49  ;;  %v2902_v23 = vld [vmem:[%s3520_s1 + $0x438] sm:$0xff]  }
  0x6f   : > { %1726 = vmatprep.mubr.bf16.mxu1 %v1595_v9 }
  0x70   : > { %2639 = vmatpush3.bf16.msra.mxu0 %v2855_v25  ;;  %v1771_v25 = vrot.slane %v2434_v57, 1 }
  0x71   : > { %2661 = vmatpush3.bf16.msra.mxu1 %v2857_v24  ;;  %2640 = vmatprep.subr.bf16.mxu0 %v2858_v26  ;;  %v1770_v24 = vrot.slane %v3433_v51, 1 }
  0x72   : > { %2662 = vmatprep.subr.bf16.mxu1 %v2860_v27 }
  0x73   : > { %v1772_v26 = vsel %vm625_vm1, %v1770_v24, %v1771_v25 }
  0x74   : > { %2641 = vmatpush3.bf16.msra.mxu0 %v2859_v29 }
  0x75   : > { %2663 = vmatpush3.bf16.msra.mxu1 %v2861_v28  ;;  %2642 = vmatprep.subr.bf16.mxu0 %v2862_v30 }
  0x76   : > { %2664 = vmatprep.subr.bf16.mxu1 %v2864_v31 }
  0x78   : > { %2643 = vmatpush3.bf16.msra.mxu0 %v2863_v33 }
  0x79   : > { %2665 = vmatpush3.bf16.msra.mxu1 %v2865_v32  ;;  %2644 = vmatprep.subr.bf16.mxu0 %v2866_v34 }
  0x7a   : > { %2666 = vmatprep.subr.bf16.mxu1 %v2868_v35 }
  0x7c   : > { %2645 = vmatpush3.bf16.msra.mxu0 %v2867_v37 }
  0x7d   : > { %2667 = vmatpush3.bf16.msra.mxu1 %v2869_v36  ;;  %2646 = vmatprep.subr.bf16.mxu0 %v2870_v38 }
  0x7e   : > { %2668 = vmatprep.subr.bf16.mxu1 %v2872_v39 }
  0x80   : > { %2647 = vmatpush3.bf16.msra.mxu0 %v2871_v41 }
  0x81   : > { %2669 = vmatpush3.bf16.msra.mxu1 %v2873_v40  ;;  %2648 = vmatprep.subr.bf16.mxu0 %v2874_v42 }
  0x82   : > { %2670 = vmatprep.subr.bf16.mxu1 %v2876_v43 }
  0x84   : > { %2649 = vmatpush3.bf16.msra.mxu0 %v2875_v45 }
  0x85   : > { %2671 = vmatpush3.bf16.msra.mxu1 %v2877_v44  ;;  %2650 = vmatprep.subr.bf16.mxu0 %v2878_v46 }
  0x86   : > { %2672 = vmatprep.subr.bf16.mxu1 %v2880_v48 }
  0x88   : > { %2651 = vmatpush3.bf16.msra.mxu0 %v2879_v47 }
  0x89   : > { %2673 = vmatpush3.bf16.msra.mxu1 %v2883_v50  ;;  %2680 = vmatprep.subr.bf16.mxu0 %v2885_v52 }
  0x8b   : > { %1524 = vmatmul.mubr.bf16.vlgmr.msra.gmra.mrb[12].mxu0 %v3433_v51 }
  0x8c   : > { %2681 = vmatpush3.bf16.msra.mxu0 %v2887_v61  ;;  %1727 = vmatmul.mubr.bf16.vlgmr.msra.gmra.mrb[12].mxu1 %v1583_v10 }
  0x8d   : > { %2682 = vmatprep.subr.bf16.mxu0 %v2889_v1  ;;  %1906 = vmatprep.mubr.bf16.mxu0 %v1775_v12 }
  0x90   : > { %2683 = vmatpush3.bf16.msra.mxu0 %v2890_v7 }
  0x91   : > { %2684 = vmatprep.subr.bf16.mxu0 %v2891_v11 }
  0x94   : > { %2685 = vmatpush3.bf16.msra.mxu0 %v2892_v13 }
  0x95   : > { %2686 = vmatprep.subr.bf16.mxu0 %v2893_v14 }
  0x98   : > { %2687 = vmatpush3.bf16.msra.mxu0 %v2894_v15 }
  0x99   : > { %2688 = vmatprep.subr.bf16.mxu0 %v2895_v16 }
  0x9c   : > { %2689 = vmatpush3.bf16.msra.mxu0 %v2896_v17 }
  0x9d   : > { %2690 = vmatprep.subr.bf16.mxu0 %v2897_v18 }
  0xa0   : > { %2691 = vmatpush3.bf16.msra.mxu0 %v2898_v19 }
  0xa1   : > { %2692 = vmatprep.subr.bf16.mxu0 %v2899_v20 }
  0xa4   : > { %2693 = vmatpush3.bf16.msra.mxu0 %v2900_v21 }
  0xa5   : > { %2694 = vmatprep.subr.bf16.mxu0 %v2901_v22 }
  0xa8   : > { %2695 = vmatpush3.bf16.msra.mxu0 %v2902_v23 }
  0xab   : > { %1907 = vmatmul.mubr.bf16.vlgmr.msra.gmra.mrb[16].mxu0 %v1772_v26 }
  0xfe   : > { %v2520_v33 = vpop.f32.mrb[0].mxu0 }
  0xff   : > { %v2542_v27 = vpop.f32.mrb[0].mxu1  ;;  %v2521_v34 = vpop.f32.mrb[1].mxu0 }
 0x100   : > { %v2543_v28 = vpop.f32.mrb[1].mxu1  ;;  %v2522_v35 = vadd.f32 %v2521_v34, %v2520_v33  ;;  %v2523_v36 = vpop.f32.mrb[2].mxu0  ;;  %v2943_v33 = vmov (!%p2500_p7), 0.0  }
 0x101   : > { %v2544_v29 = vadd.f32 %v2543_v28, %v2542_v27  ;;  %v2545_v30 = vpop.f32.mrb[2].mxu1  ;;  %v2524_v37 = vpop.f32.mrb[3].mxu0  ;;  %1923 = vst [vmem:[%s3023_s9] sm:$0xff] (!%p2500_p7), %v2943_v33 }
 0x102   : > { %v2546_v31 = vpop.f32.mrb[3].mxu1  ;;  %v2525_v39 = vadd.f32 %v2524_v37, %v2523_v36 }
 0x103   : > { %v2547_v32 = vadd.f32 %v2546_v31, %v2545_v30  ;;  %v586_v38 = vadd.f32 %v2544_v29, %v2522_v35 }
 0x105   : > { %v589_v40 = vadd.f32 %v2547_v32, %v2525_v39 }
 0x11e   : > { %v2564_v46 = vpop.f32.mrb[4].mxu0 }
 0x11f   : > { %v2586_v41 = vpop.f32.mrb[4].mxu1  ;;  %v2565_v48 = vpop.f32.mrb[5].mxu0 }
 0x120   : > { %v2587_v42 = vpop.f32.mrb[5].mxu1  ;;  %v2566_v49 = vadd.f32 %v2565_v48, %v2564_v46  ;;  %v2567_v50 = vpop.f32.mrb[6].mxu0 }
 0x121   : > { %v2588_v43 = vadd.f32 %v2587_v42, %v2586_v41  ;;  %v2589_v44 = vpop.f32.mrb[6].mxu1  ;;  %v2568_v51 = vpop.f32.mrb[7].mxu0 }
 0x122   : > { %v2590_v45 = vpop.f32.mrb[7].mxu1  ;;  %v771_v52 = vadd.f32 %v2566_v49, %v586_v38  ;;  %v2569_v53 = vadd.f32 %v2568_v51, %v2567_v50 }
 0x123   : > { %v2591_v47 = vadd.f32 %v2590_v45, %v2589_v44 }
 0x124   : > { %v772_v54 = vadd.f32 %v2569_v53, %v589_v40  ;;  %v960_v55 = vadd.f32 %v2588_v43, %v771_v52 }
 0x126   : > { %v961_v56 = vadd.f32 %v2591_v47, %v772_v54 }
 0x13e   : > { %v2608_v59 = vpop.f32.mrb[8].mxu0 }
 0x13f   : > { %v2630_v57 = vpop.f32.mrb[8].mxu1  ;;  %v2609_v62 = vpop.f32.mrb[9].mxu0 }
 0x140   : > { %v2631_v58 = vpop.f32.mrb[9].mxu1  ;;  %v2610_v0 = vadd.f32 %v2609_v62, %v2608_v59  ;;  %v2611_v1 = vpop.f32.mrb[10].mxu0 }
 0x141   : > { %v2632_v60 = vadd.f32 %v2631_v58, %v2630_v57  ;;  %v2633_v61 = vpop.f32.mrb[10].mxu1  ;;  %v2612_v3 = vpop.f32.mrb[11].mxu0 }
 0x142   : > { %v2634_v63 = vpop.f32.mrb[11].mxu1  ;;  %v1163_v4 = vadd.f32 %v2610_v0, %v960_v55  ;;  %v2613_v5 = vadd.f32 %v2612_v3, %v2611_v1 }
 0x143   : > { %v2635_v2 = vadd.f32 %v2634_v63, %v2633_v61 }
 0x144   : > { %v1164_v6 = vadd.f32 %v2613_v5, %v961_v56  ;;  %v1343_v7 = vadd.f32 %v2632_v60, %v1163_v4 }
 0x146   : > { %v1344_v8 = vadd.f32 %v2635_v2, %v1164_v6 }
 0x15e   : > { %v2652_v9 = vpop.f32.mrb[12].mxu0 }
 0x15f   : > { %v2653_v10 = vpop.f32.mrb[13].mxu0  ;;  %v2674_v15 = vpop.f32.mrb[12].mxu1 }
 0x160   : > { %v2654_v11 = vadd.f32 %v2653_v10, %v2652_v9  ;;  %v2655_v12 = vpop.f32.mrb[14].mxu0  ;;  %v2675_v17 = vpop.f32.mrb[13].mxu1 }
 0x161   : > { %v2656_v13 = vpop.f32.mrb[15].mxu0  ;;  %v2676_v19 = vadd.f32 %v2675_v17, %v2674_v15  ;;  %v2677_v20 = vpop.f32.mrb[14].mxu1 }
 0x162   : > { %v1532_v14 = vadd.f32 %v2654_v11, %v1343_v7  ;;  %v2657_v16 = vadd.f32 %v2656_v13, %v2655_v12  ;;  %v2678_v21 = vpop.f32.mrb[15].mxu1 }
 0x163   : > { %v2679_v23 = vadd.f32 %v2678_v21, %v2677_v20 }
 0x164   : > { %v1533_v18 = vadd.f32 %v2657_v16, %v1344_v8  ;;  %v1735_v22 = vadd.f32 %v2676_v19, %v1532_v14 }
 0x166   : > { %v1736_v24 = vadd.f32 %v2679_v23, %v1533_v18 }
 0x17e   : > { %v2696_v25 = vpop.f32.mrb[16].mxu0 }
 0x17f   : > { %v2697_v26 = vpop.f32.mrb[17].mxu0 }
 0x180   : > { %v2698_v27 = vadd.f32 %v2697_v26, %v2696_v25  ;;  %v2699_v28 = vpop.f32.mrb[18].mxu0  ;;  %1922 = sbr.rel (%p2500_p7) target bundleno = 391 (0x187), region = 32 }
 0x181   : > { %v2700_v29 = vpop.f32.mrb[19].mxu0 }
 0x182   : > { %v1915_v30 = vadd.f32 %v2698_v27, %v1735_v22  ;;  %v2701_v31 = vadd.f32 %v2700_v29, %v2699_v28 }
 0x184   : > { %1917 = vst [vmem:[%s199_s29] sm:$0xff] %v1915_v30  ;;  %v1916_v32 = vadd.f32 %v2701_v31, %v1736_v24 }
 0x186   : > { %1918 = vst [vmem:[%s199_s29 + $0x8] sm:$0xff] %v1916_v32 }
 0x187 PF: > { %v1924_v34 = vadd.f32 %v1916_v32, %v1915_v30  ;;  %v1931_v35 = vmul.f32 %v1915_v30, %v1915_v30  ;;  %v1932_v36 = vmul.f32 %v1916_v32, %v1916_v32  ;;  %v1940_v47 = vld [vmem:[%s3023_s9] sm:$0x1]  ;;  %v1943_v50 = vld [vmem:[%s3023_s9 + $0x1] sm:$0x1] }
 0x189   : > { %v1925_v37 = vrot.slane %v1924_v34, 4  ;;  %v1933_v38 = vadd.f32 %v1932_v36, %v1931_v35 }
 0x18b   : > { %v1926_v39 = vadd.f32 %v1925_v37, %v1924_v34  ;;  %v1934_v40 = vrot.slane %v1933_v38, 4 }
 0x18d   : > { %v1927_v41 = vrot.slane %v1926_v39, 2  ;;  %v1935_v42 = vadd.f32 %v1934_v40, %v1933_v38 }
 0x18f   : > { %v1928_v43 = vadd.f32 %v1927_v41, %v1926_v39  ;;  %v1936_v44 = vrot.slane %v1935_v42, 2 }
 0x191   : > { %v1929_v45 = vrot.slane %v1928_v43, 1  ;;  %v1937_v46 = vadd.f32 %v1936_v44, %v1935_v42 }
 0x193   : > { %v1930_v48 = vadd.f32 %v1929_v45, %v1928_v43  ;;  %v1938_v49 = vrot.slane %v1937_v46, 1 }
 0x195   : > { %v1941_v51 = vadd.f32 %v1940_v47, %v1930_v48  ;;  %v1939_v52 = vadd.f32 %v1938_v49, %v1937_v46 }
 0x197   : > { %1942 = vst [vmem:[%s3023_s9] sm:$0x1] %v1941_v51  ;;  %v1944_v53 = vadd.f32 %v1943_v50, %v1939_v52 }
 0x199   : > { %1945 = vst [vmem:[%s3023_s9 + $0x1] sm:$0x1] %v1944_v53 }
 0x19a PF: > { %s14_s16 = sadd.s32 1, %s2941_s16   ;;  %s3523_s12 = smov %s2933_s14 }
 0x19b   : > { %p11_p8 = scmp.ge.s32.totalorder %s14_s16, 34   ;;  %s3524_s13 = smov %s2937_s15 }
 0x19c   : > { %s3525_s14 = smov %s3528_s17  ;;  %s3526_s15 = smov %s3532_s18 }
 0x19d   :  { %13 = sbr.rel (!%p11_p8) target bundleno = 3 (0x3), region = 85 }

// kernel: up_forward.9
= control target key start
LH: loop header
LB: loop body
LE: loop exit
PB: predicated region body
PF: predicated region fallthrough
CT: control target
= control target key end

     0   :  { %s1375_s0 = inlined_call_operand.vmem [shape: f32[512,128], index: 0, kind: input, shape index: {}]   ;;  %s1376_s1 = inlined_call_operand.vmem [shape: f32[1,128], index: 1, kind: input, shape index: {}]   ;;  %s1377_s2 = inlined_call_operand.vmem [shape: f32[1,128], index: 2, kind: input, shape index: {}]   ;;  %s1378_s3 = inlined_call_operand.vmem [shape: bf16[512,128], index: 3, kind: output, shape index: {}]  }
   0x1   :  { %v14_v0 = vld [vmem:[%s1375_s0] sm:$0xff]  ;;  %v15_v1 = vld [vmem:[%s1375_s0 + $0x8] sm:$0xff]  ;;  %v16_v6 = vld [vmem:[%s1375_s0 + $0x10] sm:$0xff] }
   0x2   :  { %v958_v2 = vld [vmem:[%s1376_s1] ss:$0 sm:$0xff]  ;;  %v17_v7 = vld [vmem:[%s1375_s0 + $0x18] sm:$0xff]  ;;  %v19_v11 = vld [vmem:[%s1375_s0 + $0x28] sm:$0xff] }
   0x3   :  { %v85_v3 = vmul.f32 %v958_v2, %v14_v0  ;;  %v86_v4 = vmul.f32 %v958_v2, %v15_v1  ;;  %v965_v5 = vld [vmem:[%s1377_s2] ss:$0 sm:$0xff]  ;;  %v87_v8 = vmul.f32 %v958_v2, %v16_v6  ;;  %v88_v9 = vmul.f32 %v958_v2, %v17_v7  ;;  %v20_v12 = vld [vmem:[%s1375_s0 + $0x30] sm:$0xff]  ;;  %v21_v17 = vld [vmem:[%s1375_s0 + $0x38] sm:$0xff] }
   0x4   :  { %v18_v10 = vld [vmem:[%s1375_s0 + $0x20] sm:$0xff]  ;;  %v90_v16 = vmul.f32 %v958_v2, %v19_v11  ;;  %v91_v20 = vmul.f32 %v958_v2, %v20_v12  ;;  %v92_v21 = vmul.f32 %v958_v2, %v21_v17  ;;  %v23_v27 = vld [vmem:[%s1375_s0 + $0x48] sm:$0xff]  ;;  %v24_v32 = vld [vmem:[%s1375_s0 + $0x50] sm:$0xff] }
   0x5   :  { %v156_v13 = vadd.f32 %v965_v5, %v85_v3  ;;  %v157_v14 = vadd.f32 %v965_v5, %v86_v4  ;;  %v89_v15 = vmul.f32 %v958_v2, %v18_v10  ;;  %v158_v18 = vadd.f32 %v965_v5, %v87_v8  ;;  %v22_v22 = vld [vmem:[%s1375_s0 + $0x40] sm:$0xff]  ;;  %v25_v33 = vld [vmem:[%s1375_s0 + $0x58] sm:$0xff]  ;;  %v27_v39 = vld [vmem:[%s1375_s0 + $0x68] sm:$0xff] }
   0x6   :  { %v159_v19 = vadd.f32 %v965_v5, %v88_v9  ;;  %v161_v26 = vadd.f32 %v965_v5, %v90_v16  ;;  %v162_v30 = vadd.f32 %v965_v5, %v91_v20  ;;  %v163_v31 = vadd.f32 %v965_v5, %v92_v21  ;;  %v26_v38 = vld [vmem:[%s1375_s0 + $0x60] sm:$0xff]  ;;  %v28_v44 = vld [vmem:[%s1375_s0 + $0x70] sm:$0xff]  ;;  %v29_v49 = vld [vmem:[%s1375_s0 + $0x78] sm:$0xff] }
   0x7   :  { %v220_v23 = vmax.f32 %v156_v13, 0.0  ;;  %v221_v24 = vmax.f32 %v157_v14, 0.0  ;;  %v160_v25 = vadd.f32 %v965_v5, %v89_v15  ;;  %v222_v28 = vmax.f32 %v158_v18, 0.0  ;;  %v30_v54 = vld [vmem:[%s1375_s0 + $0x80] sm:$0xff]  ;;  %v31_v63 = vld [vmem:[%s1375_s0 + $0x88] sm:$0xff]  ;;  %v32_v6 = vld [vmem:[%s1375_s0 + $0x90] sm:$0xff] }
   0x8   :  { %v223_v29 = vmax.f32 %v159_v19, 0.0  ;;  %v225_v36 = vmax.f32 %v161_v26, 0.0  ;;  %v93_v37 = vmul.f32 %v958_v2, %v22_v22  ;;  %v226_v41 = vmax.f32 %v162_v30, 0.0  ;;  %v33_v7 = vld [vmem:[%s1375_s0 + $0x98] sm:$0xff]  ;;  %v34_v12 = vld [vmem:[%s1375_s0 + $0xa0] sm:$0xff]  ;;  %v35_v13 = vld [vmem:[%s1375_s0 + $0xa8] sm:$0xff] }
   0x9   :  { %v741_v34 = vpack.c.bf16 %v221_v24, %v220_v23  ;;  %v224_v35 = vmax.f32 %v160_v25, 0.0  ;;  %v227_v42 = vmax.f32 %v163_v31, 0.0  ;;  %v94_v43 = vmul.f32 %v958_v2, %v23_v27  ;;  %v36_v18 = vld [vmem:[%s1375_s0 + $0xb0] sm:$0xff]  ;;  %v37_v23 = vld [vmem:[%s1375_s0 + $0xb8] sm:$0xff] }
   0xa   :  { %v746_v40 = vpack.c.bf16 %v223_v29, %v222_v28  ;;  %v164_v46 = vadd.f32 %v965_v5, %v93_v37  ;;  %v95_v47 = vmul.f32 %v958_v2, %v24_v32  ;;  %v96_v48 = vmul.f32 %v958_v2, %v25_v33  ;;  %v38_v28 = vld [vmem:[%s1375_s0 + $0xc0] sm:$0xff]  ;;  %v39_v37 = vld [vmem:[%s1375_s0 + $0xc8] sm:$0xff] }
   0xb   :  { %742 = vst [vmem:[%s1378_s3] sm:$0xff] %v741_v34   ;;  %v751_v45 = vpack.c.bf16 %v225_v36, %v224_v35  ;;  %v756_v50 = vpack.c.bf16 %v227_v42, %v226_v41  ;;  %v165_v51 = vadd.f32 %v965_v5, %v94_v43  ;;  %v97_v52 = vmul.f32 %v958_v2, %v26_v38  ;;  %v40_v42 = vld [vmem:[%s1375_s0 + $0xd0] sm:$0xff]  ;;  %v41_v43 = vld [vmem:[%s1375_s0 + $0xd8] sm:$0xff] }
   0xc   :  { %898 = vst [vmem:[%s1378_s3 + $0x8] sm:$0xff] %v746_v40   ;;  %v98_v53 = vmul.f32 %v958_v2, %v27_v39  ;;  %v228_v55 = vmax.f32 %v164_v46, 0.0  ;;  %v166_v56 = vadd.f32 %v965_v5, %v95_v47  ;;  %v167_v57 = vadd.f32 %v965_v5, %v96_v48  ;;  %v42_v48 = vld [vmem:[%s1375_s0 + $0xe0] sm:$0xff] }
   0xd   :  { %899 = vst [vmem:[%s1378_s3 + $0x10] sm:$0xff] %v751_v45   ;;  %v99_v58 = vmul.f32 %v958_v2, %v28_v44  ;;  %900 = vst [vmem:[%s1378_s3 + $0x18] sm:$0xff] %v756_v50   ;;  %v229_v59 = vmax.f32 %v165_v51, 0.0  ;;  %v168_v60 = vadd.f32 %v965_v5, %v97_v52  ;;  %v100_v62 = vmul.f32 %v958_v2, %v29_v49  ;;  %v43_v49 = vld [vmem:[%s1375_s0 + $0xe8] sm:$0xff] }
   0xe   :  { %v169_v61 = vadd.f32 %v965_v5, %v98_v53  ;;  %v230_v0 = vmax.f32 %v166_v56, 0.0  ;;  %v231_v1 = vmax.f32 %v167_v57, 0.0  ;;  %v101_v4 = vmul.f32 %v958_v2, %v30_v54  ;;  %v44_v54 = vld [vmem:[%s1375_s0 + $0xf0] sm:$0xff] }
   0xf   :  { %v170_v3 = vadd.f32 %v965_v5, %v99_v58  ;;  %v761_v8 = vpack.c.bf16 %v229_v59, %v228_v55  ;;  %v232_v9 = vmax.f32 %v168_v60, 0.0  ;;  %v171_v11 = vadd.f32 %v965_v5, %v100_v62  ;;  %v45_v59 = vld [vmem:[%s1375_s0 + $0xf8] sm:$0xff] }
  0x10   :  { %v233_v10 = vmax.f32 %v169_v61, 0.0  ;;  %v766_v14 = vpack.c.bf16 %v231_v1, %v230_v0  ;;  %v102_v16 = vmul.f32 %v958_v2, %v31_v63  ;;  %v172_v17 = vadd.f32 %v965_v5, %v101_v4  ;;  %v46_v0 = vld [vmem:[%s1375_s0 + $0x100] sm:$0xff] }
  0x11   :  { %v234_v15 = vmax.f32 %v170_v3, 0.0  ;;  %901 = vst [vmem:[%s1378_s3 + $0x20] sm:$0xff] %v761_v8   ;;  %v235_v20 = vmax.f32 %v171_v11, 0.0  ;;  %v103_v21 = vmul.f32 %v958_v2, %v32_v6  ;;  %v104_v22 = vmul.f32 %v958_v2, %v33_v7  ;;  %v47_v11 = vld [vmem:[%s1375_s0 + $0x108] sm:$0xff] }
  0x12   :  { %v771_v19 = vpack.c.bf16 %v233_v10, %v232_v9  ;;  %902 = vst [vmem:[%s1378_s3 + $0x28] sm:$0xff] %v766_v14   ;;  %v173_v24 = vadd.f32 %v965_v5, %v102_v16  ;;  %v236_v25 = vmax.f32 %v172_v17, 0.0  ;;  %v105_v26 = vmul.f32 %v958_v2, %v34_v12  ;;  %v48_v16 = vld [vmem:[%s1375_s0 + $0x110] sm:$0xff]  ;;  %v49_v17 = vld [vmem:[%s1375_s0 + $0x118] sm:$0xff] }
  0x13   :  { %v106_v27 = vmul.f32 %v958_v2, %v35_v13  ;;  %v776_v29 = vpack.c.bf16 %v235_v20, %v234_v15  ;;  %v174_v30 = vadd.f32 %v965_v5, %v103_v21  ;;  %v175_v31 = vadd.f32 %v965_v5, %v104_v22  ;;  %v50_v22 = vld [vmem:[%s1375_s0 + $0x120] sm:$0xff] }
  0x14   :  { %903 = vst [vmem:[%s1378_s3 + $0x30] sm:$0xff] %v771_v19   ;;  %v107_v32 = vmul.f32 %v958_v2, %v36_v18  ;;  %v237_v33 = vmax.f32 %v173_v24, 0.0  ;;  %v176_v34 = vadd.f32 %v965_v5, %v105_v26  ;;  %v108_v36 = vmul.f32 %v958_v2, %v37_v23  ;;  %v51_v23 = vld [vmem:[%s1375_s0 + $0x128] sm:$0xff] }
  0x15   :  { %v177_v35 = vadd.f32 %v965_v5, %v106_v27  ;;  %904 = vst [vmem:[%s1378_s3 + $0x38] sm:$0xff] %v776_v29   ;;  %v238_v38 = vmax.f32 %v174_v30, 0.0  ;;  %v239_v39 = vmax.f32 %v175_v31, 0.0  ;;  %v109_v41 = vmul.f32 %v958_v2, %v38_v28  ;;  %v52_v28 = vld [vmem:[%s1375_s0 + $0x130] sm:$0xff] }
  0x16   :  { %v178_v40 = vadd.f32 %v965_v5, %v107_v32  ;;  %v781_v44 = vpack.c.bf16 %v237_v33, %v236_v25  ;;  %v240_v45 = vmax.f32 %v176_v34, 0.0  ;;  %v179_v47 = vadd.f32 %v965_v5, %v108_v36  ;;  %v53_v33 = vld [vmem:[%s1375_s0 + $0x138] sm:$0xff] }
  0x17   :  { %v241_v46 = vmax.f32 %v177_v35, 0.0  ;;  %v786_v50 = vpack.c.bf16 %v239_v39, %v238_v38  ;;  %v110_v52 = vmul.f32 %v958_v2, %v39_v37  ;;  %v180_v53 = vadd.f32 %v965_v5, %v109_v41  ;;  %v54_v38 = vld [vmem:[%s1375_s0 + $0x140] sm:$0xff] }
  0x18   :  { %v242_v51 = vmax.f32 %v178_v40, 0.0  ;;  %905 = vst [vmem:[%s1378_s3 + $0x40] sm:$0xff] %v781_v44   ;;  %v243_v56 = vmax.f32 %v179_v47, 0.0  ;;  %v111_v57 = vmul.f32 %v958_v2, %v40_v42  ;;  %v112_v58 = vmul.f32 %v958_v2, %v41_v43  ;;  %v55_v47 = vld [vmem:[%s1375_s0 + $0x148] sm:$0xff] }
  0x19   :  { %v791_v55 = vpack.c.bf16 %v241_v46, %v240_v45  ;;  %906 = vst [vmem:[%s1378_s3 + $0x48] sm:$0xff] %v786_v50   ;;  %v181_v60 = vadd.f32 %v965_v5, %v110_v52  ;;  %v244_v61 = vmax.f32 %v180_v53, 0.0  ;;  %v113_v62 = vmul.f32 %v958_v2, %v42_v48  ;;  %v56_v52 = vld [vmem:[%s1375_s0 + $0x150] sm:$0xff]  ;;  %v57_v53 = vld [vmem:[%s1375_s0 + $0x158] sm:$0xff] }
  0x1a   :  { %v114_v63 = vmul.f32 %v958_v2, %v43_v49  ;;  %v796_v1 = vpack.c.bf16 %v243_v56, %v242_v51  ;;  %v182_v3 = vadd.f32 %v965_v5, %v111_v57  ;;  %v183_v4 = vadd.f32 %v965_v5, %v112_v58  ;;  %v58_v58 = vld [vmem:[%s1375_s0 + $0x160] sm:$0xff] }
  0x1b   :  { %907 = vst [vmem:[%s1378_s3 + $0x50] sm:$0xff] %v791_v55   ;;  %v115_v6 = vmul.f32 %v958_v2, %v44_v54  ;;  %v245_v7 = vmax.f32 %v181_v60, 0.0  ;;  %v184_v8 = vadd.f32 %v965_v5, %v113_v62  ;;  %v116_v10 = vmul.f32 %v958_v2, %v45_v59  ;;  %v59_v59 = vld [vmem:[%s1375_s0 + $0x168] sm:$0xff] }
  0x1c   :  { %v185_v9 = vadd.f32 %v965_v5, %v114_v63  ;;  %908 = vst [vmem:[%s1378_s3 + $0x58] sm:$0xff] %v796_v1   ;;  %v246_v12 = vmax.f32 %v182_v3, 0.0  ;;  %v247_v13 = vmax.f32 %v183_v4, 0.0  ;;  %v117_v15 = vmul.f32 %v958_v2, %v46_v0  ;;  %v60_v0 = vld [vmem:[%s1375_s0 + $0x170] sm:$0xff] }
  0x1d   :  { %v186_v14 = vadd.f32 %v965_v5, %v115_v6  ;;  %v801_v18 = vpack.c.bf16 %v245_v7, %v244_v61  ;;  %v248_v19 = vmax.f32 %v184_v8, 0.0  ;;  %v187_v21 = vadd.f32 %v965_v5, %v116_v10  ;;  %v61_v7 = vld [vmem:[%s1375_s0 + $0x178] sm:$0xff] }
  0x1e   :  { %v249_v20 = vmax.f32 %v185_v9, 0.0  ;;  %v806_v24 = vpack.c.bf16 %v247_v13, %v246_v12  ;;  %v118_v26 = vmul.f32 %v958_v2, %v47_v11  ;;  %v188_v27 = vadd.f32 %v965_v5, %v117_v15  ;;  %v62_v12 = vld [vmem:[%s1375_s0 + $0x180] sm:$0xff] }
  0x1f   :  { %v250_v25 = vmax.f32 %v186_v14, 0.0  ;;  %909 = vst [vmem:[%s1378_s3 + $0x60] sm:$0xff] %v801_v18   ;;  %v251_v30 = vmax.f32 %v187_v21, 0.0  ;;  %v119_v31 = vmul.f32 %v958_v2, %v48_v16  ;;  %v120_v32 = vmul.f32 %v958_v2, %v49_v17  ;;  %v63_v21 = vld [vmem:[%s1375_s0 + $0x188] sm:$0xff] }
  0x20   :  { %v811_v29 = vpack.c.bf16 %v249_v20, %v248_v19  ;;  %910 = vst [vmem:[%s1378_s3 + $0x68] sm:$0xff] %v806_v24   ;;  %v189_v34 = vadd.f32 %v965_v5, %v118_v26  ;;  %v252_v35 = vmax.f32 %v188_v27, 0.0  ;;  %v121_v36 = vmul.f32 %v958_v2, %v50_v22  ;;  %v64_v26 = vld [vmem:[%s1375_s0 + $0x190] sm:$0xff]  ;;  %v65_v27 = vld [vmem:[%s1375_s0 + $0x198] sm:$0xff] }
  0x21   :  { %v122_v37 = vmul.f32 %v958_v2, %v51_v23  ;;  %v816_v39 = vpack.c.bf16 %v251_v30, %v250_v25  ;;  %v190_v40 = vadd.f32 %v965_v5, %v119_v31  ;;  %v191_v41 = vadd.f32 %v965_v5, %v120_v32  ;;  %v66_v32 = vld [vmem:[%s1375_s0 + $0x1a0] sm:$0xff] }
  0x22   :  { %911 = vst [vmem:[%s1378_s3 + $0x70] sm:$0xff] %v811_v29   ;;  %v123_v42 = vmul.f32 %v958_v2, %v52_v28  ;;  %v253_v43 = vmax.f32 %v189_v34, 0.0  ;;  %v192_v44 = vadd.f32 %v965_v5, %v121_v36  ;;  %v124_v46 = vmul.f32 %v958_v2, %v53_v33  ;;  %v67_v33 = vld [vmem:[%s1375_s0 + $0x1a8] sm:$0xff] }
  0x23   :  { %v193_v45 = vadd.f32 %v965_v5, %v122_v37  ;;  %912 = vst [vmem:[%s1378_s3 + $0x78] sm:$0xff] %v816_v39   ;;  %v254_v48 = vmax.f32 %v190_v40, 0.0  ;;  %v255_v49 = vmax.f32 %v191_v41, 0.0  ;;  %v125_v51 = vmul.f32 %v958_v2, %v54_v38  ;;  %v68_v38 = vld [vmem:[%s1375_s0 + $0x1b0] sm:$0xff] }
  0x24   :  { %v194_v50 = vadd.f32 %v965_v5, %v123_v42  ;;  %v821_v54 = vpack.c.bf16 %v253_v43, %v252_v35  ;;  %v256_v55 = vmax.f32 %v192_v44, 0.0  ;;  %v195_v57 = vadd.f32 %v965_v5, %v124_v46  ;;  %v69_v43 = vld [vmem:[%s1375_s0 + $0x1b8] sm:$0xff] }
  0x25   :  { %v257_v56 = vmax.f32 %v193_v45, 0.0  ;;  %v826_v60 = vpack.c.bf16 %v255_v49, %v254_v48  ;;  %v126_v62 = vmul.f32 %v958_v2, %v55_v47  ;;  %v196_v63 = vadd.f32 %v965_v5, %v125_v51  ;;  %v70_v48 = vld [vmem:[%s1375_s0 + $0x1c0] sm:$0xff] }
  0x26   :  { %v258_v61 = vmax.f32 %v194_v50, 0.0  ;;  %913 = vst [vmem:[%s1378_s3 + $0x80] sm:$0xff] %v821_v54   ;;  %v259_v3 = vmax.f32 %v195_v57, 0.0  ;;  %v127_v4 = vmul.f32 %v958_v2, %v56_v52  ;;  %v128_v6 = vmul.f32 %v958_v2, %v57_v53  ;;  %v71_v57 = vld [vmem:[%s1375_s0 + $0x1c8] sm:$0xff] }
  0x27   :  { %v831_v1 = vpack.c.bf16 %v257_v56, %v256_v55  ;;  %914 = vst [vmem:[%s1378_s3 + $0x88] sm:$0xff] %v826_v60   ;;  %v197_v8 = vadd.f32 %v965_v5, %v126_v62  ;;  %v260_v9 = vmax.f32 %v196_v63, 0.0  ;;  %v129_v10 = vmul.f32 %v958_v2, %v58_v58  ;;  %v72_v62 = vld [vmem:[%s1375_s0 + $0x1d0] sm:$0xff]  ;;  %v73_v63 = vld [vmem:[%s1375_s0 + $0x1d8] sm:$0xff] }
  0x28   :  { %v130_v11 = vmul.f32 %v958_v2, %v59_v59  ;;  %v836_v13 = vpack.c.bf16 %v259_v3, %v258_v61  ;;  %v198_v14 = vadd.f32 %v965_v5, %v127_v4  ;;  %v199_v15 = vadd.f32 %v965_v5, %v128_v6  ;;  %v74_v6 = vld [vmem:[%s1375_s0 + $0x1e0] sm:$0xff] }
  0x29   :  { %915 = vst [vmem:[%s1378_s3 + $0x90] sm:$0xff] %v831_v1   ;;  %v131_v16 = vmul.f32 %v958_v2, %v60_v0  ;;  %v261_v17 = vmax.f32 %v197_v8, 0.0  ;;  %v200_v18 = vadd.f32 %v965_v5, %v129_v10  ;;  %v132_v20 = vmul.f32 %v958_v2, %v61_v7  ;;  %v75_v7 = vld [vmem:[%s1375_s0 + $0x1e8] sm:$0xff] }
  0x2a   :  { %v201_v19 = vadd.f32 %v965_v5, %v130_v11  ;;  %916 = vst [vmem:[%s1378_s3 + $0x98] sm:$0xff] %v836_v13   ;;  %v262_v22 = vmax.f32 %v198_v14, 0.0  ;;  %v263_v23 = vmax.f32 %v199_v15, 0.0  ;;  %v133_v25 = vmul.f32 %v958_v2, %v62_v12  ;;  %v76_v12 = vld [vmem:[%s1375_s0 + $0x1f0] sm:$0xff] }
  0x2b   :  { %v202_v24 = vadd.f32 %v965_v5, %v131_v16  ;;  %v841_v28 = vpack.c.bf16 %v261_v17, %v260_v9  ;;  %v264_v29 = vmax.f32 %v200_v18, 0.0  ;;  %v203_v31 = vadd.f32 %v965_v5, %v132_v20  ;;  %v77_v17 = vld [vmem:[%s1375_s0 + $0x1f8] sm:$0xff] }
  0x2c   :  { %v265_v30 = vmax.f32 %v201_v19, 0.0  ;;  %v846_v34 = vpack.c.bf16 %v263_v23, %v262_v22  ;;  %v134_v36 = vmul.f32 %v958_v2, %v63_v21  ;;  %v204_v37 = vadd.f32 %v965_v5, %v133_v25 }
  0x2d   :  { %v266_v35 = vmax.f32 %v202_v24, 0.0  ;;  %917 = vst [vmem:[%s1378_s3 + $0xa0] sm:$0xff] %v841_v28   ;;  %v267_v40 = vmax.f32 %v203_v31, 0.0  ;;  %v135_v41 = vmul.f32 %v958_v2, %v64_v26  ;;  %v136_v42 = vmul.f32 %v958_v2, %v65_v27 }
  0x2e   :  { %v851_v39 = vpack.c.bf16 %v265_v30, %v264_v29  ;;  %918 = vst [vmem:[%s1378_s3 + $0xa8] sm:$0xff] %v846_v34   ;;  %v205_v44 = vadd.f32 %v965_v5, %v134_v36  ;;  %v268_v45 = vmax.f32 %v204_v37, 0.0  ;;  %v137_v46 = vmul.f32 %v958_v2, %v66_v32 }
  0x2f   :  { %v138_v47 = vmul.f32 %v958_v2, %v67_v33  ;;  %v856_v49 = vpack.c.bf16 %v267_v40, %v266_v35  ;;  %v206_v50 = vadd.f32 %v965_v5, %v135_v41  ;;  %v207_v51 = vadd.f32 %v965_v5, %v136_v42 }
  0x30   :  { %919 = vst [vmem:[%s1378_s3 + $0xb0] sm:$0xff] %v851_v39   ;;  %v139_v52 = vmul.f32 %v958_v2, %v68_v38  ;;  %v269_v53 = vmax.f32 %v205_v44, 0.0  ;;  %v208_v54 = vadd.f32 %v965_v5, %v137_v46  ;;  %v140_v56 = vmul.f32 %v958_v2, %v69_v43 }
  0x31   :  { %v209_v55 = vadd.f32 %v965_v5, %v138_v47  ;;  %920 = vst [vmem:[%s1378_s3 + $0xb8] sm:$0xff] %v856_v49   ;;  %v270_v58 = vmax.f32 %v206_v50, 0.0  ;;  %v271_v59 = vmax.f32 %v207_v51, 0.0  ;;  %v141_v61 = vmul.f32 %v958_v2, %v70_v48 }
  0x32   :  { %v210_v60 = vadd.f32 %v965_v5, %v139_v52  ;;  %v861_v0 = vpack.c.bf16 %v269_v53, %v268_v45  ;;  %v272_v1 = vmax.f32 %v208_v54, 0.0  ;;  %v211_v4 = vadd.f32 %v965_v5, %v140_v56 }
  0x33   :  { %v273_v3 = vmax.f32 %v209_v55, 0.0  ;;  %v866_v8 = vpack.c.bf16 %v271_v59, %v270_v58  ;;  %v142_v10 = vmul.f32 %v958_v2, %v71_v57  ;;  %v212_v11 = vadd.f32 %v965_v5, %v141_v61 }
  0x34   :  { %v274_v9 = vmax.f32 %v210_v60, 0.0  ;;  %921 = vst [vmem:[%s1378_s3 + $0xc0] sm:$0xff] %v861_v0   ;;  %v275_v14 = vmax.f32 %v211_v4, 0.0  ;;  %v143_v15 = vmul.f32 %v958_v2, %v72_v62  ;;  %v144_v16 = vmul.f32 %v958_v2, %v73_v63 }
  0x35   :  { %v871_v13 = vpack.c.bf16 %v273_v3, %v272_v1  ;;  %922 = vst [vmem:[%s1378_s3 + $0xc8] sm:$0xff] %v866_v8   ;;  %v213_v18 = vadd.f32 %v965_v5, %v142_v10  ;;  %v276_v19 = vmax.f32 %v212_v11, 0.0  ;;  %v145_v20 = vmul.f32 %v958_v2, %v74_v6 }
  0x36   :  { %v146_v21 = vmul.f32 %v958_v2, %v75_v7  ;;  %v876_v22 = vpack.c.bf16 %v275_v14, %v274_v9  ;;  %v214_v23 = vadd.f32 %v965_v5, %v143_v15  ;;  %v215_v24 = vadd.f32 %v965_v5, %v144_v16 }
  0x37   :  { %923 = vst [vmem:[%s1378_s3 + $0xd0] sm:$0xff] %v871_v13   ;;  %v147_v25 = vmul.f32 %v958_v2, %v76_v12  ;;  %v277_v26 = vmax.f32 %v213_v18, 0.0  ;;  %v216_v27 = vadd.f32 %v965_v5, %v145_v20  ;;  %v148_v29 = vmul.f32 %v958_v2, %v77_v17 }
  0x38   :  { %v217_v28 = vadd.f32 %v965_v5, %v146_v21  ;;  %924 = vst [vmem:[%s1378_s3 + $0xd8] sm:$0xff] %v876_v22   ;;  %v278_v30 = vmax.f32 %v214_v23, 0.0  ;;  %v279_v31 = vmax.f32 %v215_v24, 0.0 }
  0x39   :  { %v218_v32 = vadd.f32 %v965_v5, %v147_v25  ;;  %v881_v33 = vpack.c.bf16 %v277_v26, %v276_v19  ;;  %v280_v34 = vmax.f32 %v216_v27, 0.0  ;;  %v219_v36 = vadd.f32 %v965_v5, %v148_v29 }
  0x3a   :  { %v281_v35 = vmax.f32 %v217_v28, 0.0  ;;  %v886_v37 = vpack.c.bf16 %v279_v31, %v278_v30 }
  0x3b   :  { %v282_v38 = vmax.f32 %v218_v32, 0.0  ;;  %925 = vst [vmem:[%s1378_s3 + $0xe0] sm:$0xff] %v881_v33   ;;  %v283_v39 = vmax.f32 %v219_v36, 0.0 }
  0x3c   :  { %v891_v2 = vpack.c.bf16 %v281_v35, %v280_v34  ;;  %926 = vst [vmem:[%s1378_s3 + $0xe8] sm:$0xff] %v886_v37  }
  0x3d   :  { %v896_v40 = vpack.c.bf16 %v283_v39, %v282_v38 }
  0x3e   :  { %927 = vst [vmem:[%s1378_s3 + $0xf0] sm:$0xff] %v891_v2  }
  0x3f   :  { %928 = vst [vmem:[%s1378_s3 + $0xf8] sm:$0xff] %v896_v40  }

// kernel: up_forward.11
= control target key start
LH: loop header
LB: loop body
LE: loop exit
PB: predicated region body
PF: predicated region fallthrough
CT: control target
= control target key end

     0   :  { %s759_s0 = inlined_call_operand.vmem [shape: f32[512,128], index: 0, kind: input, shape index: {}]   ;;  %s760_s1 = inlined_call_operand.vmem [shape: f32[1,128], index: 1, kind: input, shape index: {}]   ;;  %s761_s2 = inlined_call_operand.vmem [shape: f32[1,128], index: 2, kind: input, shape index: {}]   ;;  %s762_s3 = inlined_call_operand.hbm [shape: f32[512,128], index: 3, kind: output, shape index: {}]  }
   0x1   :  { %v15_v0 = vld [vmem:[%s759_s0] sm:$0xff]  ;;  %v16_v4 = vld [vmem:[%s759_s0 + $0x8] sm:$0xff]  ;;  %v17_v5 = vld [vmem:[%s759_s0 + $0x10] sm:$0xff] }
   0x2   :  { %v423_v1 = vld [vmem:[%s760_s1] ss:$0 sm:$0xff]  ;;  %v18_v6 = vld [vmem:[%s759_s0 + $0x18] sm:$0xff]  ;;  %v20_v11 = vld [vmem:[%s759_s0 + $0x28] sm:$0xff] }
   0x3   :  { %v428_v2 = vld [vmem:[%s761_s2] ss:$0 sm:$0xff]  ;;  %v86_v3 = vmul.f32 %v423_v1, %v15_v0  ;;  %v87_v7 = vmul.f32 %v423_v1, %v16_v4  ;;  %v88_v8 = vmul.f32 %v423_v1, %v17_v5  ;;  %v89_v9 = vmul.f32 %v423_v1, %v18_v6  ;;  %v21_v12 = vld [vmem:[%s759_s0 + $0x30] sm:$0xff]  ;;  %v22_v17 = vld [vmem:[%s759_s0 + $0x38] sm:$0xff] }
   0x4   :  { %v19_v10 = vld [vmem:[%s759_s0 + $0x20] sm:$0xff]  ;;  %v91_v15 = vmul.f32 %v423_v1, %v20_v11  ;;  %v92_v16 = vmul.f32 %v423_v1, %v21_v12  ;;  %v93_v21 = vmul.f32 %v423_v1, %v22_v17  ;;  %v24_v27 = vld [vmem:[%s759_s0 + $0x48] sm:$0xff]  ;;  %v25_v28 = vld [vmem:[%s759_s0 + $0x50] sm:$0xff] }
   0x5   :  { %v157_v13 = vadd.f32 %v428_v2, %v86_v3  ;;  %v90_v14 = vmul.f32 %v423_v1, %v19_v10  ;;  %v158_v18 = vadd.f32 %v428_v2, %v87_v7  ;;  %v159_v19 = vadd.f32 %v428_v2, %v88_v8  ;;  %v23_v22 = vld [vmem:[%s759_s0 + $0x40] sm:$0xff]  ;;  %v26_v29 = vld [vmem:[%s759_s0 + $0x58] sm:$0xff]  ;;  %v28_v35 = vld [vmem:[%s759_s0 + $0x68] sm:$0xff] }
   0x6   :  { %v160_v20 = vadd.f32 %v428_v2, %v89_v9  ;;  %v162_v25 = vadd.f32 %v428_v2, %v91_v15  ;;  %v163_v26 = vadd.f32 %v428_v2, %v92_v16  ;;  %v164_v33 = vadd.f32 %v428_v2, %v93_v21  ;;  %v27_v34 = vld [vmem:[%s759_s0 + $0x60] sm:$0xff]  ;;  %v29_v36 = vld [vmem:[%s759_s0 + $0x70] sm:$0xff]  ;;  %v30_v41 = vld [vmem:[%s759_s0 + $0x78] sm:$0xff] }
   0x7   :  { %v221_v23 = vmax.f32 %v157_v13, 0.0  ;;  %v161_v24 = vadd.f32 %v428_v2, %v90_v14  ;;  %v222_v30 = vmax.f32 %v158_v18, 0.0  ;;  %v223_v31 = vmax.f32 %v159_v19, 0.0  ;;  %v31_v54 = vld [vmem:[%s759_s0 + $0x80] sm:$0xff]  ;;  %v32_v59 = vld [vmem:[%s759_s0 + $0x88] sm:$0xff]  ;;  %v33_v60 = vld [vmem:[%s759_s0 + $0x90] sm:$0xff] }
   0x8   :  { %v224_v32 = vmax.f32 %v160_v20, 0.0  ;;  %v226_v38 = vmax.f32 %v162_v25, 0.0  ;;  %v227_v39 = vmax.f32 %v163_v26, 0.0  ;;  %v94_v40 = vmul.f32 %v423_v1, %v23_v22  ;;  %v34_v61 = vld [vmem:[%s759_s0 + $0x98] sm:$0xff]  ;;  %v35_v4 = vld [vmem:[%s759_s0 + $0xa0] sm:$0xff]  ;;  %v36_v5 = vld [vmem:[%s759_s0 + $0xa8] sm:$0xff] }
   0x9   :  { %285 = vst [vmem:[#allocation2] sm:$0xff] %v221_v23  ;;  %v225_v37 = vmax.f32 %v161_v24, 0.0  ;;  %286 = vst [vmem:[#allocation2 + $0x8] sm:$0xff] %v222_v30  ;;  %v228_v42 = vmax.f32 %v164_v33, 0.0  ;;  %v95_v43 = vmul.f32 %v423_v1, %v24_v27  ;;  %v96_v44 = vmul.f32 %v423_v1, %v25_v28  ;;  %v37_v6 = vld [vmem:[%s759_s0 + $0xb0] sm:$0xff]  ;;  %v38_v11 = vld [vmem:[%s759_s0 + $0xb8] sm:$0xff] }
   0xa   :  { %287 = vst [vmem:[#allocation2 + $0x10] sm:$0xff] %v223_v31  ;;  %288 = vst [vmem:[#allocation2 + $0x18] sm:$0xff] %v224_v32  ;;  %v97_v45 = vmul.f32 %v423_v1, %v26_v29  ;;  %v165_v46 = vadd.f32 %v428_v2, %v94_v40  ;;  %v98_v47 = vmul.f32 %v423_v1, %v27_v34  ;;  %v39_v24 = vld [vmem:[%s759_s0 + $0xc0] sm:$0xff]  ;;  %v40_v29 = vld [vmem:[%s759_s0 + $0xc8] sm:$0xff] }
   0xb   :  { %289 = vst [vmem:[#allocation2 + $0x20] sm:$0xff] %v225_v37  ;;  %290 = vst [vmem:[#allocation2 + $0x28] sm:$0xff] %v226_v38  ;;  %v99_v48 = vmul.f32 %v423_v1, %v28_v35  ;;  %v100_v49 = vmul.f32 %v423_v1, %v29_v36  ;;  %v166_v50 = vadd.f32 %v428_v2, %v95_v43  ;;  %v41_v30 = vld [vmem:[%s759_s0 + $0xd0] sm:$0xff]  ;;  %v42_v31 = vld [vmem:[%s759_s0 + $0xd8] sm:$0xff] }
   0xc   :  { %291 = vst [vmem:[#allocation2 + $0x30] sm:$0xff] %v227_v39  ;;  %292 = vst [vmem:[#allocation2 + $0x38] sm:$0xff] %v228_v42  ;;  %v167_v51 = vadd.f32 %v428_v2, %v96_v44  ;;  %v168_v52 = vadd.f32 %v428_v2, %v97_v45  ;;  %v101_v53 = vmul.f32 %v423_v1, %v30_v41  ;;  %v229_v55 = vmax.f32 %v165_v46, 0.0  ;;  %v43_v36 = vld [vmem:[%s759_s0 + $0xe0] sm:$0xff]  ;;  %v44_v37 = vld [vmem:[%s759_s0 + $0xe8] sm:$0xff] }
   0xd   :  { %v169_v56 = vadd.f32 %v428_v2, %v98_v47  ;;  %v170_v57 = vadd.f32 %v428_v2, %v99_v48  ;;  %v171_v58 = vadd.f32 %v428_v2, %v100_v49  ;;  %v230_v62 = vmax.f32 %v166_v50, 0.0  ;;  %v45_v38 = vld [vmem:[%s759_s0 + $0xf0] sm:$0xff]  ;;  %v46_v43 = vld [vmem:[%s759_s0 + $0xf8] sm:$0xff] }
   0xe   :  { %v231_v63 = vmax.f32 %v167_v51, 0.0  ;;  %v232_v0 = vmax.f32 %v168_v52, 0.0  ;;  %v172_v3 = vadd.f32 %v428_v2, %v101_v53  ;;  %293 = vst [vmem:[#allocation2 + $0x40] sm:$0xff] %v229_v55  ;;  %v102_v10 = vmul.f32 %v423_v1, %v31_v54 }
   0xf   :  { %v233_v7 = vmax.f32 %v169_v56, 0.0  ;;  %v234_v8 = vmax.f32 %v170_v57, 0.0  ;;  %v235_v9 = vmax.f32 %v171_v58, 0.0  ;;  %294 = vst [vmem:[#allocation2 + $0x48] sm:$0xff] %v230_v62  ;;  %v103_v13 = vmul.f32 %v423_v1, %v32_v59  ;;  %v47_v56 = vld [vmem:[%s759_s0 + $0x100] sm:$0xff] }
  0x10   :  { %295 = vst [vmem:[#allocation2 + $0x50] sm:$0xff] %v231_v63  ;;  %296 = vst [vmem:[#allocation2 + $0x58] sm:$0xff] %v232_v0  ;;  %v236_v12 = vmax.f32 %v172_v3, 0.0  ;;  %v104_v14 = vmul.f32 %v423_v1, %v33_v60  ;;  %v105_v15 = vmul.f32 %v423_v1, %v34_v61  ;;  %v173_v16 = vadd.f32 %v428_v2, %v102_v10 }
  0x11   :  { %297 = vst [vmem:[#allocation2 + $0x60] sm:$0xff] %v233_v7  ;;  %298 = vst [vmem:[#allocation2 + $0x68] sm:$0xff] %v234_v8  ;;  %v106_v17 = vmul.f32 %v423_v1, %v35_v4  ;;  %v107_v18 = vmul.f32 %v423_v1, %v36_v5  ;;  %v108_v19 = vmul.f32 %v423_v1, %v37_v6 }
  0x12   :  { %299 = vst [vmem:[#allocation2 + $0x70] sm:$0xff] %v235_v9  ;;  %300 = vst [vmem:[#allocation2 + $0x78] sm:$0xff] %v236_v12  ;;  %v174_v20 = vadd.f32 %v428_v2, %v103_v13  ;;  %v175_v21 = vadd.f32 %v428_v2, %v104_v14  ;;  %v176_v22 = vadd.f32 %v428_v2, %v105_v15  ;;  %v237_v25 = vmax.f32 %v173_v16, 0.0 }
  0x13   :  { %v109_v23 = vmul.f32 %v423_v1, %v38_v11  ;;  %v177_v26 = vadd.f32 %v428_v2, %v106_v17  ;;  %v178_v27 = vadd.f32 %v428_v2, %v107_v18  ;;  %v179_v28 = vadd.f32 %v428_v2, %v108_v19 }
  0x14   :  { %v238_v32 = vmax.f32 %v174_v20, 0.0  ;;  %v239_v33 = vmax.f32 %v175_v21, 0.0  ;;  %v240_v34 = vmax.f32 %v176_v22, 0.0  ;;  %301 = vst [vmem:[#allocation2 + $0x80] sm:$0xff] %v237_v25  ;;  %v110_v42 = vmul.f32 %v423_v1, %v39_v24 }
  0x15   :  { %v180_v35 = vadd.f32 %v428_v2, %v109_v23  ;;  %v241_v39 = vmax.f32 %v177_v26, 0.0  ;;  %v242_v40 = vmax.f32 %v178_v27, 0.0  ;;  %v243_v41 = vmax.f32 %v179_v28, 0.0 }
  0x16   :  { %302 = vst [vmem:[#allocation2 + $0x88] sm:$0xff] %v238_v32  ;;  %303 = vst [vmem:[#allocation2 + $0x90] sm:$0xff] %v239_v33  ;;  %v111_v45 = vmul.f32 %v423_v1, %v40_v29  ;;  %v112_v46 = vmul.f32 %v423_v1, %v41_v30  ;;  %v113_v47 = vmul.f32 %v423_v1, %v42_v31 }
  0x17   :  { %304 = vst [vmem:[#allocation2 + $0x98] sm:$0xff] %v240_v34  ;;  %v244_v44 = vmax.f32 %v180_v35, 0.0  ;;  %305 = vst [vmem:[#allocation2 + $0xa0] sm:$0xff] %v241_v39  ;;  %v181_v48 = vadd.f32 %v428_v2, %v110_v42  ;;  %v114_v49 = vmul.f32 %v423_v1, %v43_v36  ;;  %v115_v50 = vmul.f32 %v423_v1, %v44_v37 }
  0x18   :  { %306 = vst [vmem:[#allocation2 + $0xa8] sm:$0xff] %v242_v40  ;;  %307 = vst [vmem:[#allocation2 + $0xb0] sm:$0xff] %v243_v41  ;;  %v116_v51 = vmul.f32 %v423_v1, %v45_v38  ;;  %v182_v52 = vadd.f32 %v428_v2, %v111_v45  ;;  %v183_v53 = vadd.f32 %v428_v2, %v112_v46 }
  0x19   :  { %308 = vst [vmem:[#allocation2 + $0xb8] sm:$0xff] %v244_v44  ;;  %v184_v54 = vadd.f32 %v428_v2, %v113_v47  ;;  %v117_v55 = vmul.f32 %v423_v1, %v46_v43 }
  0x1a   :  { %8 = vsyncpa [#allocation3], 0  ;;  %v245_v57 = vmax.f32 %v181_v48, 0.0  ;;  %v185_v58 = vadd.f32 %v428_v2, %v114_v49  ;;  %v186_v59 = vadd.f32 %v428_v2, %v115_v50  ;;  %v187_v60 = vadd.f32 %v428_v2, %v116_v51  ;;  %v48_v61 = vld [vmem:[%s759_s0 + $0x108] sm:$0xff]  ;;  %v49_v62 = vld [vmem:[%s759_s0 + $0x110] sm:$0xff] }
  0x1b   :  { %v50_v63 = vld [vmem:[%s759_s0 + $0x118] sm:$0xff]  ;;  %v246_v0 = vmax.f32 %v182_v52, 0.0  ;;  %v247_v3 = vmax.f32 %v183_v53, 0.0  ;;  %v248_v4 = vmax.f32 %v184_v54, 0.0  ;;  %v188_v5 = vadd.f32 %v428_v2, %v117_v55  ;;  %v51_v6 = vld [vmem:[%s759_s0 + $0x120] sm:$0xff]  ;;  %v52_v7 = vld [vmem:[%s759_s0 + $0x128] sm:$0xff] }
  0x1c   :  { %v53_v8 = vld [vmem:[%s759_s0 + $0x130] sm:$0xff]  ;;  %309 = vst [vmem:[#allocation2 + $0xc0] sm:$0xff] %v245_v57  ;;  %v249_v9 = vmax.f32 %v185_v58, 0.0  ;;  %v250_v10 = vmax.f32 %v186_v59, 0.0  ;;  %v251_v11 = vmax.f32 %v187_v60, 0.0  ;;  %v118_v12 = vmul.f32 %v423_v1, %v47_v56  ;;  %v54_v13 = vld [vmem:[%s759_s0 + $0x138] sm:$0xff] }
  0x1d   :  { %310 = vst [vmem:[#allocation2 + $0xc8] sm:$0xff] %v246_v0  ;;  %311 = vst [vmem:[#allocation2 + $0xd0] sm:$0xff] %v247_v3  ;;  %v252_v14 = vmax.f32 %v188_v5, 0.0  ;;  %v119_v15 = vmul.f32 %v423_v1, %v48_v61  ;;  %v120_v16 = vmul.f32 %v423_v1, %v49_v62  ;;  %v121_v17 = vmul.f32 %v423_v1, %v50_v63  ;;  %v55_v26 = vld [vmem:[%s759_s0 + $0x140] sm:$0xff]  ;;  %v56_v31 = vld [vmem:[%s759_s0 + $0x148] sm:$0xff] }
  0x1e   :  { %312 = vst [vmem:[#allocation2 + $0xd8] sm:$0xff] %v248_v4  ;;  %313 = vst [vmem:[#allocation2 + $0xe0] sm:$0xff] %v249_v9  ;;  %v189_v18 = vadd.f32 %v428_v2, %v118_v12  ;;  %v122_v19 = vmul.f32 %v423_v1, %v51_v6  ;;  %v123_v20 = vmul.f32 %v423_v1, %v52_v7  ;;  %v57_v32 = vld [vmem:[%s759_s0 + $0x150] sm:$0xff]  ;;  %v58_v33 = vld [vmem:[%s759_s0 + $0x158] sm:$0xff] }
  0x1f   :  { %314 = vst [vmem:[#allocation2 + $0xe8] sm:$0xff] %v250_v10  ;;  %315 = vst [vmem:[#allocation2 + $0xf0] sm:$0xff] %v251_v11  ;;  %v124_v21 = vmul.f32 %v423_v1, %v53_v8  ;;  %v190_v22 = vadd.f32 %v428_v2, %v119_v15  ;;  %v191_v23 = vadd.f32 %v428_v2, %v120_v16  ;;  %v59_v38 = vld [vmem:[%s759_s0 + $0x160] sm:$0xff]  ;;  %v60_v39 = vld [vmem:[%s759_s0 + $0x168] sm:$0xff] }
  0x20   :  { %316 = vst [vmem:[#allocation2 + $0xf8] sm:$0xff] %v252_v14  ;;  %v192_v24 = vadd.f32 %v428_v2, %v121_v17  ;;  %v125_v25 = vmul.f32 %v423_v1, %v54_v13  ;;  %v253_v27 = vmax.f32 %v189_v18, 0.0  ;;  %v193_v28 = vadd.f32 %v428_v2, %v122_v19  ;;  %v61_v40 = vld [vmem:[%s759_s0 + $0x170] sm:$0xff]  ;;  %v62_v45 = vld [vmem:[%s759_s0 + $0x178] sm:$0xff]  ;;  %v63_v58 = vld [vmem:[%s759_s0 + $0x180] sm:$0xff] }
  0x21   :  { %v194_v29 = vadd.f32 %v428_v2, %v123_v20  ;;  %v195_v30 = vadd.f32 %v428_v2, %v124_v21  ;;  %v254_v34 = vmax.f32 %v190_v22, 0.0  ;;  %v255_v35 = vmax.f32 %v191_v23, 0.0  ;;  %v64_v63 = vld [vmem:[%s759_s0 + $0x188] sm:$0xff]  ;;  %v65_v0 = vld [vmem:[%s759_s0 + $0x190] sm:$0xff]  ;;  %v66_v3 = vld [vmem:[%s759_s0 + $0x198] sm:$0xff] }
  0x22   :  { %v256_v36 = vmax.f32 %v192_v24, 0.0  ;;  %v196_v37 = vadd.f32 %v428_v2, %v125_v25  ;;  %317 = vst [vmem:[#allocation2 + $0x100] sm:$0xff] %v253_v27  ;;  %v257_v41 = vmax.f32 %v193_v28, 0.0  ;;  %v126_v44 = vmul.f32 %v423_v1, %v55_v26  ;;  %v67_v8 = vld [vmem:[%s759_s0 + $0x1a0] sm:$0xff]  ;;  %v68_v9 = vld [vmem:[%s759_s0 + $0x1a8] sm:$0xff]  ;;  %v69_v10 = vld [vmem:[%s759_s0 + $0x1b0] sm:$0xff] }
  0x23   :  { %v258_v42 = vmax.f32 %v194_v29, 0.0  ;;  %v259_v43 = vmax.f32 %v195_v30, 0.0  ;;  %318 = vst [vmem:[#allocation2 + $0x108] sm:$0xff] %v254_v34  ;;  %319 = vst [vmem:[#allocation2 + $0x110] sm:$0xff] %v255_v35  ;;  %v127_v47 = vmul.f32 %v423_v1, %v56_v31  ;;  %v128_v48 = vmul.f32 %v423_v1, %v57_v32  ;;  %v70_v15 = vld [vmem:[%s759_s0 + $0x1b8] sm:$0xff]  ;;  %v71_v28 = vld [vmem:[%s759_s0 + $0x1c0] sm:$0xff] }
  0x24   :  { %320 = vst [vmem:[#allocation2 + $0x118] sm:$0xff] %v256_v36  ;;  %v260_v46 = vmax.f32 %v196_v37, 0.0  ;;  %v129_v49 = vmul.f32 %v423_v1, %v58_v33  ;;  %321 = vst [vmem:[#allocation2 + $0x120] sm:$0xff] %v257_v41  ;;  %v197_v50 = vadd.f32 %v428_v2, %v126_v44  ;;  %v130_v51 = vmul.f32 %v423_v1, %v59_v38  ;;  %v72_v33 = vld [vmem:[%s759_s0 + $0x1c8] sm:$0xff]  ;;  %v73_v34 = vld [vmem:[%s759_s0 + $0x1d0] sm:$0xff] }
  0x25   :  { %322 = vst [vmem:[#allocation2 + $0x128] sm:$0xff] %v258_v42  ;;  %323 = vst [vmem:[#allocation2 + $0x130] sm:$0xff] %v259_v43  ;;  %v131_v52 = vmul.f32 %v423_v1, %v60_v39  ;;  %v132_v53 = vmul.f32 %v423_v1, %v61_v40  ;;  %v198_v54 = vadd.f32 %v428_v2, %v127_v47  ;;  %v74_v35 = vld [vmem:[%s759_s0 + $0x1d8] sm:$0xff]  ;;  %v75_v40 = vld [vmem:[%s759_s0 + $0x1e0] sm:$0xff] }
  0x26   :  { %324 = vst [vmem:[#allocation2 + $0x138] sm:$0xff] %v260_v46  ;;  %v199_v55 = vadd.f32 %v428_v2, %v128_v48  ;;  %v200_v56 = vadd.f32 %v428_v2, %v129_v49  ;;  %v133_v57 = vmul.f32 %v423_v1, %v62_v45  ;;  %v261_v59 = vmax.f32 %v197_v50, 0.0  ;;  %v76_v41 = vld [vmem:[%s759_s0 + $0x1e8] sm:$0xff]  ;;  %v77_v42 = vld [vmem:[%s759_s0 + $0x1f0] sm:$0xff]  ;;  %v78_v47 = vld [vmem:[%s759_s0 + $0x1f8] sm:$0xff]  ;;  %s394_s0 = smov [#allocation2]  }
  0x27   :  { %v201_v60 = vadd.f32 %v428_v2, %v130_v51  ;;  %v202_v61 = vadd.f32 %v428_v2, %v131_v52  ;;  %v203_v62 = vadd.f32 %v428_v2, %v132_v53  ;;  %v262_v4 = vmax.f32 %v198_v54, 0.0  ;;  %s354_s26 = sshll.u32 %s394_s0, 4  ;;  %s355_s26 = int_to_ptr.vmem [resolvable:$true] %s354_s26 }
  0x28   :  { %v263_v5 = vmax.f32 %v199_v55, 0.0  ;;  %v264_v6 = vmax.f32 %v200_v56, 0.0  ;;  %v204_v7 = vadd.f32 %v428_v2, %v133_v57  ;;  %325 = vst [vmem:[#allocation2 + $0x140] sm:$0xff] %v261_v59  ;;  %v134_v14 = vmul.f32 %v423_v1, %v63_v58  ;;  %s370_s27 = scalar_lea.vmem %s355_s26, 8192  ;;  %p375_p1 = scmp.lt.s32.totalorder %s355_s26, %s355_s26 }
  0x29   :  { %v265_v11 = vmax.f32 %v201_v60, 0.0  ;;  %v266_v12 = vmax.f32 %v202_v61, 0.0  ;;  %v267_v13 = vmax.f32 %v203_v62, 0.0  ;;  %326 = vst [vmem:[#allocation2 + $0x148] sm:$0xff] %v262_v4  ;;  %v135_v17 = vmul.f32 %v423_v1, %v64_v63  ;;  %p371_p0 = scmp.ne.s32.totalorder %s355_s26, %s370_s27  ;;  %p376_p2 = scmp.lt.s32.totalorder %s370_s27, %s370_s27 }
  0x2a   :  { %327 = vst [vmem:[#allocation2 + $0x150] sm:$0xff] %v263_v5  ;;  %328 = vst [vmem:[#allocation2 + $0x158] sm:$0xff] %v264_v6  ;;  %v268_v16 = vmax.f32 %v204_v7, 0.0  ;;  %v136_v18 = vmul.f32 %v423_v1, %v65_v0  ;;  %v137_v19 = vmul.f32 %v423_v1, %v66_v3  ;;  %v205_v20 = vadd.f32 %v428_v2, %v134_v14 }
  0x2b   :  { %329 = vst [vmem:[#allocation2 + $0x160] sm:$0xff] %v265_v11  ;;  %330 = vst [vmem:[#allocation2 + $0x168] sm:$0xff] %v266_v12  ;;  %v138_v21 = vmul.f32 %v423_v1, %v67_v8  ;;  %v139_v22 = vmul.f32 %v423_v1, %v68_v9  ;;  %v140_v23 = vmul.f32 %v423_v1, %v69_v10  ;;  %p377_p3 = por %p376_p2, %p375_p1 }
  0x2c   :  { %331 = vst [vmem:[#allocation2 + $0x170] sm:$0xff] %v267_v13  ;;  %332 = vst [vmem:[#allocation2 + $0x178] sm:$0xff] %v268_v16  ;;  %v206_v24 = vadd.f32 %v428_v2, %v135_v17  ;;  %v207_v25 = vadd.f32 %v428_v2, %v136_v18  ;;  %v208_v26 = vadd.f32 %v428_v2, %v137_v19  ;;  %v269_v29 = vmax.f32 %v205_v20, 0.0 }
  0x2d   :  { %v141_v27 = vmul.f32 %v423_v1, %v70_v15  ;;  %v209_v30 = vadd.f32 %v428_v2, %v138_v21  ;;  %v210_v31 = vadd.f32 %v428_v2, %v139_v22  ;;  %v211_v32 = vadd.f32 %v428_v2, %v140_v23  ;;  %p378_p4 = pnand %p377_p3, %p371_p0 }
  0x2e   :  { %v270_v36 = vmax.f32 %v206_v24, 0.0  ;;  %v271_v37 = vmax.f32 %v207_v25, 0.0  ;;  %v272_v38 = vmax.f32 %v208_v26, 0.0  ;;  %333 = vst [vmem:[#allocation2 + $0x180] sm:$0xff] %v269_v29  ;;  %v142_v46 = vmul.f32 %v423_v1, %v71_v28 }
  0x2f   :  { %v212_v39 = vadd.f32 %v428_v2, %v141_v27  ;;  %v273_v43 = vmax.f32 %v209_v30, 0.0  ;;  %v274_v44 = vmax.f32 %v210_v31, 0.0  ;;  %v275_v45 = vmax.f32 %v211_v32, 0.0 }
  0x30   :  { %334 = vst [vmem:[#allocation2 + $0x188] sm:$0xff] %v270_v36  ;;  %335 = vst [vmem:[#allocation2 + $0x190] sm:$0xff] %v271_v37  ;;  %v143_v49 = vmul.f32 %v423_v1, %v72_v33  ;;  %v144_v50 = vmul.f32 %v423_v1, %v73_v34  ;;  %v145_v51 = vmul.f32 %v423_v1, %v74_v35 }
  0x31   :  { %336 = vst [vmem:[#allocation2 + $0x198] sm:$0xff] %v272_v38  ;;  %v276_v48 = vmax.f32 %v212_v39, 0.0  ;;  %337 = vst [vmem:[#allocation2 + $0x1a0] sm:$0xff] %v273_v43  ;;  %v213_v52 = vadd.f32 %v428_v2, %v142_v46  ;;  %v146_v53 = vmul.f32 %v423_v1, %v75_v40  ;;  %v147_v54 = vmul.f32 %v423_v1, %v76_v41 }
  0x32   :  { %338 = vst [vmem:[#allocation2 + $0x1a8] sm:$0xff] %v274_v44  ;;  %339 = vst [vmem:[#allocation2 + $0x1b0] sm:$0xff] %v275_v45  ;;  %v148_v55 = vmul.f32 %v423_v1, %v77_v42  ;;  %v214_v56 = vadd.f32 %v428_v2, %v143_v49  ;;  %v215_v57 = vadd.f32 %v428_v2, %v144_v50 }
  0x33   :  { %340 = vst [vmem:[#allocation2 + $0x1b8] sm:$0xff] %v276_v48  ;;  %v216_v58 = vadd.f32 %v428_v2, %v145_v51  ;;  %v149_v59 = vmul.f32 %v423_v1, %v78_v47  ;;  %v277_v60 = vmax.f32 %v213_v52, 0.0  ;;  %v217_v61 = vadd.f32 %v428_v2, %v146_v53 }
  0x34   :  { %v218_v62 = vadd.f32 %v428_v2, %v147_v54  ;;  %v219_v63 = vadd.f32 %v428_v2, %v148_v55  ;;  %v278_v0 = vmax.f32 %v214_v56, 0.0  ;;  %v279_v3 = vmax.f32 %v215_v57, 0.0 }
  0x35   :  { %v280_v4 = vmax.f32 %v216_v58, 0.0  ;;  %v220_v5 = vadd.f32 %v428_v2, %v149_v59  ;;  %341 = vst [vmem:[#allocation2 + $0x1c0] sm:$0xff] %v277_v60  ;;  %v281_v6 = vmax.f32 %v217_v61, 0.0 }
  0x36   :  { %v282_v7 = vmax.f32 %v218_v62, 0.0  ;;  %v283_v8 = vmax.f32 %v219_v63, 0.0  ;;  %342 = vst [vmem:[#allocation2 + $0x1c8] sm:$0xff] %v278_v0  ;;  %343 = vst [vmem:[#allocation2 + $0x1d0] sm:$0xff] %v279_v3 }
  0x37   :  { %344 = vst [vmem:[#allocation2 + $0x1d8] sm:$0xff] %v280_v4  ;;  %v284_v1 = vmax.f32 %v220_v5, 0.0  ;;  %345 = vst [vmem:[#allocation2 + $0x1e0] sm:$0xff] %v281_v6 }
  0x38   :  { %346 = vst [vmem:[#allocation2 + $0x1e8] sm:$0xff] %v282_v7  ;;  %347 = vst [vmem:[#allocation2 + $0x1f0] sm:$0xff] %v283_v8 }
  0x39   :  { %348 = vst [vmem:[#allocation2 + $0x1f8] sm:$0xff] %v284_v1 }
  0x3a   :  { %381 = shalt.err (!%p378_p4)
}
  0x3b   :  { %s382_s30 = scalar_lea.hbm %s762_s3, 8192 }
  0x3c   :  { %p383_p5 = scmp.ne.s32.totalorder %s762_s3, %s382_s30  ;;  %p386_p6 = scmp.lt.u32.totalorder %s382_s30, %s762_s3 }
  0x3e   :  { %p388_p7 = pnand %p386_p6, %p383_p5 }
  0x40   :  { %391 = shalt.err (!%p388_p7)
}
  0x41   :  { %s395_s8 = smov 128   ;;  %s396_s9 = smov 8  }
  0x42   :  { %360 = dma.vmem_to_hbm [thread:$0]  %s355_s26, 8192, %s762_s3, [#allocation3], %s395_s8, %s395_s8, %s396_s9  }
  0x43   :  { %392 = dma.done.wait [#allocation3], 8192  }
  0x44   :  { %393 = vsyncadd [#allocation3], 4294959104 }
  0x45   :  { %364 = vsyncpa [#allocation3], 1 }

// kernel: up_forward.10
= control target key start
LH: loop header
LB: loop body
LE: loop exit
PB: predicated region body
PF: predicated region fallthrough
CT: control target
= control target key end

     0   :  { %s2129_s12 = smov 0   ;;  %s2131_s13 = smov 0   ;;  %s2556_s0 = inlined_call_operand.vmem [shape: bf16[2,18,18,128], index: 0, kind: input, shape index: {}]   ;;  %s2557_s1 = inlined_call_operand.vmem [shape: bf16[9,128,128], index: 1, kind: input, shape index: {}]   ;;  %s2558_s2 = inlined_call_operand.vmem [shape: f32[2,16,16,128], index: 2, kind: output, shape index: {0}]   ;;  %s2559_s3 = inlined_call_operand.vmem [shape: f32[2,8,128], index: 3, kind: output, shape index: {1}]  }
   0x1   :  { %s2133_s14 = smov 0   ;;  %s2135_s15 = smov 0  }
   0x2   :  { %s2137_s16 = smov 0  }
   0x3 LB: > { %s23_s17 = sadd.s32 1, %s2096_s14  ;;  %s26_s18 = sadd.s32 1, %s2100_s15  ;;  %s2104_s16 = sphi %s2137_s16, %s14_s16   ;;  %s2100_s15 = sphi %s2135_s15, %s2563_s15   ;;  %s2096_s14 = sphi %s2133_s14, %s2562_s14   ;;  %s2092_s13 = sphi %s2131_s13, %s2561_s13   ;;  %s2088_s12 = sphi %s2129_s12, %s2560_s12  }
   0x4   : > { %p24_p0 = scmp.ge.s32.totalorder %s23_s17, 16  ;;  %p1430_p1 = scmp.ge.s32.totalorder %s2104_s16, 1 }
   0x5   : > { %p154_p2 = scmp.lt.s32.totalorder %s2104_s16, 33 }
   0x6   : > { %s2565_s17 = smov (%p24_p0, %s23_s17), 0  ;;  %s2567_s18 = smov (!%p24_p0, %s26_s18), %s2100_s15 }
   0x7   : > { %p155_p3 = pnand %p1430_p1, %p154_p2  ;;  %p28_p4 = scmp.ge.s32.totalorder %s2567_s18, 2 }
   0x8   : > { %v1988_v0 = vld [vmem:[%s2557_s1 + $0x40] sm:$0xff] (!%p155_p3)   ;;  %v2106_v1 = vmov (!%p155_p3), 0.0   ;;  %v1990_v3 = vld [vmem:[%s2557_s1 + $0x48] sm:$0xff] (!%p155_p3)   ;;  %vm2107_vm0 = vmmov (!%p155_p3), 0   ;;  %p186_p5 = scmp.lt.s32.totalorder (!%p155_p3), %s2092_s13, 1  ;;  %v1992_v5 = vld [vmem:[%s2557_s1 + $0x50] sm:$0xff] (!%p155_p3)  }
   0x9   : > { %s2569_s18 = smov (%p28_p4, %s2567_s18), 0  ;;  %158 = sbr.rel (%p155_p3) target bundleno = 407 (0x197), region = 28 }
   0xa   : > { %1734 = vmatprep.subr.bf16.mxu1 (!%p155_p3), %v2106_v1  ;;  %1814 = vmatprep.subr.bf16.mxu0 (!%p155_p3), %v2106_v1  ;;  %v1989_v2 = vld [vmem:[%s2557_s1 + $0x100] sm:$0xff] (!%p155_p3)   ;;  %v1991_v4 = vld [vmem:[%s2557_s1 + $0x108] sm:$0xff] (!%p155_p3)   ;;  %v1993_v6 = vld [vmem:[%s2557_s1 + $0x110] sm:$0xff] (!%p155_p3)   ;;  %s1652_s11 = smul.u32 (!%p155_p3), 12, %s2088_s12  ;;  %vm252_vm1 = vsmask.f32 (!%p155_p3), 7424 }
   0xb   : > { %1735 = vmatpush3.bf16.msra.mxu1 (!%p155_p3), %v1988_v0  ;;  %1750 = vmatprep.mubr.msk.bf16.mxu1 (!%p155_p3), %vm2107_vm0, %v2106_v1  ;;  %v1994_v7 = vld [vmem:[%s2557_s1 + $0x58] sm:$0xff] (!%p155_p3)   ;;  %v1996_v9 = vld [vmem:[%s2557_s1 + $0x60] sm:$0xff] (!%p155_p3)   ;;  %v1998_v13 = vld [vmem:[%s2557_s1 + $0x68] sm:$0xff] (!%p155_p3)   ;;  %vm462_vm2 = vcmask (!%p155_p3), 1046528   ;;  %p193_p6 = scmp.lt.s32.totalorder (!%p155_p3), %s2088_s12, 15  ;;  %p1649_p7 = scmp.ne.s32.totalorder (!%p155_p3), %s2088_s12, 0 }
   0xc   : > { %1815 = vmatpush3.bf16.msra.mxu0 (!%p155_p3), %v1989_v2  ;;  %1736 = vmatprep.subr.bf16.mxu1 (!%p155_p3), %v2106_v1  ;;  %v1995_v8 = vld [vmem:[%s2557_s1 + $0x118] sm:$0xff] (!%p155_p3)   ;;  %v1997_v10 = vld [vmem:[%s2557_s1 + $0x120] sm:$0xff] (!%p155_p3)   ;;  %v1999_v14 = vld [vmem:[%s2557_s1 + $0x128] sm:$0xff] (!%p155_p3)  }
   0xd   : > { %1816 = vmatprep.subr.bf16.mxu0 (!%p155_p3), %v2106_v1  ;;  %1830 = vmatprep.mubr.msk.bf16.mxu0 (!%p155_p3), %vm2107_vm0, %v2106_v1  ;;  %v2000_v17 = vld [vmem:[%s2557_s1 + $0x70] sm:$0xff] (!%p155_p3)   ;;  %v2002_v27 = vld [vmem:[%s2557_s1 + $0x78] sm:$0xff] (!%p155_p3)   ;;  %v2006_v36 = vld [vmem:[%s2557_s1] sm:$0xff] (!%p155_p3)  }
   0xe   : > { %v2001_v18 = vld [vmem:[%s2557_s1 + $0x130] sm:$0xff] (!%p155_p3)   ;;  %v2003_v30 = vld [vmem:[%s2557_s1 + $0x138] sm:$0xff] (!%p155_p3)   ;;  %v2009_v38 = vld [vmem:[%s2557_s1 + $0x140] sm:$0xff] (!%p155_p3)  }
   0xf   : > { %1737 = vmatpush3.bf16.msra.mxu1 (!%p155_p3), %v1990_v3  ;;  %v2010_v40 = vld [vmem:[%s2557_s1 + $0x8] sm:$0xff] (!%p155_p3)   ;;  %v2012_v42 = vld [vmem:[%s2557_s1 + $0x10] sm:$0xff] (!%p155_p3)   ;;  %v2014_v44 = vld [vmem:[%s2557_s1 + $0x18] sm:$0xff] (!%p155_p3)  }
  0x10   : > { %s2571_s13 = smov (!%p186_p5, %s2092_s13), 1  ;;  %1817 = vmatpush3.bf16.msra.mxu0 %v1991_v4  ;;  %1738 = vmatprep.subr.bf16.mxu1 %v2106_v1  ;;  %v2011_v41 = vld [vmem:[%s2557_s1 + $0x148] sm:$0xff]   ;;  %v2013_v43 = vld [vmem:[%s2557_s1 + $0x150] sm:$0xff]   ;;  %v2015_v45 = vld [vmem:[%s2557_s1 + $0x158] sm:$0xff]  }
  0x11   : > { %s1944_s4 = smul.u32 216, %s2571_s13  ;;  %s1435_s5 = sshll.u32 %s2571_s13, 3  ;;  %1818 = vmatprep.subr.bf16.mxu0 %v2106_v1  ;;  %v2016_v46 = vld [vmem:[%s2557_s1 + $0x20] sm:$0xff]   ;;  %v2018_v48 = vld [vmem:[%s2557_s1 + $0x28] sm:$0xff]   ;;  %v2020_v50 = vld [vmem:[%s2557_s1 + $0x30] sm:$0xff]  }
  0x12   : > { %s2200_s8 = scalar_lea.vmem %s2559_s3, %s1435_s5  ;;  %v2017_v47 = vld [vmem:[%s2557_s1 + $0x160] sm:$0xff]   ;;  %v2019_v49 = vld [vmem:[%s2557_s1 + $0x168] sm:$0xff]   ;;  %v2021_v51 = vld [vmem:[%s2557_s1 + $0x170] sm:$0xff]   ;;  %s1433_s24 = sshll.u32 %s2571_s13, 5 }
  0x13   : > { %1739 = vmatpush3.bf16.msra.mxu1 %v1992_v5  ;;  %s190_s23 = scalar_lea.vmem %s2556_s0, %s1944_s4  ;;  %v2022_v52 = vld [vmem:[%s2557_s1 + $0x38] sm:$0xff]   ;;  %v2024_v56 = vld [vmem:[%s2557_s1 + $0x80] sm:$0xff]   ;;  %v2026_v61 = vld [vmem:[%s2557_s1 + $0x88] sm:$0xff]  }
  0x14   : > { %1819 = vmatpush3.bf16.msra.mxu0 %v1993_v6  ;;  %1740 = vmatprep.subr.bf16.mxu1 %v2106_v1  ;;  %s2217_s26 = scalar_lea.vmem %s190_s23, %s1652_s11  ;;  %v2023_v54 = vld [vmem:[%s2557_s1 + $0x178] sm:$0xff]   ;;  %v2025_v59 = vld [vmem:[%s2557_s1 + $0x180] sm:$0xff]   ;;  %v2027_v62 = vld [vmem:[%s2557_s1 + $0x188] sm:$0xff]  }
  0x15   : > { %1820 = vmatprep.subr.bf16.mxu0 %v2106_v1  ;;  %v2225_v11 = vld [vmem:[%s2217_s26] sm:$0xff]   ;;  %v2005_v12 = vld [vmem:[%s2217_s26 + $0x8] ss:$0 sps:$4 sm:$0x11]   ;;  %v2237_v16 = vld [vmem:[%s2217_s26 + $0xc] sm:$0xff]   ;;  %s194_s22 = scalar_select %p193_p6, %s2088_s12, 15 }
  0x16   : > { %v256_v15 = vshll.u32 %v2225_v11, 16  ;;  %v254_v19 = vshrl.u32 %v2225_v11, 16  ;;  %v261_v20 = vshll.u32 %v2005_v12, 16  ;;  %v2248_v21 = vld [vmem:[%s2217_s26 + $0x14] ss:$0 sps:$4 sm:$0x11]  }
  0x17   : > { %1741 = vmatpush3.bf16.msra.mxu1 %v1994_v7  ;;  %v702_v23 = vshll.u32 %v2237_v16, 16  ;;  %v700_v24 = vshrl.u32 %v2237_v16, 16  ;;  %v707_v25 = vshll.u32 %v2248_v21, 16  ;;  %v463_v33 = vrot.slane %v2225_v11, 1  ;;  %v2343_v57 = vld [vmem:[%s2217_s26 + $0x18] sm:$0xff]   ;;  %v2028_v63 = vld [vmem:[%s2557_s1 + $0x90] sm:$0xff]  }
  0x18   : > { %1821 = vmatpush3.bf16.msra.mxu0 %v1995_v8  ;;  %1742 = vmatprep.subr.bf16.mxu1 %v2106_v1  ;;  %v258_v22 = vrot.slane %v256_v15, 1  ;;  %v263_v29 = vrot.slane %v261_v20, 1  ;;  %v464_v34 = vrot.slane %v2005_v12, 1  ;;  %v820_v53 = vrot.slane %v2237_v16, 1  ;;  %v2029_v3 = vld [vmem:[%s2557_s1 + $0x190] sm:$0xff]   ;;  %v2033_v15 = vld [vmem:[%s2557_s1 + $0x1a0] sm:$0xff]  }
  0x19   : > { %1822 = vmatprep.subr.bf16.mxu0 %v2106_v1  ;;  %v704_v26 = vrot.slane %v702_v23, 1  ;;  %v709_v32 = vrot.slane %v707_v25, 1  ;;  %v821_v55 = vrot.slane %v2248_v21, 1  ;;  %v1059_v60 = vshll.u32 %v2343_v57, 16  ;;  %v2037_v20 = vld [vmem:[%s2557_s1 + $0x1b0] sm:$0xff]   ;;  %v2038_v21 = vld [vmem:[%s2557_s1 + $0xb8] sm:$0xff]  }
  0x1a   : > { %v259_v28 = vor.u32 %v258_v22, %v254_v19  ;;  %v2274_v39 = vsel %vm462_vm2, %v463_v33, %v464_v34  ;;  %v1057_v0 = vshrl.u32 %v2343_v57, 16  ;;  %v2057_v4 = vld [vmem:[%s2217_s26 + $0x20] ss:$0 sps:$4 sm:$0x11]   ;;  %v1177_v5 = vrot.slane %v2343_v57, 1  ;;  %v2036_v19 = vld [vmem:[%s2557_s1 + $0xb0] sm:$0xff]  }
  0x1b   : > { %1743 = vmatpush3.bf16.msra.mxu1 %v1996_v9  ;;  %v705_v31 = vor.u32 %v704_v26, %v700_v24  ;;  %v822_v58 = vsel %vm462_vm2, %v820_v53, %v821_v55  ;;  %v1061_v2 = vrot.slane %v1059_v60, 1  ;;  %v1064_v7 = vshll.u32 %v2057_v4, 16  ;;  %v2030_v9 = vld [vmem:[%s2557_s1 + $0x98] sm:$0xff]   ;;  %v2040_v23 = vld [vmem:[%s2557_s1 + $0xc0] sm:$0xff]   ;;  %v2043_v25 = vld [vmem:[%s2557_s1 + $0xc8] sm:$0xff]   ;;  %s1432_s23 = sshll.u32 %s194_s22, 1 }
  0x1c   : > { %1823 = vmatpush3.bf16.msra.mxu0 %v1997_v10  ;;  %1744 = vmatprep.subr.bf16.mxu1 %v2106_v1  ;;  %v264_v35 = vsel %vm252_vm1, %v259_v28, %v263_v29  ;;  %v1178_v8 = vrot.slane %v2057_v4, 1  ;;  %v2039_v22 = vld [vmem:[%s2557_s1 + $0x1b8] sm:$0xff]   ;;  %v2042_v24 = vld [vmem:[%s2557_s1 + $0x1c0] sm:$0xff]   ;;  %v2044_v26 = vld [vmem:[%s2557_s1 + $0x1c8] sm:$0xff]   ;;  %s197_s25 = sadd.s32 %s1433_s24, %s1432_s23  ;;  %v2108_v55 = vmov (!%p1649_p7), 0.0  }
  0x1d   : > { %1824 = vmatprep.subr.bf16.mxu0 %v2106_v1  ;;  %v710_v37 = vsel %vm252_vm1, %v705_v31, %v709_v32  ;;  %v1062_v6 = vor.u32 %v1061_v2, %v1057_v0  ;;  %v1066_v10 = vrot.slane %v1064_v7, 1  ;;  %v2046_v28 = vld [vmem:[%s2557_s1 + $0x1d0] sm:$0xff]   ;;  %v2047_v29 = vld [vmem:[%s2557_s1 + $0xd8] sm:$0xff]   ;;  %v2049_v31 = vld [vmem:[%s2557_s1 + $0xe0] sm:$0xff]   ;;  %s1434_s27 = sshll.u32 %s197_s25, 3  ;;  %1278 = vst [vmem:[%s2200_s8] sm:$0xff] (!%p1649_p7), %v2108_v55 }
  0x1e   : > { %v2384_v12 = vsel %vm462_vm2, %v1177_v5, %v1178_v8  ;;  %v2050_v32 = vld [vmem:[%s2557_s1 + $0x1e0] sm:$0xff]   ;;  %v2051_v33 = vld [vmem:[%s2557_s1 + $0xe8] sm:$0xff]   ;;  %s199_s30 = scalar_lea.vmem %s2558_s2, %s1434_s27 }
  0x1f   : > { %1745 = vmatpush3.bf16.msra.mxu1 %v1998_v13  ;;  %v2388_v13 = vsel %vm252_vm1, %v1062_v6, %v1066_v10  ;;  %v2052_v34 = vld [vmem:[%s2557_s1 + $0x1e8] sm:$0xff]  }
  0x20   : > { %1825 = vmatpush3.bf16.msra.mxu0 %v1999_v14  ;;  %1746 = vmatprep.subr.bf16.mxu1 %v2106_v1  ;;  %v2032_v14 = vld [vmem:[%s2557_s1 + $0xa0] sm:$0xff]  }
  0x21   : > { %1826 = vmatprep.subr.bf16.mxu0 %v2106_v1 }
  0x23   : > { %1747 = vmatpush3.bf16.msra.mxu1 %v2000_v17  ;;  %v2034_v17 = vld [vmem:[%s2557_s1 + $0xa8] sm:$0xff]  }
  0x24   : > { %1827 = vmatpush3.bf16.msra.mxu0 %v2001_v18  ;;  %1748 = vmatprep.subr.bf16.mxu1 %v2106_v1  ;;  %v2035_v18 = vld [vmem:[%s2557_s1 + $0x1a8] sm:$0xff]  }
  0x25   : > { %1828 = vmatprep.subr.bf16.mxu0 %v2106_v1 }
  0x27   : > { %1749 = vmatpush3.bf16.msra.mxu1 %v2002_v27  ;;  %v2045_v27 = vld [vmem:[%s2557_s1 + $0xd0] sm:$0xff]  }
  0x28   : > { %1829 = vmatpush3.bf16.msra.mxu0 %v2003_v30  ;;  %1754 = vmatprep.subr.bf16.mxu1 %v2106_v1  ;;  %v2048_v30 = vld [vmem:[%s2557_s1 + $0x1d8] sm:$0xff]  }
  0x29   : > { %1834 = vmatprep.subr.bf16.mxu0 %v2106_v1 }
  0x2a   : > { %1751 = vmatmul.mubr.bf16.vlgmr.msra.gmra.mrb[0].mxu1 %v264_v35  ;;  %v2053_v35 = vld [vmem:[%s2557_s1 + $0xf0] sm:$0xff]  }
  0x2b   : > { %1755 = vmatpush3.bf16.msra.mxu1 %v2006_v36  ;;  %1831 = vmatmul.mubr.bf16.vlgmr.msra.gmra.mrb[0].mxu0 %v710_v37  ;;  %v2054_v36 = vld [vmem:[%s2557_s1 + $0x1f0] sm:$0xff]   ;;  %v2055_v37 = vld [vmem:[%s2557_s1 + $0xf8] sm:$0xff]  }
  0x2c   : > { %1835 = vmatpush3.bf16.msra.mxu0 %v2009_v38  ;;  %1756 = vmatprep.subr.bf16.mxu1 %v2106_v1  ;;  %v2056_v38 = vld [vmem:[%s2557_s1 + $0x1f8] sm:$0xff]  }
  0x2d   : > { %1836 = vmatprep.subr.bf16.mxu0 %v2106_v1  ;;  %1770 = vmatprep.mubr.msk.bf16.mxu1 %vm2107_vm0, %v2106_v1 }
  0x2e   : > { %1850 = vmatprep.mubr.msk.bf16.mxu0 %vm2107_vm0, %v2106_v1 }
  0x2f   : > { %1757 = vmatpush3.bf16.msra.mxu1 %v2010_v40  ;;  %v2059_v40 = vld [vmem:[%s2557_s1 + $0x208] sm:$0xff]  }
  0x30   : > { %1837 = vmatpush3.bf16.msra.mxu0 %v2011_v41  ;;  %1758 = vmatprep.subr.bf16.mxu1 %v2106_v1  ;;  %v2060_v41 = vld [vmem:[%s2557_s1 + $0x210] sm:$0xff]  }
  0x31   : > { %1838 = vmatprep.subr.bf16.mxu0 %v2106_v1 }
  0x33   : > { %1759 = vmatpush3.bf16.msra.mxu1 %v2012_v42  ;;  %v2062_v42 = vld [vmem:[%s2557_s1 + $0x220] sm:$0xff]  }
  0x34   : > { %1839 = vmatpush3.bf16.msra.mxu0 %v2013_v43  ;;  %1760 = vmatprep.subr.bf16.mxu1 %v2106_v1  ;;  %v2063_v43 = vld [vmem:[%s2557_s1 + $0x228] sm:$0xff]  }
  0x35   : > { %1840 = vmatprep.subr.bf16.mxu0 %v2106_v1 }
  0x37   : > { %1761 = vmatpush3.bf16.msra.mxu1 %v2014_v44  ;;  %v2064_v44 = vld [vmem:[%s2557_s1 + $0x230] sm:$0xff]  }
  0x38   : > { %1841 = vmatpush3.bf16.msra.mxu0 %v2015_v45  ;;  %1762 = vmatprep.subr.bf16.mxu1 %v2106_v1  ;;  %v2065_v45 = vld [vmem:[%s2557_s1 + $0x238] sm:$0xff]  }
  0x39   : > { %1842 = vmatprep.subr.bf16.mxu0 %v2106_v1 }
  0x3b   : > { %1763 = vmatpush3.bf16.msra.mxu1 %v2016_v46 }
  0x3c   : > { %1843 = vmatpush3.bf16.msra.mxu0 %v2017_v47  ;;  %1764 = vmatprep.subr.bf16.mxu1 %v2106_v1 }
  0x3d   : > { %1844 = vmatprep.subr.bf16.mxu0 %v2106_v1 }
  0x3f   : > { %1765 = vmatpush3.bf16.msra.mxu1 %v2018_v48 }
  0x40   : > { %1845 = vmatpush3.bf16.msra.mxu0 %v2019_v49  ;;  %1766 = vmatprep.subr.bf16.mxu1 %v2106_v1 }
  0x41   : > { %1846 = vmatprep.subr.bf16.mxu0 %v2106_v1 }
  0x43   : > { %1767 = vmatpush3.bf16.msra.mxu1 %v2020_v50 }
  0x44   : > { %1847 = vmatpush3.bf16.msra.mxu0 %v2021_v51  ;;  %1768 = vmatprep.subr.bf16.mxu1 %v2106_v1 }
  0x45   : > { %1848 = vmatprep.subr.bf16.mxu0 %v2106_v1 }
  0x47   : > { %1769 = vmatpush3.bf16.msra.mxu1 %v2022_v52 }
  0x48   : > { %1849 = vmatpush3.bf16.msra.mxu0 %v2023_v54  ;;  %1774 = vmatprep.subr.bf16.mxu1 %v2106_v1 }
  0x49   : > { %1854 = vmatprep.subr.bf16.mxu0 %v2106_v1 }
  0x4a   : > { %1771 = vmatmul.mubr.bf16.vlgmr.msra.gmra.mrb[0].mxu1 %v2225_v11  ;;  %v2031_v11 = vld [vmem:[%s2557_s1 + $0x198] sm:$0xff]  }
  0x4b   : > { %1775 = vmatpush3.bf16.msra.mxu1 %v2024_v56  ;;  %1851 = vmatmul.mubr.bf16.vlgmr.msra.gmra.mrb[0].mxu0 %v822_v58 }
  0x4c   : > { %1855 = vmatpush3.bf16.msra.mxu0 %v2025_v59  ;;  %1776 = vmatprep.subr.bf16.mxu1 %v2106_v1 }
  0x4d   : > { %1856 = vmatprep.subr.bf16.mxu0 %v2106_v1  ;;  %1790 = vmatprep.mubr.msk.bf16.mxu1 %vm2107_vm0, %v2106_v1 }
  0x4e   : > { %1870 = vmatprep.mubr.msk.bf16.mxu0 %vm2107_vm0, %v2106_v1 }
  0x4f   : > { %1777 = vmatpush3.bf16.msra.mxu1 %v2026_v61 }
  0x50   : > { %1857 = vmatpush3.bf16.msra.mxu0 %v2027_v62  ;;  %1778 = vmatprep.subr.bf16.mxu1 %v2106_v1 }
  0x51   : > { %1858 = vmatprep.subr.bf16.mxu0 %v2106_v1 }
  0x53   : > { %1779 = vmatpush3.bf16.msra.mxu1 %v2028_v63 }
  0x54   : > { %1859 = vmatpush3.bf16.msra.mxu0 %v2029_v3  ;;  %1780 = vmatprep.subr.bf16.mxu1 %v2106_v1 }
  0x55   : > { %1860 = vmatprep.subr.bf16.mxu0 %v2106_v1 }
  0x57   : > { %1781 = vmatpush3.bf16.msra.mxu1 %v2030_v9 }
  0x58   : > { %1861 = vmatpush3.bf16.msra.mxu0 %v2031_v11  ;;  %1782 = vmatprep.subr.bf16.mxu1 %v2106_v1 }
  0x59   : > { %1862 = vmatprep.subr.bf16.mxu0 %v2106_v1 }
  0x5b   : > { %1783 = vmatpush3.bf16.msra.mxu1 %v2032_v14 }
  0x5c   : > { %1863 = vmatpush3.bf16.msra.mxu0 %v2033_v15  ;;  %1784 = vmatprep.subr.bf16.mxu1 %v2106_v1 }
  0x5d   : > { %1864 = vmatprep.subr.bf16.mxu0 %v2106_v1 }
  0x5f   : > { %1785 = vmatpush3.bf16.msra.mxu1 %v2034_v17 }
  0x60   : > { %1865 = vmatpush3.bf16.msra.mxu0 %v2035_v18  ;;  %1786 = vmatprep.subr.bf16.mxu1 %v2106_v1 }
  0x61   : > { %1866 = vmatprep.subr.bf16.mxu0 %v2106_v1 }
  0x63   : > { %1787 = vmatpush3.bf16.msra.mxu1 %v2036_v19 }
  0x64   : > { %1867 = vmatpush3.bf16.msra.mxu0 %v2037_v20  ;;  %1788 = vmatprep.subr.bf16.mxu1 %v2106_v1 }
  0x65   : > { %1868 = vmatprep.subr.bf16.mxu0 %v2106_v1 }
  0x67   : > { %1789 = vmatpush3.bf16.msra.mxu1 %v2038_v21 }
  0x68   : > { %1869 = vmatpush3.bf16.msra.mxu0 %v2039_v22  ;;  %1794 = vmatprep.subr.bf16.mxu1 %v2106_v1 }
  0x69   : > { %1874 = vmatprep.subr.bf16.mxu0 %v2106_v1 }
  0x6a   : > { %1791 = vmatmul.mubr.bf16.vlgmr.msra.gmra.mrb[0].mxu1 %v2274_v39  ;;  %v2058_v39 = vld [vmem:[%s2557_s1 + $0x200] sm:$0xff]  }
  0x6b   : > { %1795 = vmatpush3.bf16.msra.mxu1 %v2040_v23  ;;  %1871 = vmatmul.mubr.bf16.vlgmr.msra.gmra.mrb[0].mxu0 %v2343_v57 }
  0x6c   : > { %1875 = vmatpush3.bf16.msra.mxu0 %v2042_v24  ;;  %1796 = vmatprep.subr.bf16.mxu1 %v2106_v1 }
  0x6d   : > { %1876 = vmatprep.subr.bf16.mxu0 %v2106_v1  ;;  %1810 = vmatprep.mubr.msk.bf16.mxu1 %vm2107_vm0, %v2106_v1 }
  0x6e   : > { %1890 = vmatprep.mubr.msk.bf16.mxu0 %vm2107_vm0, %v2106_v1 }
  0x6f   : > { %1797 = vmatpush3.bf16.msra.mxu1 %v2043_v25 }
  0x70   : > { %1877 = vmatpush3.bf16.msra.mxu0 %v2044_v26  ;;  %1798 = vmatprep.subr.bf16.mxu1 %v2106_v1 }
  0x71   : > { %1878 = vmatprep.subr.bf16.mxu0 %v2106_v1 }
  0x73   : > { %1799 = vmatpush3.bf16.msra.mxu1 %v2045_v27 }
  0x74   : > { %1879 = vmatpush3.bf16.msra.mxu0 %v2046_v28  ;;  %1800 = vmatprep.subr.bf16.mxu1 %v2106_v1 }
  0x75   : > { %1880 = vmatprep.subr.bf16.mxu0 %v2106_v1 }
  0x77   : > { %1801 = vmatpush3.bf16.msra.mxu1 %v2047_v29 }
  0x78   : > { %1881 = vmatpush3.bf16.msra.mxu0 %v2048_v30  ;;  %1802 = vmatprep.subr.bf16.mxu1 %v2106_v1 }
  0x79   : > { %1882 = vmatprep.subr.bf16.mxu0 %v2106_v1 }
  0x7b   : > { %1803 = vmatpush3.bf16.msra.mxu1 %v2049_v31 }
  0x7c   : > { %1883 = vmatpush3.bf16.msra.mxu0 %v2050_v32  ;;  %1804 = vmatprep.subr.bf16.mxu1 %v2106_v1 }
  0x7d   : > { %1884 = vmatprep.subr.bf16.mxu0 %v2106_v1 }
  0x7f   : > { %1805 = vmatpush3.bf16.msra.mxu1 %v2051_v33 }
  0x80   : > { %1885 = vmatpush3.bf16.msra.mxu0 %v2052_v34  ;;  %1806 = vmatprep.subr.bf16.mxu1 %v2106_v1 }
  0x81   : > { %1886 = vmatprep.subr.bf16.mxu0 %v2106_v1 }
  0x83   : > { %1807 = vmatpush3.bf16.msra.mxu1 %v2053_v35 }
  0x84   : > { %1887 = vmatpush3.bf16.msra.mxu0 %v2054_v36  ;;  %1808 = vmatprep.subr.bf16.mxu1 %v2106_v1 }
  0x85   : > { %1888 = vmatprep.subr.bf16.mxu0 %v2106_v1 }
  0x87   : > { %1809 = vmatpush3.bf16.msra.mxu1 %v2055_v37 }
  0x88   : > { %1889 = vmatpush3.bf16.msra.mxu0 %v2056_v38 }
  0x89   : > { %1894 = vmatprep.subr.bf16.mxu0 %v2106_v1 }
  0x8a   : > { %1811 = vmatmul.mubr.bf16.vlgmr.msra.gmra.mrb[0].mxu1 %v2237_v16  ;;  %v2061_v16 = vld [vmem:[%s2557_s1 + $0x218] sm:$0xff]  }
  0x8b   : > { %1891 = vmatmul.mubr.bf16.vlgmr.msra.gmra.mrb[0].mxu0 %v2388_v13 }
  0x8c   : > { %1895 = vmatpush3.bf16.msra.mxu0 %v2058_v39  ;;  %1910 = vmatprep.mubr.msk.bf16.mxu0 %vm2107_vm0, %v2106_v1 }
  0x8d   : > { %1896 = vmatprep.subr.bf16.mxu0 %v2106_v1 }
  0x90   : > { %1897 = vmatpush3.bf16.msra.mxu0 %v2059_v40 }
  0x91   : > { %1898 = vmatprep.subr.bf16.mxu0 %v2106_v1 }
  0x94   : > { %1899 = vmatpush3.bf16.msra.mxu0 %v2060_v41 }
  0x95   : > { %1900 = vmatprep.subr.bf16.mxu0 %v2106_v1 }
  0x98   : > { %1901 = vmatpush3.bf16.msra.mxu0 %v2061_v16 }
  0x99   : > { %1902 = vmatprep.subr.bf16.mxu0 %v2106_v1 }
  0x9c   : > { %1903 = vmatpush3.bf16.msra.mxu0 %v2062_v42 }
  0x9d   : > { %1904 = vmatprep.subr.bf16.mxu0 %v2106_v1 }
  0xa0   : > { %1905 = vmatpush3.bf16.msra.mxu0 %v2063_v43 }
  0xa1   : > { %1906 = vmatprep.subr.bf16.mxu0 %v2106_v1 }
  0xa4   : > { %1907 = vmatpush3.bf16.msra.mxu0 %v2064_v44 }
  0xa5   : > { %1908 = vmatprep.subr.bf16.mxu0 %v2106_v1 }
  0xa8   : > { %1909 = vmatpush3.bf16.msra.mxu0 %v2065_v45 }
  0xab   : > { %1911 = vmatmul.mubr.bf16.vlgmr.msra.gmra.mrb[0].mxu0 %v2384_v12 }
 0x15d   : > { %v670_v46 = vpop.f32.mrb[0].mxu1 }
 0x15e   : > { %v1812_v47 = vpop.f32.mrb[1].mxu1 }
 0x15f   : > { %v673_v48 = vpop.f32.mrb[2].mxu1 }
 0x160   : > { %v1813_v49 = vpop.f32.mrb[3].mxu1 }
 0x17d   : > { %1277 = sbr.rel (%p1649_p7) target bundleno = 388 (0x184), region = 32 }
 0x17e   : > { %v1263_v50 = vpop.f32.mrb[0].mxu0 }
 0x17f   : > { %v1914_v51 = vadd.f32 %v1263_v50, %v670_v46  ;;  %v1912_v1 = vpop.f32.mrb[1].mxu0 }
 0x180   : > { %v1266_v52 = vpop.f32.mrb[2].mxu0 }
 0x181   : > { %1272 = vst [vmem:[%s199_s30] sm:$0xff] %v1914_v51  ;;  %v1915_v53 = vadd.f32 %v1266_v52, %v673_v48  ;;  %v1913_v54 = vpop.f32.mrb[3].mxu0 }
 0x183   : > { %1273 = vst [vmem:[%s199_s30 + $0x8] sm:$0xff] %v1915_v53 }
 0x184 PF: > { %v1279_v56 = vadd.f32 %v1915_v53, %v1914_v51  ;;  %v1286_v57 = vmul.f32 %v1914_v51, %v1914_v51  ;;  %v1287_v58 = vmul.f32 %v1915_v53, %v1915_v53  ;;  %v1295_v6 = vld [vmem:[%s2200_s8] sm:$0x1]  ;;  %v1298_v9 = vld [vmem:[%s2200_s8 + $0x1] sm:$0x1] }
 0x186   : > { %v1280_v59 = vrot.slane %v1279_v56, 4  ;;  %v1288_v60 = vadd.f32 %v1287_v58, %v1286_v57 }
 0x188   : > { %v1281_v61 = vadd.f32 %v1280_v59, %v1279_v56  ;;  %v1289_v62 = vrot.slane %v1288_v60, 4 }
 0x18a   : > { %v1282_v63 = vrot.slane %v1281_v61, 2  ;;  %v1290_v0 = vadd.f32 %v1289_v62, %v1288_v60 }
 0x18c   : > { %v1283_v2 = vadd.f32 %v1282_v63, %v1281_v61  ;;  %v1291_v3 = vrot.slane %v1290_v0, 2 }
 0x18e   : > { %v1284_v4 = vrot.slane %v1283_v2, 1  ;;  %v1292_v5 = vadd.f32 %v1291_v3, %v1290_v0 }
 0x190   : > { %v1285_v7 = vadd.f32 %v1284_v4, %v1283_v2  ;;  %v1293_v8 = vrot.slane %v1292_v5, 1 }
 0x192   : > { %v1296_v10 = vadd.f32 %v1295_v6, %v1285_v7  ;;  %v1294_v11 = vadd.f32 %v1293_v8, %v1292_v5 }
 0x194   : > { %1297 = vst [vmem:[%s2200_s8] sm:$0x1] %v1296_v10  ;;  %v1299_v12 = vadd.f32 %v1298_v9, %v1294_v11 }
 0x196   : > { %1300 = vst [vmem:[%s2200_s8 + $0x1] sm:$0x1] %v1299_v12 }
 0x197 PF: > { %s14_s16 = sadd.s32 1, %s2104_s16   ;;  %s2560_s12 = smov %s2096_s14 }
 0x198   : > { %p11_p8 = scmp.ge.s32.totalorder %s14_s16, 34   ;;  %s2561_s13 = smov %s2100_s15 }
 0x199   : > { %s2562_s14 = smov %s2565_s17  ;;  %s2563_s15 = smov %s2569_s18 }
 0x19a   :  { %13 = sbr.rel (!%p11_p8) target bundleno = 3 (0x3), region = 85 }

</bundles_post_ra>
